<compile_context>
chip_gen: v6e
topology: v6e:2x2x1
jax: 0.10.0
libtpu: 0.0.40
codegen_flags: <defaults>
</compile_context>

<pallas_src>
import functools

import jax
import jax.numpy as jnp
import numpy as np
from jax.experimental import pallas as pl
from jax.experimental.pallas import tpu as pltpu


def _attn_enc_kernel(x1_ref, x2_ref, mask_ref,
                     w1_ref, t1_ref, w2_ref, t2_ref, w3_ref, t3_ref,
                     scol_ref, o_ref, col_ref, *, W, HW, HP, WP, B):
    """One grid step == B images; activations kept as [C, B*H*W]."""
    LB = B * HW

    # ---- conv1 (1x1) + folded BN1 + ReLU ------------------------------------
    x1 = x1_ref[...].astype(jnp.bfloat16)                       # [C1, LB]
    h = jnp.dot(w1_ref[...], x1, preferred_element_type=jnp.float32)
    h = jnp.maximum(h + t1_ref[...], 0.0)                       # [HID, LB] f32

    # ---- conv2 (1x1) + folded BN2 + sigmoid -> attention mask ----------------
    a = jnp.dot(w2_ref[...], h.astype(jnp.bfloat16),
                preferred_element_type=jnp.float32)
    a = jax.nn.sigmoid(a + t2_ref[...])                         # [C2, LB]

    # ---- apply attention to the second shared feature map --------------------
    m = x2_ref[...] * a                                          # [C2, LB] f32
    C2 = m.shape[0]

    # ---- conv3 (3x3, pad=1) as ONE im2col matmul ------------------------------
    # Each tap is a circular lane roll (XLU); wrapped / out-of-image sources are
    # zeroed with precomputed {0,1} border masks.  Taps land directly in a bf16
    # VMEM scratch -> no f32 concat + bf16 repack of the full im2col.
    for k in range(9):
        dy, dx = divmod(k, 3)
        s = (dy - 1) * W + (dx - 1)
        shifted = m if s == 0 else pltpu.roll(m, (-s) % LB, axis=1)
        col_ref[k * C2:(k + 1) * C2, :] = (
            shifted * mask_ref[k:k + 1, :]).astype(jnp.bfloat16)

    y = jnp.dot(w3_ref[...], col_ref[...], preferred_element_type=jnp.float32)
    y = jnp.maximum(y + t3_ref[...], 0.0)                       # [COUT, LB] f32

    # ---- 2x2 max-pool (stride 2): pair-maxes + separable compaction -----------
    # Pair maxes along x and y via lane rolls; anchor lanes (even row, even col)
    # then hold the full 2x2 window max.  Anchors never read wrapped lanes.
    y = jnp.maximum(y, pltpu.roll(y, LB - 1, axis=1))           # col-pair max
    y = jnp.maximum(y, pltpu.roll(y, LB - W, axis=1))           # row-pair max

    # Even-row select = static contiguous lane slice; even-col select = tiny
    # shared [W, WP] 0/1 matmul (f32, exact).  Per-row stores hit the VMEM
    # output block; the HBM writeback is the full lane-dense [COUT, B*P] block.
    scol = scol_ref[...]                                        # [W, WP] f32
    for r in range(B * HP):
        b, ry = divmod(r, HP)
        off = b * HW + (2 * ry) * W
        row = y[:, off:off + W]                                 # [COUT, W]
        pooled = jnp.dot(row, scol, preferred_element_type=jnp.float32)
        o_ref[:, r * WP:(r + 1) * WP] = pooled.astype(o_ref.dtype)


def attention_module_encoder(conv1_shared, conv2_shared, params,
                             prev_layer_outs=None, batch_block=8):
    """NCHW wrapper: conv1_shared (N,C1,H,W), conv2_shared (N,C2,H,W)."""
    if prev_layer_outs is not None:
        conv1_shared = jnp.concatenate([conv1_shared, prev_layer_outs], axis=1)

    N, C1, H, W = conv1_shared.shape
    C2 = conv2_shared.shape[1]
    assert H % 2 == 0 and W % 2 == 0, "2x2 maxpool requires even H, W"
    HW, HP, WP = H * W, H // 2, W // 2
    P = HP * WP

    HID = params["w1"].shape[0]
    COUT = params["w3"].shape[0]

    # images per grid step (largest divisor of N not exceeding batch_block)
    B = max(1, min(batch_block, N))
    while N % B:
        B -= 1
    LB = B * HW

    # ---- fold conv bias + eval-mode BN into weights (w'=s*w, t'=s*b+t) -------
    s1, s2, s3 = params["s1"], params["s2"], params["s3"]
    w1f = (params["w1"] * s1[:, None]).astype(jnp.bfloat16)            # [HID,C1]
    t1f = (params["b1"] * s1 + params["t1"]).reshape(HID, 1)
    w2f = (params["w2"] * s2[:, None]).astype(jnp.bfloat16)            # [C2,HID]
    t2f = (params["b2"] * s2 + params["t2"]).reshape(C2, 1)
    # torch OIHW -> [COUT, (dy, dx, cin)] with BN folded (matches im2col order).
    w3f = (jnp.transpose(params["w3"], (0, 2, 3, 1)).reshape(COUT, 9 * C2)
           * s3[:, None]).astype(jnp.bfloat16)
    t3f = (params["b3"] * s3 + params["t3"]).reshape(COUT, 1)

    # ---- static {0,1} border masks for the 9 conv3 taps, tiled over B images --
    yy, xx = np.meshgrid(np.arange(H), np.arange(W), indexing="ij")
    yy, xx = yy.reshape(-1), xx.reshape(-1)
    masks = np.zeros((9, HW), np.float32)
    for dy in range(3):
        for dx in range(3):
            sy, sx = yy + dy - 1, xx + dx - 1
            ok = (sy >= 0) & (sy < H) & (sx >= 0) & (sx < W)
            masks[dy * 3 + dx] = ok.astype(np.float32)
    masks = jnp.asarray(np.tile(masks, (1, B)))                         # [9, LB]

    # ---- tiny even-column selector for the maxpool (linear size: W x W/2) -----
    scol = np.zeros((W, WP), np.float32)
    scol[2 * np.arange(WP), np.arange(WP)] = 1.0
    scol = jnp.asarray(scol)

    # channel-major, batch*spatial flattened on lanes
    x1 = jnp.transpose(conv1_shared, (1, 0, 2, 3)).reshape(C1, N * HW)
    x2 = jnp.transpose(conv2_shared, (1, 0, 2, 3)).reshape(C2, N * HW)

    kernel = functools.partial(_attn_enc_kernel, W=W, HW=HW, HP=HP, WP=WP, B=B)

    def build(single_buffer_consts):
        def const(shape):
            idx = lambda n: (0,) * len(shape)
            if single_buffer_consts:
                # grid-invariant operand: one VMEM buffer is enough
                return pl.BlockSpec(shape, idx, pipeline_mode=pl.Buffered(1))
            return pl.BlockSpec(shape, idx)

        grid_spec = pltpu.PrefetchScalarGridSpec(
            num_scalar_prefetch=0,
            grid=(N // B,),
            in_specs=[
                pl.BlockSpec((C1, LB), lambda n: (0, n)),
                pl.BlockSpec((C2, LB), lambda n: (0, n)),
                const((9, LB)),
                const((HID, C1)), const((HID, 1)),
                const((C2, HID)), const((C2, 1)),
                const((COUT, 9 * C2)), const((COUT, 1)),
                const((W, WP)),
            ],
            out_specs=pl.BlockSpec((COUT, B * P), lambda n: (0, n)),
            scratch_shapes=[pltpu.VMEM((9 * C2, LB), jnp.bfloat16)],
        )
        return pl.pallas_call(
            kernel,
            out_shape=jax.ShapeDtypeStruct((COUT, N * P), jnp.float32),
            grid_spec=grid_spec,
            compiler_params=pltpu.CompilerParams(
                dimension_semantics=("parallel",),
                vmem_limit_bytes=64 * 1024 * 1024),
        )

    args = (x1, x2, masks, w1f, t1f, w2f, t2f, w3f, t3f, scol)
    try:
        out = build(True)(*args)
    except Exception:
        # Fallback for JAX versions without BlockSpec.pipeline_mode / Buffered(1).
        out = build(False)(*args)

    return out.reshape(COUT, N, HP, WP).transpose(1, 0, 2, 3)


# ------------------------- parameter construction ----------------------------
def make_params(key, c1_in, hidden, c2, cout, eps=1e-5):
    ks = jax.random.split(key, 22)

    def bn(kg, kb, km, kv, c):
        gamma = 1.0 + 0.1 * jax.random.normal(kg, (c,), jnp.float32)
        beta = 0.1 * jax.random.normal(kb, (c,), jnp.float32)
        mean = 0.1 * jax.random.normal(km, (c,), jnp.float32)
        var = 1.0 + 0.1 * jnp.abs(jax.random.normal(kv, (c,), jnp.float32))
        scale = gamma / jnp.sqrt(var + eps)
        shift = beta - mean * scale
        return scale, shift

    p = {}
    p["w1"] = 0.1 * jax.random.normal(ks[0], (hidden, c1_in), jnp.float32)
    p["b1"] = 0.1 * jax.random.normal(ks[1], (hidden,), jnp.float32)
    p["s1"], p["t1"] = bn(ks[2], ks[3], ks[4], ks[5], hidden)

    p["w2"] = 0.1 * jax.random.normal(ks[6], (c2, hidden), jnp.float32)
    p["b2"] = 0.1 * jax.random.normal(ks[7], (c2,), jnp.float32)
    p["s2"], p["t2"] = bn(ks[8], ks[9], ks[10], ks[11], c2)

    p["w3"] = 0.1 * jax.random.normal(ks[12], (cout, c2, 3, 3), jnp.float32)  # OIHW
    p["b3"] = 0.1 * jax.random.normal(ks[13], (cout,), jnp.float32)
    p["s3"], p["t3"] = bn(ks[14], ks[15], ks[16], ks[17], cout)
    return p


# ------------------------- pure-JAX reference --------------------------------
def ref_forward(x1, x2, p, prev=None):
    if prev is not None:
        x1 = jnp.concatenate([x1, prev], axis=1)
    bc = lambda v: v[None, :, None, None]
    h = jnp.einsum("oi,nihw->nohw", p["w1"], x1) + bc(p["b1"])
    h = jax.nn.relu(h * bc(p["s1"]) + bc(p["t1"]))
    a = jnp.einsum("oi,nihw->nohw", p["w2"], h) + bc(p["b2"])
    a = jax.nn.sigmoid(a * bc(p["s2"]) + bc(p["t2"]))
    m = x2 * a
    y = jax.lax.conv_general_dilated(
        m, p["w3"], (1, 1), "SAME",
        dimension_numbers=("NCHW", "OIHW", "NCHW")) + bc(p["b3"])
    y = jax.nn.relu(y * bc(p["s3"]) + bc(p["t3"]))
    y = jax.lax.reduce_window(y, -jnp.inf, jax.lax.max,
                              (1, 1, 2, 2), (1, 1, 2, 2), "VALID")
    return y


if __name__ == "__main__":
    # Small shapes consistent with the module (first encoder block: no prev).
    N, H, W = 2, 16, 16
    SHARED_1, SHARED_2, OUT_CH, HIDDEN = 8, 8, 8, 16

    key = jax.random.PRNGKey(0)
    k_x1, k_x2, k_p = jax.random.split(key, 3)
    conv1_shared = jax.random.normal(k_x1, (N, SHARED_1, H, W), jnp.float32)
    conv2_shared = jax.random.normal(k_x2, (N, SHARED_2, H, W), jnp.float32)
    params = make_params(k_p, SHARED_1, HIDDEN, SHARED_2, OUT_CH)

    out = jax.block_until_ready(
        attention_module_encoder(conv1_shared, conv2_shared, params))
    ref = jax.block_until_ready(ref_forward(conv1_shared, conv2_shared, params))

    assert out.shape == (N, OUT_CH, H // 2, W // 2), out.shape
    np.testing.assert_allclose(np.asarray(out), np.asarray(ref),
                               rtol=2e-2, atol=2e-2)
    print("KERNEL_OK")
</pallas_src>

<mosaic_0001>
module attributes {stable_mosaic.version = 11 : i64} {
  func.func @_attn_enc_kernel(%arg0: i32, %arg1: memref<8x512xf32, #tpu.memory_space<vmem>>, %arg2: memref<8x512xf32, #tpu.memory_space<vmem>>, %arg3: memref<9x512xf32, #tpu.memory_space<vmem>>, %arg4: memref<16x8xbf16, #tpu.memory_space<vmem>>, %arg5: memref<16x1xf32, #tpu.memory_space<vmem>>, %arg6: memref<8x16xbf16, #tpu.memory_space<vmem>>, %arg7: memref<8x1xf32, #tpu.memory_space<vmem>>, %arg8: memref<8x72xbf16, #tpu.memory_space<vmem>>, %arg9: memref<8x1xf32, #tpu.memory_space<vmem>>, %arg10: memref<16x8xf32, #tpu.memory_space<vmem>>, %arg11: memref<8x128xf32, #tpu.memory_space<vmem>>, %arg12: memref<72x512xbf16, #tpu.memory_space<vmem>>) attributes {dimension_semantics = [#tpu.dimension_semantics<parallel>], iteration_bounds = array<i64: 1>, scalar_prefetch = 0 : i64, scratch_operands = 1 : i64, tpu.core_type = #tpu.core_type<tc>, window_params = [{transform_indices = @transform_0, window_bounds = array<i64: 8, 512>}, {transform_indices = @transform_1, window_bounds = array<i64: 8, 512>}, {pipeline_mode = #tpu.pipeline_mode<synchronous>, transform_indices = @transform_2, window_bounds = array<i64: 9, 512>}, {pipeline_mode = #tpu.pipeline_mode<synchronous>, transform_indices = @transform_3, window_bounds = array<i64: 16, 8>}, {pipeline_mode = #tpu.pipeline_mode<synchronous>, transform_indices = @transform_4, window_bounds = array<i64: 16, 1>}, {pipeline_mode = #tpu.pipeline_mode<synchronous>, transform_indices = @transform_5, window_bounds = array<i64: 8, 16>}, {pipeline_mode = #tpu.pipeline_mode<synchronous>, transform_indices = @transform_6, window_bounds = array<i64: 8, 1>}, {pipeline_mode = #tpu.pipeline_mode<synchronous>, transform_indices = @transform_7, window_bounds = array<i64: 8, 72>}, {pipeline_mode = #tpu.pipeline_mode<synchronous>, transform_indices = @transform_8, window_bounds = array<i64: 8, 1>}, {pipeline_mode = #tpu.pipeline_mode<synchronous>, transform_indices = @transform_9, window_bounds = array<i64: 16, 8>}, {transform_indices = @transform_10, window_bounds = array<i64: 8, 128>}]} {
    %c0 = arith.constant 0 : index
    %c0_0 = arith.constant 0 : index
    %0 = vector.load %arg1[%c0, %c0_0] : memref<8x512xf32, #tpu.memory_space<vmem>>, vector<8x512xf32>
    %1 = arith.truncf %0 : vector<8x512xf32> to vector<8x512xbf16>
    %c0_1 = arith.constant 0 : index
    %c0_2 = arith.constant 0 : index
    %2 = vector.load %arg4[%c0_1, %c0_2] : memref<16x8xbf16, #tpu.memory_space<vmem>>, vector<16x8xbf16>
    %cst = arith.constant dense<0.000000e+00> : vector<16x512xf32>
    %3 = tpu.matmul %2, %1, %cst {dimension_numbers = #tpu.dot_dimension_numbers<[1], [0], [0], [1], [0, 0, 1, 1], [], []>} : vector<16x8xbf16>, vector<8x512xbf16>, vector<16x512xf32> -> vector<16x512xf32>
    %c0_3 = arith.constant 0 : index
    %c0_4 = arith.constant 0 : index
    %4 = vector.load %arg5[%c0_3, %c0_4] : memref<16x1xf32, #tpu.memory_space<vmem>>, vector<16x1xf32>
    %5 = vector.broadcast %4 : vector<16x1xf32> to vector<16x512xf32>
    %6 = arith.addf %3, %5 : vector<16x512xf32>
    %cst_5 = arith.constant 0.000000e+00 : f32
    %7 = vector.broadcast %cst_5 : f32 to vector<16x512xf32>
    %8 = arith.maximumf %6, %7 : vector<16x512xf32>
    %c0_6 = arith.constant 0 : index
    %c0_7 = arith.constant 0 : index
    %9 = vector.load %arg6[%c0_6, %c0_7] : memref<8x16xbf16, #tpu.memory_space<vmem>>, vector<8x16xbf16>
    %10 = arith.truncf %8 : vector<16x512xf32> to vector<16x512xbf16>
    %cst_8 = arith.constant dense<0.000000e+00> : vector<8x512xf32>
    %11 = tpu.matmul %9, %10, %cst_8 {dimension_numbers = #tpu.dot_dimension_numbers<[1], [0], [0], [1], [0, 0, 1, 1], [], []>} : vector<8x16xbf16>, vector<16x512xbf16>, vector<8x512xf32> -> vector<8x512xf32>
    %c0_9 = arith.constant 0 : index
    %c0_10 = arith.constant 0 : index
    %12 = vector.load %arg7[%c0_9, %c0_10] : memref<8x1xf32, #tpu.memory_space<vmem>>, vector<8x1xf32>
    %13 = vector.broadcast %12 : vector<8x1xf32> to vector<8x512xf32>
    %14 = arith.addf %11, %13 : vector<8x512xf32>
    %15 = arith.negf %14 : vector<8x512xf32>
    %16 = math.exp %15 : vector<8x512xf32>
    %cst_11 = arith.constant 1.000000e+00 : f32
    %17 = vector.broadcast %cst_11 : f32 to vector<8x512xf32>
    %18 = arith.addf %17, %16 : vector<8x512xf32>
    %19 = arith.divf %17, %18 : vector<8x512xf32>
    %c0_12 = arith.constant 0 : index
    %c0_13 = arith.constant 0 : index
    %20 = vector.load %arg2[%c0_12, %c0_13] : memref<8x512xf32, #tpu.memory_space<vmem>>, vector<8x512xf32>
    %21 = arith.mulf %20, %19 : vector<8x512xf32>
    %c17_i32 = arith.constant 17 : i32
    %22 = tpu.dynamic_rotate %21 by %c17_i32 dim 1 : vector<8x512xf32>, i32 -> vector<8x512xf32>
    %c0_14 = arith.constant 0 : index
    %c0_15 = arith.constant 0 : index
    %23 = vector.load %arg3[%c0_14, %c0_15] : memref<9x512xf32, #tpu.memory_space<vmem>>, vector<1x512xf32>
    %24 = vector.broadcast %23 : vector<1x512xf32> to vector<8x512xf32>
    %25 = arith.mulf %22, %24 : vector<8x512xf32>
    %26 = arith.truncf %25 : vector<8x512xf32> to vector<8x512xbf16>
    %c0_16 = arith.constant 0 : index
    %c0_17 = arith.constant 0 : index
    %27 = vector.load %arg12[%c0_16, %c0_17] : memref<72x512xbf16, #tpu.memory_space<vmem>>, vector<8x512xbf16>
    tpu.vector_store %arg12[%c0_16, %c0_17], %26 {strides = array<i32>} : memref<72x512xbf16, #tpu.memory_space<vmem>>, vector<8x512xbf16>,
    %c16_i32 = arith.constant 16 : i32
    %28 = tpu.dynamic_rotate %21 by %c16_i32 dim 1 : vector<8x512xf32>, i32 -> vector<8x512xf32>
    %c1 = arith.constant 1 : index
    %c0_18 = arith.constant 0 : index
    %29 = vector.load %arg3[%c1, %c0_18] : memref<9x512xf32, #tpu.memory_space<vmem>>, vector<1x512xf32>
    %30 = vector.broadcast %29 : vector<1x512xf32> to vector<8x512xf32>
    %31 = arith.mulf %28, %30 : vector<8x512xf32>
    %32 = arith.truncf %31 : vector<8x512xf32> to vector<8x512xbf16>
    %c8 = arith.constant 8 : index
    %c0_19 = arith.constant 0 : index
    %33 = vector.load %arg12[%c8, %c0_19] : memref<72x512xbf16, #tpu.memory_space<vmem>>, vector<8x512xbf16>
    tpu.vector_store %arg12[%c8, %c0_19], %32 {strides = array<i32>} : memref<72x512xbf16, #tpu.memory_space<vmem>>, vector<8x512xbf16>,
    %c15_i32 = arith.constant 15 : i32
    %34 = tpu.dynamic_rotate %21 by %c15_i32 dim 1 : vector<8x512xf32>, i32 -> vector<8x512xf32>
    %c2 = arith.constant 2 : index
    %c0_20 = arith.constant 0 : index
    %35 = vector.load %arg3[%c2, %c0_20] : memref<9x512xf32, #tpu.memory_space<vmem>>, vector<1x512xf32>
    %36 = vector.broadcast %35 : vector<1x512xf32> to vector<8x512xf32>
    %37 = arith.mulf %34, %36 : vector<8x512xf32>
    %38 = arith.truncf %37 : vector<8x512xf32> to vector<8x512xbf16>
    %c16 = arith.constant 16 : index
    %c0_21 = arith.constant 0 : index
    %39 = vector.load %arg12[%c16, %c0_21] : memref<72x512xbf16, #tpu.memory_space<vmem>>, vector<8x512xbf16>
    tpu.vector_store %arg12[%c16, %c0_21], %38 {strides = array<i32>} : memref<72x512xbf16, #tpu.memory_space<vmem>>, vector<8x512xbf16>,
    %c1_i32 = arith.constant 1 : i32
    %40 = tpu.dynamic_rotate %21 by %c1_i32 dim 1 : vector<8x512xf32>, i32 -> vector<8x512xf32>
    %c3 = arith.constant 3 : index
    %c0_22 = arith.constant 0 : index
    %41 = vector.load %arg3[%c3, %c0_22] : memref<9x512xf32, #tpu.memory_space<vmem>>, vector<1x512xf32>
    %42 = vector.broadcast %41 : vector<1x512xf32> to vector<8x512xf32>
    %43 = arith.mulf %40, %42 : vector<8x512xf32>
    %44 = arith.truncf %43 : vector<8x512xf32> to vector<8x512xbf16>
    %c24 = arith.constant 24 : index
    %c0_23 = arith.constant 0 : index
    %45 = vector.load %arg12[%c24, %c0_23] : memref<72x512xbf16, #tpu.memory_space<vmem>>, vector<8x512xbf16>
    tpu.vector_store %arg12[%c24, %c0_23], %44 {strides = array<i32>} : memref<72x512xbf16, #tpu.memory_space<vmem>>, vector<8x512xbf16>,
    %c4 = arith.constant 4 : index
    %c0_24 = arith.constant 0 : index
    %46 = vector.load %arg3[%c4, %c0_24] : memref<9x512xf32, #tpu.memory_space<vmem>>, vector<1x512xf32>
    %47 = vector.broadcast %46 : vector<1x512xf32> to vector<8x512xf32>
    %48 = arith.mulf %21, %47 : vector<8x512xf32>
    %49 = arith.truncf %48 : vector<8x512xf32> to vector<8x512xbf16>
    %c32 = arith.constant 32 : index
    %c0_25 = arith.constant 0 : index
    %50 = vector.load %arg12[%c32, %c0_25] : memref<72x512xbf16, #tpu.memory_space<vmem>>, vector<8x512xbf16>
    tpu.vector_store %arg12[%c32, %c0_25], %49 {strides = array<i32>} : memref<72x512xbf16, #tpu.memory_space<vmem>>, vector<8x512xbf16>,
    %c511_i32 = arith.constant 511 : i32
    %51 = tpu.dynamic_rotate %21 by %c511_i32 dim 1 : vector<8x512xf32>, i32 -> vector<8x512xf32>
    %c5 = arith.constant 5 : index
    %c0_26 = arith.constant 0 : index
    %52 = vector.load %arg3[%c5, %c0_26] : memref<9x512xf32, #tpu.memory_space<vmem>>, vector<1x512xf32>
    %53 = vector.broadcast %52 : vector<1x512xf32> to vector<8x512xf32>
    %54 = arith.mulf %51, %53 : vector<8x512xf32>
    %55 = arith.truncf %54 : vector<8x512xf32> to vector<8x512xbf16>
    %c40 = arith.constant 40 : index
    %c0_27 = arith.constant 0 : index
    %56 = vector.load %arg12[%c40, %c0_27] : memref<72x512xbf16, #tpu.memory_space<vmem>>, vector<8x512xbf16>
    tpu.vector_store %arg12[%c40, %c0_27], %55 {strides = array<i32>} : memref<72x512xbf16, #tpu.memory_space<vmem>>, vector<8x512xbf16>,
    %c497_i32 = arith.constant 497 : i32
    %57 = tpu.dynamic_rotate %21 by %c497_i32 dim 1 : vector<8x512xf32>, i32 -> vector<8x512xf32>
    %c6 = arith.constant 6 : index
    %c0_28 = arith.constant 0 : index
    %58 = vector.load %arg3[%c6, %c0_28] : memref<9x512xf32, #tpu.memory_space<vmem>>, vector<1x512xf32>
    %59 = vector.broadcast %58 : vector<1x512xf32> to vector<8x512xf32>
    %60 = arith.mulf %57, %59 : vector<8x512xf32>
    %61 = arith.truncf %60 : vector<8x512xf32> to vector<8x512xbf16>
    %c48 = arith.constant 48 : index
    %c0_29 = arith.constant 0 : index
    %62 = vector.load %arg12[%c48, %c0_29] : memref<72x512xbf16, #tpu.memory_space<vmem>>, vector<8x512xbf16>
    tpu.vector_store %arg12[%c48, %c0_29], %61 {strides = array<i32>} : memref<72x512xbf16, #tpu.memory_space<vmem>>, vector<8x512xbf16>,
    %c496_i32 = arith.constant 496 : i32
    %63 = tpu.dynamic_rotate %21 by %c496_i32 dim 1 : vector<8x512xf32>, i32 -> vector<8x512xf32>
    %c7 = arith.constant 7 : index
    %c0_30 = arith.constant 0 : index
    %64 = vector.load %arg3[%c7, %c0_30] : memref<9x512xf32, #tpu.memory_space<vmem>>, vector<1x512xf32>
    %65 = vector.broadcast %64 : vector<1x512xf32> to vector<8x512xf32>
    %66 = arith.mulf %63, %65 : vector<8x512xf32>
    %67 = arith.truncf %66 : vector<8x512xf32> to vector<8x512xbf16>
    %c56 = arith.constant 56 : index
    %c0_31 = arith.constant 0 : index
    %68 = vector.load %arg12[%c56, %c0_31] : memref<72x512xbf16, #tpu.memory_space<vmem>>, vector<8x512xbf16>
    tpu.vector_store %arg12[%c56, %c0_31], %67 {strides = array<i32>} : memref<72x512xbf16, #tpu.memory_space<vmem>>, vector<8x512xbf16>,
    %c495_i32 = arith.constant 495 : i32
    %69 = tpu.dynamic_rotate %21 by %c495_i32 dim 1 : vector<8x512xf32>, i32 -> vector<8x512xf32>
    %c8_32 = arith.constant 8 : index
    %c0_33 = arith.constant 0 : index
    %70 = vector.load %arg3[%c8_32, %c0_33] : memref<9x512xf32, #tpu.memory_space<vmem>>, vector<1x512xf32>
    %71 = vector.broadcast %70 : vector<1x512xf32> to vector<8x512xf32>
    %72 = arith.mulf %69, %71 : vector<8x512xf32>
    %73 = arith.truncf %72 : vector<8x512xf32> to vector<8x512xbf16>
    %c64 = arith.constant 64 : index
    %c0_34 = arith.constant 0 : index
    %74 = vector.load %arg12[%c64, %c0_34] : memref<72x512xbf16, #tpu.memory_space<vmem>>, vector<8x512xbf16>
    tpu.vector_store %arg12[%c64, %c0_34], %73 {strides = array<i32>} : memref<72x512xbf16, #tpu.memory_space<vmem>>, vector<8x512xbf16>,
    %c0_35 = arith.constant 0 : index
    %c0_36 = arith.constant 0 : index
    %75 = vector.load %arg8[%c0_35, %c0_36] : memref<8x72xbf16, #tpu.memory_space<vmem>>, vector<8x72xbf16>
    %c0_37 = arith.constant 0 : index
    %c0_38 = arith.constant 0 : index
    %76 = vector.load %arg12[%c0_37, %c0_38] : memref<72x512xbf16, #tpu.memory_space<vmem>>, vector<72x512xbf16>
    %cst_39 = arith.constant dense<0.000000e+00> : vector<8x512xf32>
    %77 = tpu.matmul %75, %76, %cst_39 {dimension_numbers = #tpu.dot_dimension_numbers<[1], [0], [0], [1], [0, 0, 1, 1], [], []>} : vector<8x72xbf16>, vector<72x512xbf16>, vector<8x512xf32> -> vector<8x512xf32>
    %c0_40 = arith.constant 0 : index
    %c0_41 = arith.constant 0 : index
    %78 = vector.load %arg9[%c0_40, %c0_41] : memref<8x1xf32, #tpu.memory_space<vmem>>, vector<8x1xf32>
    %79 = vector.broadcast %78 : vector<8x1xf32> to vector<8x512xf32>
    %80 = arith.addf %77, %79 : vector<8x512xf32>
    %cst_42 = arith.constant 0.000000e+00 : f32
    %81 = vector.broadcast %cst_42 : f32 to vector<8x512xf32>
    %82 = arith.maximumf %80, %81 : vector<8x512xf32>
    %c511_i32_43 = arith.constant 511 : i32
    %83 = tpu.dynamic_rotate %82 by %c511_i32_43 dim 1 : vector<8x512xf32>, i32 -> vector<8x512xf32>
    %84 = arith.maximumf %82, %83 : vector<8x512xf32>
    %c496_i32_44 = arith.constant 496 : i32
    %85 = tpu.dynamic_rotate %84 by %c496_i32_44 dim 1 : vector<8x512xf32>, i32 -> vector<8x512xf32>
    %86 = arith.maximumf %84, %85 : vector<8x512xf32>
    %c0_45 = arith.constant 0 : index
    %c0_46 = arith.constant 0 : index
    %87 = vector.load %arg10[%c0_45, %c0_46] : memref<16x8xf32, #tpu.memory_space<vmem>>, vector<16x8xf32>
    %88 = vector.extract_strided_slice %86 {offsets = [0, 0], sizes = [8, 16], strides = [1, 1]} : vector<8x512xf32> to vector<8x16xf32>
    %cst_47 = arith.constant dense<0.000000e+00> : vector<8x8xf32>
    %89 = tpu.matmul %88, %87, %cst_47 {dimension_numbers = #tpu.dot_dimension_numbers<[1], [0], [0], [1], [0, 0, 1, 1], [], []>} : vector<8x16xf32>, vector<16x8xf32>, vector<8x8xf32> -> vector<8x8xf32>
    %c0_48 = arith.constant 0 : index
    %c0_49 = arith.constant 0 : index
    %90 = vector.load %arg11[%c0_48, %c0_49] : memref<8x128xf32, #tpu.memory_space<vmem>>, vector<8x8xf32>
    tpu.vector_store %arg11[%c0_48, %c0_49], %89 {strides = array<i32>} : memref<8x128xf32, #tpu.memory_space<vmem>>, vector<8x8xf32>,
    %91 = vector.extract_strided_slice %86 {offsets = [0, 32], sizes = [8, 16], strides = [1, 1]} : vector<8x512xf32> to vector<8x16xf32>
    %cst_50 = arith.constant dense<0.000000e+00> : vector<8x8xf32>
    %92 = tpu.matmul %91, %87, %cst_50 {dimension_numbers = #tpu.dot_dimension_numbers<[1], [0], [0], [1], [0, 0, 1, 1], [], []>} : vector<8x16xf32>, vector<16x8xf32>, vector<8x8xf32> -> vector<8x8xf32>
    %c0_51 = arith.constant 0 : index
    %c8_52 = arith.constant 8 : index
    %93 = vector.load %arg11[%c0_51, %c8_52] : memref<8x128xf32, #tpu.memory_space<vmem>>, vector<8x8xf32>
    tpu.vector_store %arg11[%c0_51, %c8_52], %92 {strides = array<i32>} : memref<8x128xf32, #tpu.memory_space<vmem>>, vector<8x8xf32>,
    %94 = vector.extract_strided_slice %86 {offsets = [0, 64], sizes = [8, 16], strides = [1, 1]} : vector<8x512xf32> to vector<8x16xf32>
    %cst_53 = arith.constant dense<0.000000e+00> : vector<8x8xf32>
    %95 = tpu.matmul %94, %87, %cst_53 {dimension_numbers = #tpu.dot_dimension_numbers<[1], [0], [0], [1], [0, 0, 1, 1], [], []>} : vector<8x16xf32>, vector<16x8xf32>, vector<8x8xf32> -> vector<8x8xf32>
    %c0_54 = arith.constant 0 : index
    %c16_55 = arith.constant 16 : index
    %96 = vector.load %arg11[%c0_54, %c16_55] : memref<8x128xf32, #tpu.memory_space<vmem>>, vector<8x8xf32>
    tpu.vector_store %arg11[%c0_54, %c16_55], %95 {strides = array<i32>} : memref<8x128xf32, #tpu.memory_space<vmem>>, vector<8x8xf32>,
    %97 = vector.extract_strided_slice %86 {offsets = [0, 96], sizes = [8, 16], strides = [1, 1]} : vector<8x512xf32> to vector<8x16xf32>
    %cst_56 = arith.constant dense<0.000000e+00> : vector<8x8xf32>
    %98 = tpu.matmul %97, %87, %cst_56 {dimension_numbers = #tpu.dot_dimension_numbers<[1], [0], [0], [1], [0, 0, 1, 1], [], []>} : vector<8x16xf32>, vector<16x8xf32>, vector<8x8xf32> -> vector<8x8xf32>
    %c0_57 = arith.constant 0 : index
    %c24_58 = arith.constant 24 : index
    %99 = vector.load %arg11[%c0_57, %c24_58] : memref<8x128xf32, #tpu.memory_space<vmem>>, vector<8x8xf32>
    tpu.vector_store %arg11[%c0_57, %c24_58], %98 {strides = array<i32>} : memref<8x128xf32, #tpu.memory_space<vmem>>, vector<8x8xf32>,
    %100 = vector.extract_strided_slice %86 {offsets = [0, 128], sizes = [8, 16], strides = [1, 1]} : vector<8x512xf32> to vector<8x16xf32>
    %cst_59 = arith.constant dense<0.000000e+00> : vector<8x8xf32>
    %101 = tpu.matmul %100, %87, %cst_59 {dimension_numbers = #tpu.dot_dimension_numbers<[1], [0], [0], [1], [0, 0, 1, 1], [], []>} : vector<8x16xf32>, vector<16x8xf32>, vector<8x8xf32> -> vector<8x8xf32>
    %c0_60 = arith.constant 0 : index
    %c32_61 = arith.constant 32 : index
    %102 = vector.load %arg11[%c0_60, %c32_61] : memref<8x128xf32, #tpu.memory_space<vmem>>, vector<8x8xf32>
    tpu.vector_store %arg11[%c0_60, %c32_61], %101 {strides = array<i32>} : memref<8x128xf32, #tpu.memory_space<vmem>>, vector<8x8xf32>,
    %103 = vector.extract_strided_slice %86 {offsets = [0, 160], sizes = [8, 16], strides = [1, 1]} : vector<8x512xf32> to vector<8x16xf32>
    %cst_62 = arith.constant dense<0.000000e+00> : vector<8x8xf32>
    %104 = tpu.matmul %103, %87, %cst_62 {dimension_numbers = #tpu.dot_dimension_numbers<[1], [0], [0], [1], [0, 0, 1, 1], [], []>} : vector<8x16xf32>, vector<16x8xf32>, vector<8x8xf32> -> vector<8x8xf32>
    %c0_63 = arith.constant 0 : index
    %c40_64 = arith.constant 40 : index
    %105 = vector.load %arg11[%c0_63, %c40_64] : memref<8x128xf32, #tpu.memory_space<vmem>>, vector<8x8xf32>
    tpu.vector_store %arg11[%c0_63, %c40_64], %104 {strides = array<i32>} : memref<8x128xf32, #tpu.memory_space<vmem>>, vector<8x8xf32>,
    %106 = vector.extract_strided_slice %86 {offsets = [0, 192], sizes = [8, 16], strides = [1, 1]} : vector<8x512xf32> to vector<8x16xf32>
    %cst_65 = arith.constant dense<0.000000e+00> : vector<8x8xf32>
    %107 = tpu.matmul %106, %87, %cst_65 {dimension_numbers = #tpu.dot_dimension_numbers<[1], [0], [0], [1], [0, 0, 1, 1], [], []>} : vector<8x16xf32>, vector<16x8xf32>, vector<8x8xf32> -> vector<8x8xf32>
    %c0_66 = arith.constant 0 : index
    %c48_67 = arith.constant 48 : index
    %108 = vector.load %arg11[%c0_66, %c48_67] : memref<8x128xf32, #tpu.memory_space<vmem>>, vector<8x8xf32>
    tpu.vector_store %arg11[%c0_66, %c48_67], %107 {strides = array<i32>} : memref<8x128xf32, #tpu.memory_space<vmem>>, vector<8x8xf32>,
    %109 = vector.extract_strided_slice %86 {offsets = [0, 224], sizes = [8, 16], strides = [1, 1]} : vector<8x512xf32> to vector<8x16xf32>
    %cst_68 = arith.constant dense<0.000000e+00> : vector<8x8xf32>
    %110 = tpu.matmul %109, %87, %cst_68 {dimension_numbers = #tpu.dot_dimension_numbers<[1], [0], [0], [1], [0, 0, 1, 1], [], []>} : vector<8x16xf32>, vector<16x8xf32>, vector<8x8xf32> -> vector<8x8xf32>
    %c0_69 = arith.constant 0 : index
    %c56_70 = arith.constant 56 : index
    %111 = vector.load %arg11[%c0_69, %c56_70] : memref<8x128xf32, #tpu.memory_space<vmem>>, vector<8x8xf32>
    tpu.vector_store %arg11[%c0_69, %c56_70], %110 {strides = array<i32>} : memref<8x128xf32, #tpu.memory_space<vmem>>, vector<8x8xf32>,
    %112 = vector.extract_strided_slice %86 {offsets = [0, 256], sizes = [8, 16], strides = [1, 1]} : vector<8x512xf32> to vector<8x16xf32>
    %cst_71 = arith.constant dense<0.000000e+00> : vector<8x8xf32>
    %113 = tpu.matmul %112, %87, %cst_71 {dimension_numbers = #tpu.dot_dimension_numbers<[1], [0], [0], [1], [0, 0, 1, 1], [], []>} : vector<8x16xf32>, vector<16x8xf32>, vector<8x8xf32> -> vector<8x8xf32>
    %c0_72 = arith.constant 0 : index
    %c64_73 = arith.constant 64 : index
    %114 = vector.load %arg11[%c0_72, %c64_73] : memref<8x128xf32, #tpu.memory_space<vmem>>, vector<8x8xf32>
    tpu.vector_store %arg11[%c0_72, %c64_73], %113 {strides = array<i32>} : memref<8x128xf32, #tpu.memory_space<vmem>>, vector<8x8xf32>,
    %115 = vector.extract_strided_slice %86 {offsets = [0, 288], sizes = [8, 16], strides = [1, 1]} : vector<8x512xf32> to vector<8x16xf32>
    %cst_74 = arith.constant dense<0.000000e+00> : vector<8x8xf32>
    %116 = tpu.matmul %115, %87, %cst_74 {dimension_numbers = #tpu.dot_dimension_numbers<[1], [0], [0], [1], [0, 0, 1, 1], [], []>} : vector<8x16xf32>, vector<16x8xf32>, vector<8x8xf32> -> vector<8x8xf32>
    %c0_75 = arith.constant 0 : index
    %c72 = arith.constant 72 : index
    %117 = vector.load %arg11[%c0_75, %c72] : memref<8x128xf32, #tpu.memory_space<vmem>>, vector<8x8xf32>
    tpu.vector_store %arg11[%c0_75, %c72], %116 {strides = array<i32>} : memref<8x128xf32, #tpu.memory_space<vmem>>, vector<8x8xf32>,
    %118 = vector.extract_strided_slice %86 {offsets = [0, 320], sizes = [8, 16], strides = [1, 1]} : vector<8x512xf32> to vector<8x16xf32>
    %cst_76 = arith.constant dense<0.000000e+00> : vector<8x8xf32>
    %119 = tpu.matmul %118, %87, %cst_76 {dimension_numbers = #tpu.dot_dimension_numbers<[1], [0], [0], [1], [0, 0, 1, 1], [], []>} : vector<8x16xf32>, vector<16x8xf32>, vector<8x8xf32> -> vector<8x8xf32>
    %c0_77 = arith.constant 0 : index
    %c80 = arith.constant 80 : index
    %120 = vector.load %arg11[%c0_77, %c80] : memref<8x128xf32, #tpu.memory_space<vmem>>, vector<8x8xf32>
    tpu.vector_store %arg11[%c0_77, %c80], %119 {strides = array<i32>} : memref<8x128xf32, #tpu.memory_space<vmem>>, vector<8x8xf32>,
    %121 = vector.extract_strided_slice %86 {offsets = [0, 352], sizes = [8, 16], strides = [1, 1]} : vector<8x512xf32> to vector<8x16xf32>
    %cst_78 = arith.constant dense<0.000000e+00> : vector<8x8xf32>
    %122 = tpu.matmul %121, %87, %cst_78 {dimension_numbers = #tpu.dot_dimension_numbers<[1], [0], [0], [1], [0, 0, 1, 1], [], []>} : vector<8x16xf32>, vector<16x8xf32>, vector<8x8xf32> -> vector<8x8xf32>
    %c0_79 = arith.constant 0 : index
    %c88 = arith.constant 88 : index
    %123 = vector.load %arg11[%c0_79, %c88] : memref<8x128xf32, #tpu.memory_space<vmem>>, vector<8x8xf32>
    tpu.vector_store %arg11[%c0_79, %c88], %122 {strides = array<i32>} : memref<8x128xf32, #tpu.memory_space<vmem>>, vector<8x8xf32>,
    %124 = vector.extract_strided_slice %86 {offsets = [0, 384], sizes = [8, 16], strides = [1, 1]} : vector<8x512xf32> to vector<8x16xf32>
    %cst_80 = arith.constant dense<0.000000e+00> : vector<8x8xf32>
    %125 = tpu.matmul %124, %87, %cst_80 {dimension_numbers = #tpu.dot_dimension_numbers<[1], [0], [0], [1], [0, 0, 1, 1], [], []>} : vector<8x16xf32>, vector<16x8xf32>, vector<8x8xf32> -> vector<8x8xf32>
    %c0_81 = arith.constant 0 : index
    %c96 = arith.constant 96 : index
    %126 = vector.load %arg11[%c0_81, %c96] : memref<8x128xf32, #tpu.memory_space<vmem>>, vector<8x8xf32>
    tpu.vector_store %arg11[%c0_81, %c96], %125 {strides = array<i32>} : memref<8x128xf32, #tpu.memory_space<vmem>>, vector<8x8xf32>,
    %127 = vector.extract_strided_slice %86 {offsets = [0, 416], sizes = [8, 16], strides = [1, 1]} : vector<8x512xf32> to vector<8x16xf32>
    %cst_82 = arith.constant dense<0.000000e+00> : vector<8x8xf32>
    %128 = tpu.matmul %127, %87, %cst_82 {dimension_numbers = #tpu.dot_dimension_numbers<[1], [0], [0], [1], [0, 0, 1, 1], [], []>} : vector<8x16xf32>, vector<16x8xf32>, vector<8x8xf32> -> vector<8x8xf32>
    %c0_83 = arith.constant 0 : index
    %c104 = arith.constant 104 : index
    %129 = vector.load %arg11[%c0_83, %c104] : memref<8x128xf32, #tpu.memory_space<vmem>>, vector<8x8xf32>
    tpu.vector_store %arg11[%c0_83, %c104], %128 {strides = array<i32>} : memref<8x128xf32, #tpu.memory_space<vmem>>, vector<8x8xf32>,
    %130 = vector.extract_strided_slice %86 {offsets = [0, 448], sizes = [8, 16], strides = [1, 1]} : vector<8x512xf32> to vector<8x16xf32>
    %cst_84 = arith.constant dense<0.000000e+00> : vector<8x8xf32>
    %131 = tpu.matmul %130, %87, %cst_84 {dimension_numbers = #tpu.dot_dimension_numbers<[1], [0], [0], [1], [0, 0, 1, 1], [], []>} : vector<8x16xf32>, vector<16x8xf32>, vector<8x8xf32> -> vector<8x8xf32>
    %c0_85 = arith.constant 0 : index
    %c112 = arith.constant 112 : index
    %132 = vector.load %arg11[%c0_85, %c112] : memref<8x128xf32, #tpu.memory_space<vmem>>, vector<8x8xf32>
    tpu.vector_store %arg11[%c0_85, %c112], %131 {strides = array<i32>} : memref<8x128xf32, #tpu.memory_space<vmem>>, vector<8x8xf32>,
    %133 = vector.extract_strided_slice %86 {offsets = [0, 480], sizes = [8, 16], strides = [1, 1]} : vector<8x512xf32> to vector<8x16xf32>
    %cst_86 = arith.constant dense<0.000000e+00> : vector<8x8xf32>
    %134 = tpu.matmul %133, %87, %cst_86 {dimension_numbers = #tpu.dot_dimension_numbers<[1], [0], [0], [1], [0, 0, 1, 1], [], []>} : vector<8x16xf32>, vector<16x8xf32>, vector<8x8xf32> -> vector<8x8xf32>
    %c0_87 = arith.constant 0 : index
    %c120 = arith.constant 120 : index
    %135 = vector.load %arg11[%c0_87, %c120] : memref<8x128xf32, #tpu.memory_space<vmem>>, vector<8x8xf32>
    tpu.vector_store %arg11[%c0_87, %c120], %134 {strides = array<i32>} : memref<8x128xf32, #tpu.memory_space<vmem>>, vector<8x8xf32>,
    return
  }
  func.func @transform_0(%arg0: i32) -> (i32, i32) {
    %c0_i32 = arith.constant 0 : i32
    %c0_i32_0 = arith.constant 0 : i32
    return %c0_i32, %arg0 : i32, i32
  }
  func.func @transform_1(%arg0: i32) -> (i32, i32) {
    %c0_i32 = arith.constant 0 : i32
    %c0_i32_0 = arith.constant 0 : i32
    return %c0_i32, %arg0 : i32, i32
  }
  func.func @transform_2(%arg0: i32) -> (i32, i32) {
    %c0_i32 = arith.constant 0 : i32
    %c0_i32_0 = arith.constant 0 : i32
    %c0_i32_1 = arith.constant 0 : i32
    return %c0_i32, %c0_i32_0 : i32, i32
  }
  func.func @transform_3(%arg0: i32) -> (i32, i32) {
    %c0_i32 = arith.constant 0 : i32
    %c0_i32_0 = arith.constant 0 : i32
    %c0_i32_1 = arith.constant 0 : i32
    return %c0_i32, %c0_i32_0 : i32, i32
  }
  func.func @transform_4(%arg0: i32) -> (i32, i32) {
    %c0_i32 = arith.constant 0 : i32
    %c0_i32_0 = arith.constant 0 : i32
    %c0_i32_1 = arith.constant 0 : i32
    return %c0_i32, %c0_i32_0 : i32, i32
  }
  func.func @transform_5(%arg0: i32) -> (i32, i32) {
    %c0_i32 = arith.constant 0 : i32
    %c0_i32_0 = arith.constant 0 : i32
    %c0_i32_1 = arith.constant 0 : i32
    return %c0_i32, %c0_i32_0 : i32, i32
  }
  func.func @transform_6(%arg0: i32) -> (i32, i32) {
    %c0_i32 = arith.constant 0 : i32
    %c0_i32_0 = arith.constant 0 : i32
    %c0_i32_1 = arith.constant 0 : i32
    return %c0_i32, %c0_i32_0 : i32, i32
  }
  func.func @transform_7(%arg0: i32) -> (i32, i32) {
    %c0_i32 = arith.constant 0 : i32
    %c0_i32_0 = arith.constant 0 : i32
    %c0_i32_1 = arith.constant 0 : i32
    return %c0_i32, %c0_i32_0 : i32, i32
  }
  func.func @transform_8(%arg0: i32) -> (i32, i32) {
    %c0_i32 = arith.constant 0 : i32
    %c0_i32_0 = arith.constant 0 : i32
    %c0_i32_1 = arith.constant 0 : i32
    return %c0_i32, %c0_i32_0 : i32, i32
  }
  func.func @transform_9(%arg0: i32) -> (i32, i32) {
    %c0_i32 = arith.constant 0 : i32
    %c0_i32_0 = arith.constant 0 : i32
    %c0_i32_1 = arith.constant 0 : i32
    return %c0_i32, %c0_i32_0 : i32, i32
  }
  func.func @transform_10(%arg0: i32) -> (i32, i32) {
    %c0_i32 = arith.constant 0 : i32
    %c0_i32_0 = arith.constant 0 : i32
    return %c0_i32, %arg0 : i32, i32
  }
}

module attributes {stable_mosaic.version = 11 : i64} {
  func.func @_attn_enc_kernel(%arg0: i32, %arg1: memref<8x512xf32, #tpu.memory_space<vmem>>, %arg2: memref<8x512xf32, #tpu.memory_space<vmem>>, %arg3: memref<9x512xf32, #tpu.memory_space<vmem>>, %arg4: memref<16x8xbf16, #tpu.memory_space<vmem>>, %arg5: memref<16x1xf32, #tpu.memory_space<vmem>>, %arg6: memref<8x16xbf16, #tpu.memory_space<vmem>>, %arg7: memref<8x1xf32, #tpu.memory_space<vmem>>, %arg8: memref<8x72xbf16, #tpu.memory_space<vmem>>, %arg9: memref<8x1xf32, #tpu.memory_space<vmem>>, %arg10: memref<16x8xf32, #tpu.memory_space<vmem>>, %arg11: memref<8x128xf32, #tpu.memory_space<vmem>>, %arg12: memref<72x512xbf16, #tpu.memory_space<vmem>>) attributes {dimension_semantics = [#tpu.dimension_semantics<parallel>], iteration_bounds = array<i64: 1>, scalar_prefetch = 0 : i64, scratch_operands = 1 : i64, tpu.core_type = #tpu.core_type<tc>, window_params = [{transform_indices = @transform_0, window_bounds = array<i64: 8, 512>}, {transform_indices = @transform_1, window_bounds = array<i64: 8, 512>}, {pipeline_mode = #tpu.pipeline_mode<synchronous>, transform_indices = @transform_2, window_bounds = array<i64: 9, 512>}, {pipeline_mode = #tpu.pipeline_mode<synchronous>, transform_indices = @transform_3, window_bounds = array<i64: 16, 8>}, {pipeline_mode = #tpu.pipeline_mode<synchronous>, transform_indices = @transform_4, window_bounds = array<i64: 16, 1>}, {pipeline_mode = #tpu.pipeline_mode<synchronous>, transform_indices = @transform_5, window_bounds = array<i64: 8, 16>}, {pipeline_mode = #tpu.pipeline_mode<synchronous>, transform_indices = @transform_6, window_bounds = array<i64: 8, 1>}, {pipeline_mode = #tpu.pipeline_mode<synchronous>, transform_indices = @transform_7, window_bounds = array<i64: 8, 72>}, {pipeline_mode = #tpu.pipeline_mode<synchronous>, transform_indices = @transform_8, window_bounds = array<i64: 8, 1>}, {pipeline_mode = #tpu.pipeline_mode<synchronous>, transform_indices = @transform_9, window_bounds = array<i64: 16, 8>}, {transform_indices = @transform_10, window_bounds = array<i64: 8, 128>}]} {
    %c0 = arith.constant 0 : index
    %c0_0 = arith.constant 0 : index
    %0 = vector.load %arg1[%c0, %c0_0] : memref<8x512xf32, #tpu.memory_space<vmem>>, vector<8x512xf32>
    %1 = arith.truncf %0 : vector<8x512xf32> to vector<8x512xbf16>
    %c0_1 = arith.constant 0 : index
    %c0_2 = arith.constant 0 : index
    %2 = vector.load %arg4[%c0_1, %c0_2] : memref<16x8xbf16, #tpu.memory_space<vmem>>, vector<16x8xbf16>
    %cst = arith.constant dense<0.000000e+00> : vector<16x512xf32>
    %3 = tpu.matmul %2, %1, %cst {dimension_numbers = #tpu.dot_dimension_numbers<[1], [0], [0], [1], [0, 0, 1, 1], [], []>} : vector<16x8xbf16>, vector<8x512xbf16>, vector<16x512xf32> -> vector<16x512xf32>
    %c0_3 = arith.constant 0 : index
    %c0_4 = arith.constant 0 : index
    %4 = vector.load %arg5[%c0_3, %c0_4] : memref<16x1xf32, #tpu.memory_space<vmem>>, vector<16x1xf32>
    %5 = vector.broadcast %4 : vector<16x1xf32> to vector<16x512xf32>
    %6 = arith.addf %3, %5 : vector<16x512xf32>
    %cst_5 = arith.constant 0.000000e+00 : f32
    %7 = vector.broadcast %cst_5 : f32 to vector<16x512xf32>
    %8 = arith.maximumf %6, %7 : vector<16x512xf32>
    %c0_6 = arith.constant 0 : index
    %c0_7 = arith.constant 0 : index
    %9 = vector.load %arg6[%c0_6, %c0_7] : memref<8x16xbf16, #tpu.memory_space<vmem>>, vector<8x16xbf16>
    %10 = arith.truncf %8 : vector<16x512xf32> to vector<16x512xbf16>
    %cst_8 = arith.constant dense<0.000000e+00> : vector<8x512xf32>
    %11 = tpu.matmul %9, %10, %cst_8 {dimension_numbers = #tpu.dot_dimension_numbers<[1], [0], [0], [1], [0, 0, 1, 1], [], []>} : vector<8x16xbf16>, vector<16x512xbf16>, vector<8x512xf32> -> vector<8x512xf32>
    %c0_9 = arith.constant 0 : index
    %c0_10 = arith.constant 0 : index
    %12 = vector.load %arg7[%c0_9, %c0_10] : memref<8x1xf32, #tpu.memory_space<vmem>>, vector<8x1xf32>
    %13 = vector.broadcast %12 : vector<8x1xf32> to vector<8x512xf32>
    %14 = arith.addf %11, %13 : vector<8x512xf32>
    %15 = arith.negf %14 : vector<8x512xf32>
    %16 = math.exp %15 : vector<8x512xf32>
    %cst_11 = arith.constant 1.000000e+00 : f32
    %17 = vector.broadcast %cst_11 : f32 to vector<8x512xf32>
    %18 = arith.addf %17, %16 : vector<8x512xf32>
    %19 = arith.divf %17, %18 : vector<8x512xf32>
    %c0_12 = arith.constant 0 : index
    %c0_13 = arith.constant 0 : index
    %20 = vector.load %arg2[%c0_12, %c0_13] : memref<8x512xf32, #tpu.memory_space<vmem>>, vector<8x512xf32>
    %21 = arith.mulf %20, %19 : vector<8x512xf32>
    %c17_i32 = arith.constant 17 : i32
    %22 = tpu.dynamic_rotate %21 by %c17_i32 dim 1 : vector<8x512xf32>, i32 -> vector<8x512xf32>
    %c0_14 = arith.constant 0 : index
    %c0_15 = arith.constant 0 : index
    %23 = vector.load %arg3[%c0_14, %c0_15] : memref<9x512xf32, #tpu.memory_space<vmem>>, vector<1x512xf32>
    %24 = vector.broadcast %23 : vector<1x512xf32> to vector<8x512xf32>
    %25 = arith.mulf %22, %24 : vector<8x512xf32>
    %26 = arith.truncf %25 : vector<8x512xf32> to vector<8x512xbf16>
    %c0_16 = arith.constant 0 : index
    %c0_17 = arith.constant 0 : index
    %27 = vector.load %arg12[%c0_16, %c0_17] : memref<72x512xbf16, #tpu.memory_space<vmem>>, vector<8x512xbf16>
    tpu.vector_store %arg12[%c0_16, %c0_17], %26 {strides = array<i32>} : memref<72x512xbf16, #tpu.memory_space<vmem>>, vector<8x512xbf16>,
    %c16_i32 = arith.constant 16 : i32
    %28 = tpu.dynamic_rotate %21 by %c16_i32 dim 1 : vector<8x512xf32>, i32 -> vector<8x512xf32>
    %c1 = arith.constant 1 : index
    %c0_18 = arith.constant 0 : index
    %29 = vector.load %arg3[%c1, %c0_18] : memref<9x512xf32, #tpu.memory_space<vmem>>, vector<1x512xf32>
    %30 = vector.broadcast %29 : vector<1x512xf32> to vector<8x512xf32>
    %31 = arith.mulf %28, %30 : vector<8x512xf32>
    %32 = arith.truncf %31 : vector<8x512xf32> to vector<8x512xbf16>
    %c8 = arith.constant 8 : index
    %c0_19 = arith.constant 0 : index
    %33 = vector.load %arg12[%c8, %c0_19] : memref<72x512xbf16, #tpu.memory_space<vmem>>, vector<8x512xbf16>
    tpu.vector_store %arg12[%c8, %c0_19], %32 {strides = array<i32>} : memref<72x512xbf16, #tpu.memory_space<vmem>>, vector<8x512xbf16>,
    %c15_i32 = arith.constant 15 : i32
    %34 = tpu.dynamic_rotate %21 by %c15_i32 dim 1 : vector<8x512xf32>, i32 -> vector<8x512xf32>
    %c2 = arith.constant 2 : index
    %c0_20 = arith.constant 0 : index
    %35 = vector.load %arg3[%c2, %c0_20] : memref<9x512xf32, #tpu.memory_space<vmem>>, vector<1x512xf32>
    %36 = vector.broadcast %35 : vector<1x512xf32> to vector<8x512xf32>
    %37 = arith.mulf %34, %36 : vector<8x512xf32>
    %38 = arith.truncf %37 : vector<8x512xf32> to vector<8x512xbf16>
    %c16 = arith.constant 16 : index
    %c0_21 = arith.constant 0 : index
    %39 = vector.load %arg12[%c16, %c0_21] : memref<72x512xbf16, #tpu.memory_space<vmem>>, vector<8x512xbf16>
    tpu.vector_store %arg12[%c16, %c0_21], %38 {strides = array<i32>} : memref<72x512xbf16, #tpu.memory_space<vmem>>, vector<8x512xbf16>,
    %c1_i32 = arith.constant 1 : i32
    %40 = tpu.dynamic_rotate %21 by %c1_i32 dim 1 : vector<8x512xf32>, i32 -> vector<8x512xf32>
    %c3 = arith.constant 3 : index
    %c0_22 = arith.constant 0 : index
    %41 = vector.load %arg3[%c3, %c0_22] : memref<9x512xf32, #tpu.memory_space<vmem>>, vector<1x512xf32>
    %42 = vector.broadcast %41 : vector<1x512xf32> to vector<8x512xf32>
    %43 = arith.mulf %40, %42 : vector<8x512xf32>
    %44 = arith.truncf %43 : vector<8x512xf32> to vector<8x512xbf16>
    %c24 = arith.constant 24 : index
    %c0_23 = arith.constant 0 : index
    %45 = vector.load %arg12[%c24, %c0_23] : memref<72x512xbf16, #tpu.memory_space<vmem>>, vector<8x512xbf16>
    tpu.vector_store %arg12[%c24, %c0_23], %44 {strides = array<i32>} : memref<72x512xbf16, #tpu.memory_space<vmem>>, vector<8x512xbf16>,
    %c4 = arith.constant 4 : index
    %c0_24 = arith.constant 0 : index
    %46 = vector.load %arg3[%c4, %c0_24] : memref<9x512xf32, #tpu.memory_space<vmem>>, vector<1x512xf32>
    %47 = vector.broadcast %46 : vector<1x512xf32> to vector<8x512xf32>
    %48 = arith.mulf %21, %47 : vector<8x512xf32>
    %49 = arith.truncf %48 : vector<8x512xf32> to vector<8x512xbf16>
    %c32 = arith.constant 32 : index
    %c0_25 = arith.constant 0 : index
    %50 = vector.load %arg12[%c32, %c0_25] : memref<72x512xbf16, #tpu.memory_space<vmem>>, vector<8x512xbf16>
    tpu.vector_store %arg12[%c32, %c0_25], %49 {strides = array<i32>} : memref<72x512xbf16, #tpu.memory_space<vmem>>, vector<8x512xbf16>,
    %c511_i32 = arith.constant 511 : i32
    %51 = tpu.dynamic_rotate %21 by %c511_i32 dim 1 : vector<8x512xf32>, i32 -> vector<8x512xf32>
    %c5 = arith.constant 5 : index
    %c0_26 = arith.constant 0 : index
    %52 = vector.load %arg3[%c5, %c0_26] : memref<9x512xf32, #tpu.memory_space<vmem>>, vector<1x512xf32>
    %53 = vector.broadcast %52 : vector<1x512xf32> to vector<8x512xf32>
    %54 = arith.mulf %51, %53 : vector<8x512xf32>
    %55 = arith.truncf %54 : vector<8x512xf32> to vector<8x512xbf16>
    %c40 = arith.constant 40 : index
    %c0_27 = arith.constant 0 : index
    %56 = vector.load %arg12[%c40, %c0_27] : memref<72x512xbf16, #tpu.memory_space<vmem>>, vector<8x512xbf16>
    tpu.vector_store %arg12[%c40, %c0_27], %55 {strides = array<i32>} : memref<72x512xbf16, #tpu.memory_space<vmem>>, vector<8x512xbf16>,
    %c497_i32 = arith.constant 497 : i32
    %57 = tpu.dynamic_rotate %21 by %c497_i32 dim 1 : vector<8x512xf32>, i32 -> vector<8x512xf32>
    %c6 = arith.constant 6 : index
    %c0_28 = arith.constant 0 : index
    %58 = vector.load %arg3[%c6, %c0_28] : memref<9x512xf32, #tpu.memory_space<vmem>>, vector<1x512xf32>
    %59 = vector.broadcast %58 : vector<1x512xf32> to vector<8x512xf32>
    %60 = arith.mulf %57, %59 : vector<8x512xf32>
    %61 = arith.truncf %60 : vector<8x512xf32> to vector<8x512xbf16>
    %c48 = arith.constant 48 : index
    %c0_29 = arith.constant 0 : index
    %62 = vector.load %arg12[%c48, %c0_29] : memref<72x512xbf16, #tpu.memory_space<vmem>>, vector<8x512xbf16>
    tpu.vector_store %arg12[%c48, %c0_29], %61 {strides = array<i32>} : memref<72x512xbf16, #tpu.memory_space<vmem>>, vector<8x512xbf16>,
    %c496_i32 = arith.constant 496 : i32
    %63 = tpu.dynamic_rotate %21 by %c496_i32 dim 1 : vector<8x512xf32>, i32 -> vector<8x512xf32>
    %c7 = arith.constant 7 : index
    %c0_30 = arith.constant 0 : index
    %64 = vector.load %arg3[%c7, %c0_30] : memref<9x512xf32, #tpu.memory_space<vmem>>, vector<1x512xf32>
    %65 = vector.broadcast %64 : vector<1x512xf32> to vector<8x512xf32>
    %66 = arith.mulf %63, %65 : vector<8x512xf32>
    %67 = arith.truncf %66 : vector<8x512xf32> to vector<8x512xbf16>
    %c56 = arith.constant 56 : index
    %c0_31 = arith.constant 0 : index
    %68 = vector.load %arg12[%c56, %c0_31] : memref<72x512xbf16, #tpu.memory_space<vmem>>, vector<8x512xbf16>
    tpu.vector_store %arg12[%c56, %c0_31], %67 {strides = array<i32>} : memref<72x512xbf16, #tpu.memory_space<vmem>>, vector<8x512xbf16>,
    %c495_i32 = arith.constant 495 : i32
    %69 = tpu.dynamic_rotate %21 by %c495_i32 dim 1 : vector<8x512xf32>, i32 -> vector<8x512xf32>
    %c8_32 = arith.constant 8 : index
    %c0_33 = arith.constant 0 : index
    %70 = vector.load %arg3[%c8_32, %c0_33] : memref<9x512xf32, #tpu.memory_space<vmem>>, vector<1x512xf32>
    %71 = vector.broadcast %70 : vector<1x512xf32> to vector<8x512xf32>
    %72 = arith.mulf %69, %71 : vector<8x512xf32>
    %73 = arith.truncf %72 : vector<8x512xf32> to vector<8x512xbf16>
    %c64 = arith.constant 64 : index
    %c0_34 = arith.constant 0 : index
    %74 = vector.load %arg12[%c64, %c0_34] : memref<72x512xbf16, #tpu.memory_space<vmem>>, vector<8x512xbf16>
    tpu.vector_store %arg12[%c64, %c0_34], %73 {strides = array<i32>} : memref<72x512xbf16, #tpu.memory_space<vmem>>, vector<8x512xbf16>,
    %c0_35 = arith.constant 0 : index
    %c0_36 = arith.constant 0 : index
    %75 = vector.load %arg8[%c0_35, %c0_36] : memref<8x72xbf16, #tpu.memory_space<vmem>>, vector<8x72xbf16>
    %c0_37 = arith.constant 0 : index
    %c0_38 = arith.constant 0 : index
    %76 = vector.load %arg12[%c0_37, %c0_38] : memref<72x512xbf16, #tpu.memory_space<vmem>>, vector<72x512xbf16>
    %cst_39 = arith.constant dense<0.000000e+00> : vector<8x512xf32>
    %77 = tpu.matmul %75, %76, %cst_39 {dimension_numbers = #tpu.dot_dimension_numbers<[1], [0], [0], [1], [0, 0, 1, 1], [], []>} : vector<8x72xbf16>, vector<72x512xbf16>, vector<8x512xf32> -> vector<8x512xf32>
    %c0_40 = arith.constant 0 : index
    %c0_41 = arith.constant 0 : index
    %78 = vector.load %arg9[%c0_40, %c0_41] : memref<8x1xf32, #tpu.memory_space<vmem>>, vector<8x1xf32>
    %79 = vector.broadcast %78 : vector<8x1xf32> to vector<8x512xf32>
    %80 = arith.addf %77, %79 : vector<8x512xf32>
    %cst_42 = arith.constant 0.000000e+00 : f32
    %81 = vector.broadcast %cst_42 : f32 to vector<8x512xf32>
    %82 = arith.maximumf %80, %81 : vector<8x512xf32>
    %c511_i32_43 = arith.constant 511 : i32
    %83 = tpu.dynamic_rotate %82 by %c511_i32_43 dim 1 : vector<8x512xf32>, i32 -> vector<8x512xf32>
    %84 = arith.maximumf %82, %83 : vector<8x512xf32>
    %c496_i32_44 = arith.constant 496 : i32
    %85 = tpu.dynamic_rotate %84 by %c496_i32_44 dim 1 : vector<8x512xf32>, i32 -> vector<8x512xf32>
    %86 = arith.maximumf %84, %85 : vector<8x512xf32>
    %c0_45 = arith.constant 0 : index
    %c0_46 = arith.constant 0 : index
    %87 = vector.load %arg10[%c0_45, %c0_46] : memref<16x8xf32, #tpu.memory_space<vmem>>, vector<16x8xf32>
    %88 = vector.extract_strided_slice %86 {offsets = [0, 0], sizes = [8, 16], strides = [1, 1]} : vector<8x512xf32> to vector<8x16xf32>
    %cst_47 = arith.constant dense<0.000000e+00> : vector<8x8xf32>
    %89 = tpu.matmul %88, %87, %cst_47 {dimension_numbers = #tpu.dot_dimension_numbers<[1], [0], [0], [1], [0, 0, 1, 1], [], []>} : vector<8x16xf32>, vector<16x8xf32>, vector<8x8xf32> -> vector<8x8xf32>
    %c0_48 = arith.constant 0 : index
    %c0_49 = arith.constant 0 : index
    %90 = vector.load %arg11[%c0_48, %c0_49] : memref<8x128xf32, #tpu.memory_space<vmem>>, vector<8x8xf32>
    tpu.vector_store %arg11[%c0_48, %c0_49], %89 {strides = array<i32>} : memref<8x128xf32, #tpu.memory_space<vmem>>, vector<8x8xf32>,
    %91 = vector.extract_strided_slice %86 {offsets = [0, 32], sizes = [8, 16], strides = [1, 1]} : vector<8x512xf32> to vector<8x16xf32>
    %cst_50 = arith.constant dense<0.000000e+00> : vector<8x8xf32>
    %92 = tpu.matmul %91, %87, %cst_50 {dimension_numbers = #tpu.dot_dimension_numbers<[1], [0], [0], [1], [0, 0, 1, 1], [], []>} : vector<8x16xf32>, vector<16x8xf32>, vector<8x8xf32> -> vector<8x8xf32>
    %c0_51 = arith.constant 0 : index
    %c8_52 = arith.constant 8 : index
    %93 = vector.load %arg11[%c0_51, %c8_52] : memref<8x128xf32, #tpu.memory_space<vmem>>, vector<8x8xf32>
    tpu.vector_store %arg11[%c0_51, %c8_52], %92 {strides = array<i32>} : memref<8x128xf32, #tpu.memory_space<vmem>>, vector<8x8xf32>,
    %94 = vector.extract_strided_slice %86 {offsets = [0, 64], sizes = [8, 16], strides = [1, 1]} : vector<8x512xf32> to vector<8x16xf32>
    %cst_53 = arith.constant dense<0.000000e+00> : vector<8x8xf32>
    %95 = tpu.matmul %94, %87, %cst_53 {dimension_numbers = #tpu.dot_dimension_numbers<[1], [0], [0], [1], [0, 0, 1, 1], [], []>} : vector<8x16xf32>, vector<16x8xf32>, vector<8x8xf32> -> vector<8x8xf32>
    %c0_54 = arith.constant 0 : index
    %c16_55 = arith.constant 16 : index
    %96 = vector.load %arg11[%c0_54, %c16_55] : memref<8x128xf32, #tpu.memory_space<vmem>>, vector<8x8xf32>
    tpu.vector_store %arg11[%c0_54, %c16_55], %95 {strides = array<i32>} : memref<8x128xf32, #tpu.memory_space<vmem>>, vector<8x8xf32>,
    %97 = vector.extract_strided_slice %86 {offsets = [0, 96], sizes = [8, 16], strides = [1, 1]} : vector<8x512xf32> to vector<8x16xf32>
    %cst_56 = arith.constant dense<0.000000e+00> : vector<8x8xf32>
    %98 = tpu.matmul %97, %87, %cst_56 {dimension_numbers = #tpu.dot_dimension_numbers<[1], [0], [0], [1], [0, 0, 1, 1], [], []>} : vector<8x16xf32>, vector<16x8xf32>, vector<8x8xf32> -> vector<8x8xf32>
    %c0_57 = arith.constant 0 : index
    %c24_58 = arith.constant 24 : index
    %99 = vector.load %arg11[%c0_57, %c24_58] : memref<8x128xf32, #tpu.memory_space<vmem>>, vector<8x8xf32>
    tpu.vector_store %arg11[%c0_57, %c24_58], %98 {strides = array<i32>} : memref<8x128xf32, #tpu.memory_space<vmem>>, vector<8x8xf32>,
    %100 = vector.extract_strided_slice %86 {offsets = [0, 128], sizes = [8, 16], strides = [1, 1]} : vector<8x512xf32> to vector<8x16xf32>
    %cst_59 = arith.constant dense<0.000000e+00> : vector<8x8xf32>
    %101 = tpu.matmul %100, %87, %cst_59 {dimension_numbers = #tpu.dot_dimension_numbers<[1], [0], [0], [1], [0, 0, 1, 1], [], []>} : vector<8x16xf32>, vector<16x8xf32>, vector<8x8xf32> -> vector<8x8xf32>
    %c0_60 = arith.constant 0 : index
    %c32_61 = arith.constant 32 : index
    %102 = vector.load %arg11[%c0_60, %c32_61] : memref<8x128xf32, #tpu.memory_space<vmem>>, vector<8x8xf32>
    tpu.vector_store %arg11[%c0_60, %c32_61], %101 {strides = array<i32>} : memref<8x128xf32, #tpu.memory_space<vmem>>, vector<8x8xf32>,
    %103 = vector.extract_strided_slice %86 {offsets = [0, 160], sizes = [8, 16], strides = [1, 1]} : vector<8x512xf32> to vector<8x16xf32>
    %cst_62 = arith.constant dense<0.000000e+00> : vector<8x8xf32>
    %104 = tpu.matmul %103, %87, %cst_62 {dimension_numbers = #tpu.dot_dimension_numbers<[1], [0], [0], [1], [0, 0, 1, 1], [], []>} : vector<8x16xf32>, vector<16x8xf32>, vector<8x8xf32> -> vector<8x8xf32>
    %c0_63 = arith.constant 0 : index
    %c40_64 = arith.constant 40 : index
    %105 = vector.load %arg11[%c0_63, %c40_64] : memref<8x128xf32, #tpu.memory_space<vmem>>, vector<8x8xf32>
    tpu.vector_store %arg11[%c0_63, %c40_64], %104 {strides = array<i32>} : memref<8x128xf32, #tpu.memory_space<vmem>>, vector<8x8xf32>,
    %106 = vector.extract_strided_slice %86 {offsets = [0, 192], sizes = [8, 16], strides = [1, 1]} : vector<8x512xf32> to vector<8x16xf32>
    %cst_65 = arith.constant dense<0.000000e+00> : vector<8x8xf32>
    %107 = tpu.matmul %106, %87, %cst_65 {dimension_numbers = #tpu.dot_dimension_numbers<[1], [0], [0], [1], [0, 0, 1, 1], [], []>} : vector<8x16xf32>, vector<16x8xf32>, vector<8x8xf32> -> vector<8x8xf32>
    %c0_66 = arith.constant 0 : index
    %c48_67 = arith.constant 48 : index
    %108 = vector.load %arg11[%c0_66, %c48_67] : memref<8x128xf32, #tpu.memory_space<vmem>>, vector<8x8xf32>
    tpu.vector_store %arg11[%c0_66, %c48_67], %107 {strides = array<i32>} : memref<8x128xf32, #tpu.memory_space<vmem>>, vector<8x8xf32>,
    %109 = vector.extract_strided_slice %86 {offsets = [0, 224], sizes = [8, 16], strides = [1, 1]} : vector<8x512xf32> to vector<8x16xf32>
    %cst_68 = arith.constant dense<0.000000e+00> : vector<8x8xf32>
    %110 = tpu.matmul %109, %87, %cst_68 {dimension_numbers = #tpu.dot_dimension_numbers<[1], [0], [0], [1], [0, 0, 1, 1], [], []>} : vector<8x16xf32>, vector<16x8xf32>, vector<8x8xf32> -> vector<8x8xf32>
    %c0_69 = arith.constant 0 : index
    %c56_70 = arith.constant 56 : index
    %111 = vector.load %arg11[%c0_69, %c56_70] : memref<8x128xf32, #tpu.memory_space<vmem>>, vector<8x8xf32>
    tpu.vector_store %arg11[%c0_69, %c56_70], %110 {strides = array<i32>} : memref<8x128xf32, #tpu.memory_space<vmem>>, vector<8x8xf32>,
    %112 = vector.extract_strided_slice %86 {offsets = [0, 256], sizes = [8, 16], strides = [1, 1]} : vector<8x512xf32> to vector<8x16xf32>
    %cst_71 = arith.constant dense<0.000000e+00> : vector<8x8xf32>
    %113 = tpu.matmul %112, %87, %cst_71 {dimension_numbers = #tpu.dot_dimension_numbers<[1], [0], [0], [1], [0, 0, 1, 1], [], []>} : vector<8x16xf32>, vector<16x8xf32>, vector<8x8xf32> -> vector<8x8xf32>
    %c0_72 = arith.constant 0 : index
    %c64_73 = arith.constant 64 : index
    %114 = vector.load %arg11[%c0_72, %c64_73] : memref<8x128xf32, #tpu.memory_space<vmem>>, vector<8x8xf32>
    tpu.vector_store %arg11[%c0_72, %c64_73], %113 {strides = array<i32>} : memref<8x128xf32, #tpu.memory_space<vmem>>, vector<8x8xf32>,
    %115 = vector.extract_strided_slice %86 {offsets = [0, 288], sizes = [8, 16], strides = [1, 1]} : vector<8x512xf32> to vector<8x16xf32>
    %cst_74 = arith.constant dense<0.000000e+00> : vector<8x8xf32>
    %116 = tpu.matmul %115, %87, %cst_74 {dimension_numbers = #tpu.dot_dimension_numbers<[1], [0], [0], [1], [0, 0, 1, 1], [], []>} : vector<8x16xf32>, vector<16x8xf32>, vector<8x8xf32> -> vector<8x8xf32>
    %c0_75 = arith.constant 0 : index
    %c72 = arith.constant 72 : index
    %117 = vector.load %arg11[%c0_75, %c72] : memref<8x128xf32, #tpu.memory_space<vmem>>, vector<8x8xf32>
    tpu.vector_store %arg11[%c0_75, %c72], %116 {strides = array<i32>} : memref<8x128xf32, #tpu.memory_space<vmem>>, vector<8x8xf32>,
    %118 = vector.extract_strided_slice %86 {offsets = [0, 320], sizes = [8, 16], strides = [1, 1]} : vector<8x512xf32> to vector<8x16xf32>
    %cst_76 = arith.constant dense<0.000000e+00> : vector<8x8xf32>
    %119 = tpu.matmul %118, %87, %cst_76 {dimension_numbers = #tpu.dot_dimension_numbers<[1], [0], [0], [1], [0, 0, 1, 1], [], []>} : vector<8x16xf32>, vector<16x8xf32>, vector<8x8xf32> -> vector<8x8xf32>
    %c0_77 = arith.constant 0 : index
    %c80 = arith.constant 80 : index
    %120 = vector.load %arg11[%c0_77, %c80] : memref<8x128xf32, #tpu.memory_space<vmem>>, vector<8x8xf32>
    tpu.vector_store %arg11[%c0_77, %c80], %119 {strides = array<i32>} : memref<8x128xf32, #tpu.memory_space<vmem>>, vector<8x8xf32>,
    %121 = vector.extract_strided_slice %86 {offsets = [0, 352], sizes = [8, 16], strides = [1, 1]} : vector<8x512xf32> to vector<8x16xf32>
    %cst_78 = arith.constant dense<0.000000e+00> : vector<8x8xf32>
    %122 = tpu.matmul %121, %87, %cst_78 {dimension_numbers = #tpu.dot_dimension_numbers<[1], [0], [0], [1], [0, 0, 1, 1], [], []>} : vector<8x16xf32>, vector<16x8xf32>, vector<8x8xf32> -> vector<8x8xf32>
    %c0_79 = arith.constant 0 : index
    %c88 = arith.constant 88 : index
    %123 = vector.load %arg11[%c0_79, %c88] : memref<8x128xf32, #tpu.memory_space<vmem>>, vector<8x8xf32>
    tpu.vector_store %arg11[%c0_79, %c88], %122 {strides = array<i32>} : memref<8x128xf32, #tpu.memory_space<vmem>>, vector<8x8xf32>,
    %124 = vector.extract_strided_slice %86 {offsets = [0, 384], sizes = [8, 16], strides = [1, 1]} : vector<8x512xf32> to vector<8x16xf32>
    %cst_80 = arith.constant dense<0.000000e+00> : vector<8x8xf32>
    %125 = tpu.matmul %124, %87, %cst_80 {dimension_numbers = #tpu.dot_dimension_numbers<[1], [0], [0], [1], [0, 0, 1, 1], [], []>} : vector<8x16xf32>, vector<16x8xf32>, vector<8x8xf32> -> vector<8x8xf32>
    %c0_81 = arith.constant 0 : index
    %c96 = arith.constant 96 : index
    %126 = vector.load %arg11[%c0_81, %c96] : memref<8x128xf32, #tpu.memory_space<vmem>>, vector<8x8xf32>
    tpu.vector_store %arg11[%c0_81, %c96], %125 {strides = array<i32>} : memref<8x128xf32, #tpu.memory_space<vmem>>, vector<8x8xf32>,
    %127 = vector.extract_strided_slice %86 {offsets = [0, 416], sizes = [8, 16], strides = [1, 1]} : vector<8x512xf32> to vector<8x16xf32>
    %cst_82 = arith.constant dense<0.000000e+00> : vector<8x8xf32>
    %128 = tpu.matmul %127, %87, %cst_82 {dimension_numbers = #tpu.dot_dimension_numbers<[1], [0], [0], [1], [0, 0, 1, 1], [], []>} : vector<8x16xf32>, vector<16x8xf32>, vector<8x8xf32> -> vector<8x8xf32>
    %c0_83 = arith.constant 0 : index
    %c104 = arith.constant 104 : index
    %129 = vector.load %arg11[%c0_83, %c104] : memref<8x128xf32, #tpu.memory_space<vmem>>, vector<8x8xf32>
    tpu.vector_store %arg11[%c0_83, %c104], %128 {strides = array<i32>} : memref<8x128xf32, #tpu.memory_space<vmem>>, vector<8x8xf32>,
    %130 = vector.extract_strided_slice %86 {offsets = [0, 448], sizes = [8, 16], strides = [1, 1]} : vector<8x512xf32> to vector<8x16xf32>
    %cst_84 = arith.constant dense<0.000000e+00> : vector<8x8xf32>
    %131 = tpu.matmul %130, %87, %cst_84 {dimension_numbers = #tpu.dot_dimension_numbers<[1], [0], [0], [1], [0, 0, 1, 1], [], []>} : vector<8x16xf32>, vector<16x8xf32>, vector<8x8xf32> -> vector<8x8xf32>
    %c0_85 = arith.constant 0 : index
    %c112 = arith.constant 112 : index
    %132 = vector.load %arg11[%c0_85, %c112] : memref<8x128xf32, #tpu.memory_space<vmem>>, vector<8x8xf32>
    tpu.vector_store %arg11[%c0_85, %c112], %131 {strides = array<i32>} : memref<8x128xf32, #tpu.memory_space<vmem>>, vector<8x8xf32>,
    %133 = vector.extract_strided_slice %86 {offsets = [0, 480], sizes = [8, 16], strides = [1, 1]} : vector<8x512xf32> to vector<8x16xf32>
    %cst_86 = arith.constant dense<0.000000e+00> : vector<8x8xf32>
    %134 = tpu.matmul %133, %87, %cst_86 {dimension_numbers = #tpu.dot_dimension_numbers<[1], [0], [0], [1], [0, 0, 1, 1], [], []>} : vector<8x16xf32>, vector<16x8xf32>, vector<8x8xf32> -> vector<8x8xf32>
    %c0_87 = arith.constant 0 : index
    %c120 = arith.constant 120 : index
    %135 = vector.load %arg11[%c0_87, %c120] : memref<8x128xf32, #tpu.memory_space<vmem>>, vector<8x8xf32>
    tpu.vector_store %arg11[%c0_87, %c120], %134 {strides = array<i32>} : memref<8x128xf32, #tpu.memory_space<vmem>>, vector<8x8xf32>,
    return
  }
  func.func @transform_0(%arg0: i32) -> (i32, i32) {
    %c0_i32 = arith.constant 0 : i32
    %c0_i32_0 = arith.constant 0 : i32
    return %c0_i32, %arg0 : i32, i32
  }
  func.func @transform_1(%arg0: i32) -> (i32, i32) {
    %c0_i32 = arith.constant 0 : i32
    %c0_i32_0 = arith.constant 0 : i32
    return %c0_i32, %arg0 : i32, i32
  }
  func.func @transform_2(%arg0: i32) -> (i32, i32) {
    %c0_i32 = arith.constant 0 : i32
    %c0_i32_0 = arith.constant 0 : i32
    %c0_i32_1 = arith.constant 0 : i32
    return %c0_i32, %c0_i32_0 : i32, i32
  }
  func.func @transform_3(%arg0: i32) -> (i32, i32) {
    %c0_i32 = arith.constant 0 : i32
    %c0_i32_0 = arith.constant 0 : i32
    %c0_i32_1 = arith.constant 0 : i32
    return %c0_i32, %c0_i32_0 : i32, i32
  }
  func.func @transform_4(%arg0: i32) -> (i32, i32) {
    %c0_i32 = arith.constant 0 : i32
    %c0_i32_0 = arith.constant 0 : i32
    %c0_i32_1 = arith.constant 0 : i32
    return %c0_i32, %c0_i32_0 : i32, i32
  }
  func.func @transform_5(%arg0: i32) -> (i32, i32) {
    %c0_i32 = arith.constant 0 : i32
    %c0_i32_0 = arith.constant 0 : i32
    %c0_i32_1 = arith.constant 0 : i32
    return %c0_i32, %c0_i32_0 : i32, i32
  }
  func.func @transform_6(%arg0: i32) -> (i32, i32) {
    %c0_i32 = arith.constant 0 : i32
    %c0_i32_0 = arith.constant 0 : i32
    %c0_i32_1 = arith.constant 0 : i32
    return %c0_i32, %c0_i32_0 : i32, i32
  }
  func.func @transform_7(%arg0: i32) -> (i32, i32) {
    %c0_i32 = arith.constant 0 : i32
    %c0_i32_0 = arith.constant 0 : i32
    %c0_i32_1 = arith.constant 0 : i32
    return %c0_i32, %c0_i32_0 : i32, i32
  }
  func.func @transform_8(%arg0: i32) -> (i32, i32) {
    %c0_i32 = arith.constant 0 : i32
    %c0_i32_0 = arith.constant 0 : i32
    %c0_i32_1 = arith.constant 0 : i32
    return %c0_i32, %c0_i32_0 : i32, i32
  }
  func.func @transform_9(%arg0: i32) -> (i32, i32) {
    %c0_i32 = arith.constant 0 : i32
    %c0_i32_0 = arith.constant 0 : i32
    %c0_i32_1 = arith.constant 0 : i32
    return %c0_i32, %c0_i32_0 : i32, i32
  }
  func.func @transform_10(%arg0: i32) -> (i32, i32) {
    %c0_i32 = arith.constant 0 : i32
    %c0_i32_0 = arith.constant 0 : i32
    return %c0_i32, %arg0 : i32, i32
  }
}

</mosaic_0001>

<bundles_post_ra>
// kernel: tpu_custom_call.1
= control target key start
LH: loop header
LB: loop body
LE: loop exit
PB: predicated region body
PF: predicated region fallthrough
CT: control target
= control target key end

     0   :  { %15 = vsyncpa [#allocation4], 0  ;;  %s3385_s0 = inlined_call_operand.hbm [shape: f32[8,512], index: 0, kind: input, shape index: {}]   ;;  %s3386_s1 = inlined_call_operand.hbm [shape: f32[8,512], index: 1, kind: input, shape index: {}]   ;;  %s3387_s2 = inlined_call_operand.vmem [shape: f32[9,512], index: 2, kind: input, shape index: {}]   ;;  %s3388_s3 = inlined_call_operand.vmem [shape: bf16[16,8], index: 3, kind: input, shape index: {}]   ;;  %s3389_s4 = inlined_call_operand.vmem [shape: f32[16,1], index: 4, kind: input, shape index: {}]   ;;  %s3390_s5 = inlined_call_operand.vmem [shape: bf16[8,16], index: 5, kind: input, shape index: {}]   ;;  %s3391_s6 = inlined_call_operand.vmem [shape: f32[8,1], index: 6, kind: input, shape index: {}]   ;;  %s3392_s7 = inlined_call_operand.vmem [shape: bf16[8,72], index: 7, kind: input, shape index: {}]   ;;  %s3393_s8 = inlined_call_operand.vmem [shape: f32[8,1], index: 8, kind: input, shape index: {}]   ;;  %s3394_s9 = inlined_call_operand.vmem [shape: f32[16,8], index: 9, kind: input, shape index: {}]   ;;  %s3395_s10 = inlined_call_operand.hbm [shape: f32[8,128], index: 10, kind: output, shape index: {}]  }
   0x1   :  { %16 = vsyncpa [#allocation7], 0 }
   0x2   :  { %17 = vsyncpa [#allocation5], 0  ;;  %s2763_s13 = smov [#allocation3]   ;;  %s2764_s15 = smov [#allocation6]  }
   0x3   :  { %s24_s14 = sshll.u32 %s2763_s13, 4  ;;  %s34_s16 = sshll.u32 %s2764_s15, 4  ;;  %s25_s14 = int_to_ptr.vmem [resolvable:$true] %s24_s14  ;;  %s35_s16 = int_to_ptr.vmem [resolvable:$true] %s34_s16 }
   0x4   :  { %s2705_s17 = scalar_lea.vmem %s25_s14, 512  ;;  %p2710_p1 = scmp.lt.s32.totalorder %s25_s14, %s25_s14 }
   0x5   :  { %p2706_p0 = scmp.ne.s32.totalorder %s25_s14, %s2705_s17  ;;  %p2711_p2 = scmp.lt.s32.totalorder %s2705_s17, %s2705_s17 }
   0x7   :  { %p2712_p3 = por %p2711_p2, %p2710_p1 }
   0x9   :  { %p2713_p4 = pnand %p2712_p3, %p2706_p0 }
   0xb   :  { %2716 = shalt.err (!%p2713_p4)
}
   0xc   :  { %27 = dma.hbm_to_vmem [thread:$0]  %s3385_s0, 512, %s25_s14, [#allocation4]  }
   0xd   :  { %s2725_s20 = scalar_lea.vmem %s35_s16, 512  ;;  %p2730_p6 = scmp.lt.s32.totalorder %s35_s16, %s35_s16 }
   0xe   :  { %p2726_p5 = scmp.ne.s32.totalorder %s35_s16, %s2725_s20  ;;  %p2731_p7 = scmp.lt.s32.totalorder %s2725_s20, %s2725_s20 }
  0x10   :  { %p2732_p8 = por %p2731_p7, %p2730_p6 }
  0x12   :  { %p2733_p9 = pnand %p2732_p8, %p2726_p5 }
  0x14   :  { %2736 = shalt.err (!%p2733_p9)
}
  0x15   :  { %37 = dma.hbm_to_vmem [thread:$0]  %s3386_s1, 512, %s35_s16, [#allocation7]  }
  0x16   :  { %2757 = dma.done.wait [#allocation4], 512  }
  0x17   :  { %2758 = vsyncadd [#allocation4], 4294966784 }
  0x18   :  { %2759 = dma.done.wait [#allocation7], 512  }
  0x19   :  { %2760 = vsyncadd [#allocation7], 4294966784  ;;  %v2765_v0 = vmov 0   ;;  %v62_v1 = vld [vmem:[#allocation3 + $0x8] sm:$0xff]  ;;  %vm92_vm0 = vcmask 1043456   ;;  %v64_v2 = vld [vmem:[#allocation3 + $0x18] sm:$0xff] }
  0x1a   :  { %137 = vmatprep.mubr.bf16.mxu0 %v2765_v0  ;;  %180 = vmatprep.mubr.bf16.mxu1 %v2765_v0  ;;  %v61_v3 = vld [vmem:[#allocation3] sm:$0xff]  ;;  %v66_v4 = vpack.c.bf16 %v62_v1, %v62_v1  ;;  %v68_v5 = vpack.c.bf16 %v64_v2, %v64_v2  ;;  %v63_v7 = vld [vmem:[#allocation3 + $0x10] sm:$0xff]  ;;  %vm88_vm1 = vcmask 64512   ;;  %v72_v13 = vld [vmem:[%s3389_s4 + $0x8] sm:$0xff]  ;;  %vm210_vm2 = vcmask 130048   ;;  %s2767_s28 = smov 113  }
  0x1b   :  { %2678 = vset.pattern.permute.xlu0 %v2765_v0  ;;  %2679 = vset.pattern.permute.xlu1 %v2765_v0  ;;  %v65_v6 = vpack.c.bf16 %v61_v3, %v61_v3  ;;  %v67_v8 = vpack.c.bf16 %v63_v7, %v63_v7  ;;  %v71_v9 = vld [vmem:[%s3389_s4] sm:$0xff]  ;;  %s2768_s29 = smov 112   ;;  %s2769_s30 = smov 127   ;;  %vm953_vm11 = vcmask 588800   ;;  %vm2775_vm12 = vmmov 0  }
  0x1c   :  { %2377 = vmatprep.subr.msk.bf16.mxu0 %vm92_vm0, %v66_v4  ;;  %2379 = vmatprep.subr.msk.bf16.mxu1 %vm92_vm0, %v68_v5  ;;  %v2680_v11 = vld [vmem:[%s3388_s3] sm:$0xff]   ;;  %v322_v5 = vld [vmem:[#allocation6 + $0x10] sm:$0xff]  ;;  %s2770_s11 = smov 15   ;;  %s2771_s12 = smov 1   ;;  %vm1241_vm13 = vcmask 130112   ;;  %vm1321_vm14 = vcmask 195712  }
  0x1d   :  { %v94_v10 = vsel %vm92_vm0, %v65_v6, 0  ;;  %v100_v12 = vsel %vm92_vm0, %v67_v8, 0  ;;  %75 = vperm.xlu0 %2678, %v71_v9   ;;  %v204_v14 = vld [vmem:[%s3391_s6] sm:$0xff]  ;;  %s2772_s13 = smov 17   ;;  %s2773_s14 = smov 16   ;;  %vm1401_vm15 = vcmask 261312  }
  0x1e   :  { %120 = vmatpush1.bf16.msra.mxu0 %v94_v10  ;;  %163 = vmatpush1.bf16.msra.mxu1 %v100_v12  ;;  %v199_v45 = vld [vmem:[%s3390_s5] sm:$0xf]  ;;  %s2766_s5 = smov 111   ;;  %s2778_s15 = smov 32  }
  0x1f   :  { %207 = vperm.xlu1 %2679, %v204_v14   ;;  %v320_v3 = vld [vmem:[#allocation6] sm:$0xff]  ;;  %v321_v14 = vld [vmem:[#allocation6 + $0x8] sm:$0xff]  ;;  %s2779_s16 = smov 8   ;;  %s2781_s17 = smov 40  }
  0x20   :  { %s2782_s18 = smov 48   ;;  %s2784_s19 = smov 80  }
  0x21   :  { %2378 = vmatmul.mubr.msk.bf16.vlgmr.msra.gmra.mxu0 %vm88_vm1, %v2680_v11  ;;  %2380 = vmatmul.mubr.msk.bf16.vlgmr.msra.gmra.mxu1 %vm88_vm1, %v2680_v11  ;;  %s2785_s20 = smov 72   ;;  %s2786_s21 = smov 88  }
  0x22   :  { %80 = vperm.xlu0 %2678, %v72_v13   ;;  %246 = vmatprep.mubr.bf16.mxu0 %v2765_v0  ;;  %s2787_s22 = smov 104   ;;  %s2788_s0 = smov 120  }
  0x23   :  { %287 = vmatprep.mubr.bf16.mxu1 %v2765_v0 }
  0x98   :  { %v76_v15 = vpop.permute.xlu0 %75 }
  0x9a   :  { %v208_v46 = vpop.permute.xlu1 %207 }
  0x9d   :  { %v81_v20 = vpop.permute.xlu0 %80 }
  0xe1   :  { %v139_v16 = vpop.f32.mrf.mxu0  ;;  %v182_v17 = vpop.f32.mrf.mxu1 }
  0xe2   :  { %v140_v25 = vadd.f32 %v139_v16, %v76_v15  ;;  %v183_v29 = vadd.f32 %v182_v17, %v76_v15  ;;  %v323_v17 = vld [vmem:[#allocation6 + $0x18] sm:$0xff] }
  0xe3   :  { %v141_v18 = vpop.f32.mrf.mxu0  ;;  %v184_v19 = vpop.f32.mrf.mxu1 }
  0xe4   :  { %v142_v22 = vadd.f32 %v141_v18, %v76_v15  ;;  %v185_v26 = vadd.f32 %v184_v19, %v76_v15  ;;  %v191_v37 = vmax.f32 %v140_v25, 0.0  ;;  %v193_v40 = vmax.f32 %v183_v29, 0.0  ;;  %v857_v19 = vld [vmem:[%s3393_s8] sm:$0xff]  ;;  %s2780_s8 = smov 24  }
  0xe5   :  { %v143_v21 = vpop.f32.mrf.mxu0  ;;  %v186_v24 = vpop.f32.mrf.mxu1 }
  0xe6   :  { %v144_v23 = vadd.f32 %v143_v21, %v81_v20  ;;  %v187_v27 = vadd.f32 %v186_v24, %v81_v20  ;;  %v192_v34 = vmax.f32 %v142_v22, 0.0  ;;  %v194_v38 = vmax.f32 %v185_v26, 0.0 }
  0xe7   :  { %v145_v28 = vpop.f32.mrf.mxu0  ;;  %v188_v31 = vpop.f32.mrf.mxu1  ;;  %v336_v26 = vlaneseq }
  0xe8   :  { %v146_v30 = vadd.f32 %v145_v28, %v81_v20  ;;  %v195_v32 = vmax.f32 %v144_v23, 0.0  ;;  %v189_v33 = vadd.f32 %v188_v31, %v81_v20  ;;  %v197_v35 = vmax.f32 %v187_v27, 0.0 }
  0xe9   :  { %v346_v29 = vshrl.u32 %v336_v26, 7 }
  0xea   :  { %v196_v36 = vmax.f32 %v146_v30, 0.0  ;;  %v198_v39 = vmax.f32 %v189_v33, 0.0  ;;  %v200_v42 = vpack.c.bf16 %v195_v32, %v191_v37  ;;  %v202_v44 = vpack.c.bf16 %v197_v35, %v193_v40  ;;  %v2410_v32 = vld [vmem:[%s3387_s2 + $0x20] ss:$8 sm:$0xf] }
  0xeb   :  { %v2953_v30 = vand.u32 127, %v336_v26  ;;  %v2964_v35 = vsub.s32 1, %v346_v29  ;;  %v2971_v40 = vsub.s32 2, %v346_v29 }
  0xec   :  { %v201_v41 = vpack.c.bf16 %v196_v36, %v192_v34  ;;  %v203_v43 = vpack.c.bf16 %v198_v39, %v194_v38  ;;  %v2962_v34 = vsub.s32 0, %v346_v29 }
  0xed   :  { %vm788_vm3 = vcmp.lt.s32.totalorder %v2953_v30, 111  ;;  %v803_v37 = vrot.slane %v2410_v32, %v2964_v35  ;;  %vm730_vm4 = vcmp.lt.s32.totalorder %v2953_v30, 112  ;;  %vm614_vm5 = vcmp.lt.s32.totalorder %v2953_v30, 127 }
  0xee   :  { %228 = vmatprep.subr.bf16.mxu0 %v201_v41  ;;  %269 = vmatprep.subr.bf16.mxu1 %v203_v43  ;;  %v799_v36 = vrot.slane %v2410_v32, %v2962_v34  ;;  %v2973_v41 = vsub.s32 3, %v346_v29  ;;  %vm672_vm6 = vcmp.lt.s32.totalorder %v2953_v30, 113  ;;  %vm453_vm7 = vcmp.lt.s32.totalorder %v2953_v30, 15 }
  0xef   :  { %229 = vmatpush1.bf16.msra.mxu0 %v200_v42  ;;  %270 = vmatpush1.bf16.msra.mxu1 %v202_v44  ;;  %vm511_vm8 = vcmp.lt.s32.totalorder %v2953_v30, 1  ;;  %vm338_vm9 = vcmp.lt.s32.totalorder %v2953_v30, 17  ;;  %vm395_vm10 = vcmp.lt.s32.totalorder %v2953_v30, 16 }
  0xf2   :  { %2381 = vmatmul.mubr.msk.bf16.vlgmr.msra.gmra.mxu0 %vm210_vm2, %v199_v45  ;;  %2382 = vmatmul.mubr.msk.bf16.vlgmr.msra.gmra.mxu1 %vm210_vm2, %v199_v45 }
  0xf3   :  { %1001 = vmatprep.mubr.bf16.mxu0 %v2765_v0  ;;  %1042 = vmatprep.mubr.bf16.mxu1 %v2765_v0 }
 0x1b2   :  { %v248_v47 = vpop.f32.mrf.mxu0  ;;  %v289_v49 = vpop.f32.mrf.mxu1 }
 0x1b3   :  { %v249_v48 = vadd.f32 %v248_v47, %v208_v46  ;;  %v290_v50 = vadd.f32 %v289_v49, %v208_v46  ;;  %v811_v47 = vrot.slane %v2410_v32, %v2973_v41 }
 0x1b4   :  { %v250_v51 = vpop.f32.mrf.mxu0  ;;  %v291_v53 = vpop.f32.mrf.mxu1 }
 0x1b5   :  { %v2383_v52 = vmul.f32 -1.442695, %v249_v48  ;;  %v2385_v54 = vmul.f32 -1.442695, %v290_v50  ;;  %v251_v59 = vadd.f32 %v250_v51, %v208_v46  ;;  %v292_v61 = vadd.f32 %v291_v53, %v208_v46 }
 0x1b6   :  { %v252_v55 = vpop.f32.mrf.mxu0  ;;  %v293_v56 = vpop.f32.mrf.mxu1  ;;  %v807_v46 = vrot.slane %v2410_v32, %v2971_v40 }
 0x1b7   :  { %2681 = vpow2.f32 %v2383_v52  ;;  %v2384_v60 = vmul.f32 -1.442695, %v251_v59  ;;  %v2386_v2 = vmul.f32 -1.442695, %v292_v61 }
 0x1b8   :  { %2683 = vpow2.f32 %v2385_v54  ;;  %v253_v57 = vpop.f32.mrf.mxu0  ;;  %v294_v58 = vpop.f32.mrf.mxu1 }
 0x1b9   :  { %2685 = vpow2.f32 %v2384_v60  ;;  %v2398_v57 = vld [vmem:[%s3387_s2 + $0x4] ss:$8 sm:$0xf] }
 0x1c4   :  { %v2682_v62 = vpop.eup %2681 }
 0x1c5   :  { %v2684_v63 = vpop.eup %2683  ;;  %v308_v0 = vadd.f32 1.0, %v2682_v62  ;;  %v575_v62 = vrot.slane %v2398_v57, %v2971_v40 }
 0x1c6   :  { %v310_v1 = vadd.f32 1.0, %v2684_v63  ;;  %v2686_v4 = vpop.eup %2685  ;;  %v567_v63 = vrot.slane %v2398_v57, %v2962_v34 }
 0x1c7   :  { %2687 = vrcp.f32 %v308_v0  ;;  %v309_v10 = vadd.f32 1.0, %v2686_v4  ;;  %v571_v0 = vrot.slane %v2398_v57, %v2964_v35 }
 0x1c8   :  { %2689 = vrcp.f32 %v310_v1 }
 0x1c9   :  { %2691 = vpow2.f32 %v2386_v2  ;;  %v579_v2 = vrot.slane %v2398_v57, %v2973_v41 }
 0x1ca   :  { %2693 = vrcp.f32 %v309_v10  ;;  %v3018_v10 = vld [vmem:[%s3387_s2 + $0x2] ss:$8 sm:$0xf] }
 0x1d4   :  { %v2688_v6 = vpop.eup %2687 }
 0x1d5   :  { %v2690_v7 = vpop.eup %2689  ;;  %v2882_v8 = vmul.f32 %v2688_v6, %v320_v3  ;;  %v3003_v3 = vld [vmem:[%s3387_s2 + $0x7] ss:$8 sm:$0xf] }
 0x1d6   :  { %v2884_v9 = vmul.f32 %v2690_v7, %v322_v5  ;;  %v2692_v11 = vpop.eup %2691  ;;  %v3010_v5 = vld [vmem:[%s3387_s2 + $0x5] ss:$8 sm:$0xf]  ;;  %v741_v32 = vrot.slane %v3003_v3, %v2962_v34 }
 0x1d7   :  { %780 = vrot.lane.b32.xlu1 %v2882_v8, %s2766_s5  ;;  %v311_v12 = vadd.f32 1.0, %v2692_v11  ;;  %v2694_v13 = vpop.eup %2693  ;;  %v2404_v11 = vld [vmem:[%s3387_s2 + $0x6] ss:$8 sm:$0xf] }
 0x1d8   :  { %668 = vrot.lane.b32.xlu0 %v2884_v9, %s2767_s28  ;;  %v2902_v15 = vmul.f32 %v2694_v13, %v321_v14  ;;  %v3013_v7 = vmul.f32 %v575_v62, %v2884_v9  ;;  %v753_v14 = vrot.slane %v3003_v3, %v2973_v41  ;;  %v683_v26 = vrot.slane %v2404_v11, %v2962_v34 }
 0x1d9   :  { %2695 = vrcp.f32 %v311_v12  ;;  %v3024_v12 = vmul.f32 %v567_v63, %v2882_v8  ;;  %v687_v29 = vrot.slane %v2404_v11, %v2964_v35 }
 0x1da   :  { %v3027_v13 = vmul.f32 %v571_v0, %v2902_v15  ;;  %v625_v0 = vrot.slane %v3010_v5, %v2962_v34 }
 0x1db   :  { %784 = vrot.lane.b32.xlu1 %v2884_v9, %s2766_s5 }
 0x1dc   :  { %726 = vrot.lane.b32.xlu0 %v2884_v9, %s2768_s29 }
 0x1df   :  { %664 = vrot.lane.b32.xlu1 %v2882_v8, %s2767_s28 }
 0x1e0   :  { %722 = vrot.lane.b32.xlu0 %v2882_v8, %s2768_s29 }
 0x1e3   :  { %606 = vrot.lane.b32.xlu1 %v2882_v8, %s2769_s30 }
 0x1e4   :  { %610 = vrot.lane.b32.xlu0 %v2884_v9, %s2769_s30 }
 0x1e6   :  { %v2696_v16 = vpop.eup %2695 }
 0x1e7   :  { %445 = vrot.lane.b32.xlu1 %v2882_v8, %s2770_s11  ;;  %v2906_v18 = vmul.f32 %v2696_v16, %v323_v17 }
 0x1e8   :  { %507 = vrot.lane.b32.xlu0 %v2884_v9, %s2771_s12 }
 0x1e9   :  { %v3035_v16 = vmul.f32 %v579_v2, %v2906_v18 }
 0x1eb   :  { %503 = vrot.lane.b32.xlu1 %v2882_v8, %s2771_s12 }
 0x1ec   :  { %782 = vrot.lane.b32.xlu0 %v2902_v15, %s2766_s5 }
 0x1ef   :  { %449 = vrot.lane.b32.xlu1 %v2884_v9, %s2770_s11 }
 0x1f0   :  { %786 = vrot.lane.b32.xlu0 %v2906_v18, %s2766_s5 }
 0x1f3   :  { %328 = vrot.lane.b32.xlu1 %v2882_v8, %s2772_s13 }
 0x1f4   :  { %728 = vrot.lane.b32.xlu0 %v2906_v18, %s2768_s29 }
 0x1f7   :  { %387 = vrot.lane.b32.xlu1 %v2882_v8, %s2773_s14  ;;  %v633_v8 = vrot.slane %v3010_v5, %v2971_v40 }
 0x1f8   :  { %612 = vrot.lane.b32.xlu0 %v2906_v18, %s2769_s30 }
 0x1fb   :  { %666 = vrot.lane.b32.xlu1 %v2902_v15, %s2767_s28 }
 0x1fc   :  { %447 = vrot.lane.b32.xlu0 %v2902_v15, %s2770_s11 }
 0x1ff   :  { %724 = vrot.lane.b32.xlu1 %v2902_v15, %s2768_s29 }
 0x200   :  { %505 = vrot.lane.b32.xlu0 %v2902_v15, %s2771_s12 }
 0x203   :  { %670 = vrot.lane.b32.xlu1 %v2906_v18, %s2767_s28 }
 0x204   :  { %509 = vrot.lane.b32.xlu0 %v2906_v18, %s2771_s12 }
 0x207   :  { %608 = vrot.lane.b32.xlu1 %v2902_v15, %s2769_s30 }
 0x208   :  { %330 = vrot.lane.b32.xlu0 %v2902_v15, %s2772_s13 }
 0x20b   :  { %451 = vrot.lane.b32.xlu1 %v2906_v18, %s2770_s11 }
 0x20c   :  { %389 = vrot.lane.b32.xlu0 %v2902_v15, %s2773_s14  ;;  %v637_v15 = vrot.slane %v3010_v5, %v2973_v41 }
 0x20f   :  { %334 = vrot.lane.b32.xlu1 %v2906_v18, %s2772_s13 }
 0x210   :  { %393 = vrot.lane.b32.xlu0 %v2906_v18, %s2773_s14  ;;  %v468_v18 = vrot.slane %v3018_v10, %v2964_v35 }
 0x213   :  { %332 = vrot.lane.b32.xlu1 %v2884_v9, %s2772_s13 }
 0x214   :  { %391 = vrot.lane.b32.xlu0 %v2884_v9, %s2773_s14  ;;  %v749_v9 = vrot.slane %v3003_v3, %v2971_v40 }
 0x217   :  { %860 = vperm.xlu1 %2679, %v857_v19   ;;  %v3046_v19 = vld [vmem:[%s3387_s2 + $0x3] ss:$8 sm:$0xf] }
 0x249   :  { %v781_v20 = vpop.permute.xlu1 %780 }
 0x24a   :  { %v2941_v21 = vpop.permute.xlu0 %668 }
 0x24d   :  { %v785_v22 = vpop.permute.xlu1 %784 }
 0x24e   :  { %v2943_v23 = vpop.permute.xlu0 %726 }
 0x251   :  { %v2945_v24 = vpop.permute.xlu1 %664 }
 0x252   :  { %v2947_v25 = vpop.permute.xlu0 %722 }
 0x255   :  { %v2949_v27 = vpop.permute.xlu1 %606 }
 0x256   :  { %v2951_v28 = vpop.permute.xlu0 %610 }
 0x259   :  { %v2955_v31 = vpop.permute.xlu1 %445 }
 0x25a   :  { %v2960_v33 = vpop.permute.xlu0 %507 }
 0x25d   :  { %v2969_v38 = vpop.permute.xlu1 %503 }
 0x25e   :  { %v783_v39 = vpop.permute.xlu0 %782 }
 0x25f   :  { %v790_v42 = vsel %vm788_vm3, %v783_v39, %v785_v22  ;;  %v791_v43 = vsel %vm788_vm3, %v781_v20, %v783_v39 }
 0x260   :  { %v816_v44 = vmul.f32 %v799_v36, %v791_v43  ;;  %v817_v45 = vmul.f32 %v803_v37, %v790_v42  ;;  %v745_v36 = vrot.slane %v3003_v3, %v2964_v35  ;;  %v3065_v37 = vld [vmem:[%s3387_s2] ss:$8 sm:$0xf]  ;;  %v526_v43 = vrot.slane %v3046_v19, %v2964_v35 }
 0x261   :  { %v2981_v48 = vpop.permute.xlu1 %449 }
 0x262   :  { %v2487_v49 = vpack.c.bf16 %v816_v44, %v816_v44  ;;  %v2488_v50 = vpack.c.bf16 %v817_v45, %v817_v45  ;;  %v787_v51 = vpop.permute.xlu0 %786  ;;  %v530_v44 = vrot.slane %v3046_v19, %v2971_v40 }
 0x263   :  { %v789_v52 = vsel %vm788_vm3, %v785_v22, %v787_v51  ;;  %v792_v53 = vsel %vm788_vm3, %v787_v51, %v781_v20  ;;  %v472_v20 = vrot.slane %v3018_v10, %v2971_v40  ;;  %vm1720_vm3 = vcmask 523712  }
 0x264   :  { %v818_v54 = vmul.f32 %v807_v46, %v789_v52  ;;  %v819_v55 = vmul.f32 %v811_v47, %v792_v53  ;;  %2433 = vmatprep.subr.msk.bf16.mxu0 %vm92_vm0, %v2488_v50  ;;  %v958_v56 = vsel %vm92_vm0, %v2487_v49, 0  ;;  %v522_v46 = vrot.slane %v3046_v19, %v2962_v34 }
 0x265   :  { %976 = vmatpush1.bf16.msra.mxu0 %v958_v56  ;;  %v2992_v58 = vpop.permute.xlu1 %328  ;;  %v534_v47 = vrot.slane %v3046_v19, %v2973_v41  ;;  %v691_v49 = vrot.slane %v2404_v11, %v2971_v40  ;;  %v695_v50 = vrot.slane %v2404_v11, %v2973_v41 }
 0x266   :  { %v2489_v59 = vpack.c.bf16 %v818_v54, %v818_v54  ;;  %v2490_v60 = vpack.c.bf16 %v819_v55, %v819_v55  ;;  %v729_v61 = vpop.permute.xlu0 %728  ;;  %v352_v55 = vrot.slane %v3065_v37, %v2964_v35 }
 0x267   :  { %v731_v62 = vsel %vm730_vm4, %v2943_v23, %v729_v61  ;;  %v734_v63 = vsel %vm730_vm4, %v729_v61, %v2947_v25 }
 0x268   :  { %2435 = vmatprep.subr.msk.bf16.mxu1 %vm92_vm0, %v2490_v60  ;;  %v964_v1 = vsel %vm92_vm0, %v2489_v59, 0  ;;  %vm1480_vm0 = vcmask 326912  }
 0x269   :  { %1017 = vmatpush1.bf16.msra.mxu1 %v964_v1  ;;  %v3005_v4 = vpop.permute.xlu1 %387  ;;  %v629_v1 = vrot.slane %v3010_v5, %v2964_v35 }
 0x26a   :  { %v613_v6 = vpop.permute.xlu0 %612 }
 0x26b   :  { %v618_v51 = vsel %vm614_vm5, %v613_v6, %v2949_v27  ;;  %v615_v2 = vsel %vm614_vm5, %v2951_v28, %v613_v6 }
 0x26d   :  { %v667_v17 = vpop.permute.xlu1 %666 }
 0x26e   :  { %v3053_v22 = vpop.permute.xlu0 %447  ;;  %v674_v39 = vsel %vm672_vm6, %v667_v17, %v2941_v21  ;;  %v675_v42 = vsel %vm672_vm6, %v2945_v24, %v667_v17 }
 0x26f   :  { %v700_v56 = vmul.f32 %v683_v26, %v675_v42  ;;  %v701_v57 = vmul.f32 %v687_v29, %v674_v39  ;;  %v760_v29 = vmul.f32 %v749_v9, %v731_v62  ;;  %v644_v42 = vmul.f32 %v633_v8, %v615_v2 }
 0x271   :  { %v725_v45 = vpop.permute.xlu1 %724 }
 0x272   :  { %v506_v52 = vpop.permute.xlu0 %505  ;;  %v732_v53 = vsel %vm730_vm4, %v725_v45, %v2943_v23  ;;  %v733_v54 = vsel %vm730_vm4, %v2947_v25, %v725_v45  ;;  %v3112_v23 = vld [vmem:[%s3387_s2 + $0x1] ss:$8 sm:$0xf]  ;;  %v645_v25 = vmul.f32 %v637_v15, %v618_v51  ;;  %v456_v15 = vsel %vm453_vm7, %v2955_v31, %v3053_v22 }
 0x273   :  { %v758_v59 = vmul.f32 %v741_v32, %v733_v54  ;;  %v759_v60 = vmul.f32 %v745_v36, %v732_v53  ;;  %v514_v61 = vsel %vm511_vm8, %v2969_v38, %v506_v52  ;;  %v761_v32 = vmul.f32 %v753_v14, %v734_v63 }
 0x274   :  { %v410_v45 = vrot.slane %v3112_v23, %v2964_v35  ;;  %v540_v51 = vmul.f32 %v526_v43, %v514_v61  ;;  %v513_v8 = vsel %vm511_vm8, %v506_v52, %v2960_v33  ;;  %v2482_v43 = vpack.c.bf16 %v645_v25, %v3035_v16 }
 0x275   :  { %v2483_v3 = vpack.c.bf16 %v758_v59, %v700_v56  ;;  %v671_v11 = vpop.permute.xlu1 %670  ;;  %v2484_v17 = vpack.c.bf16 %v759_v60, %v701_v57  ;;  %v482_v56 = vmul.f32 %v468_v18, %v456_v15  ;;  %v2481_v60 = vpack.c.bf16 %v644_v42, %v3013_v7 }
 0x276   :  { %v510_v5 = vpop.permute.xlu0 %509  ;;  %v673_v6 = vsel %vm672_vm6, %v2941_v21, %v671_v11  ;;  %v676_v26 = vsel %vm672_vm6, %v671_v11, %v2945_v24  ;;  %v464_v21 = vrot.slane %v3018_v10, %v2962_v34  ;;  %v348_v16 = vrot.slane %v3065_v37, %v2962_v34 }
 0x277   :  { %v702_v36 = vmul.f32 %v691_v49, %v673_v6  ;;  %v703_v39 = vmul.f32 %v695_v50, %v676_v26  ;;  %977 = vmatprep.subr.bf16.mxu0 %v2484_v17  ;;  %v476_v49 = vrot.slane %v3018_v10, %v2973_v41  ;;  %v515_v57 = vsel %vm511_vm8, %v510_v5, %v2969_v38 }
 0x278   :  { %978 = vmatpush1.bf16.msra.mxu0 %v2483_v3  ;;  %v541_v18 = vmul.f32 %v530_v44, %v513_v8  ;;  %v2476_v63 = vpack.c.bf16 %v540_v51, %v482_v56  ;;  %v360_v35 = vrot.slane %v3065_v37, %v2973_v41  ;;  %v414_v26 = vrot.slane %v3112_v23, %v2971_v40 }
 0x279   :  { %v2485_v24 = vpack.c.bf16 %v760_v29, %v702_v36  ;;  %v609_v9 = vpop.permute.xlu1 %608  ;;  %v2486_v14 = vpack.c.bf16 %v761_v32, %v703_v39  ;;  %vm1959_vm6 = vcmask 720512  }
 0x27a   :  { %v331_v50 = vpop.permute.xlu0 %330  ;;  %v616_v53 = vsel %vm614_vm5, %v609_v9, %v2951_v28  ;;  %v617_v54 = vsel %vm614_vm5, %v2949_v27, %v609_v9  ;;  %v455_v27 = vsel %vm453_vm7, %v3053_v22, %v2981_v48  ;;  %v512_v28 = vsel %vm511_vm8, %v2960_v33, %v510_v5 }
 0x27b   :  { %v642_v52 = vmul.f32 %v625_v0, %v617_v54  ;;  %v643_v59 = vmul.f32 %v629_v1, %v616_v53  ;;  %1018 = vmatprep.subr.bf16.mxu1 %v2486_v14  ;;  %v539_v22 = vmul.f32 %v522_v46, %v515_v57  ;;  %v341_v33 = vsel %vm338_vm9, %v2992_v58, %v331_v50 }
 0x27c   :  { %1019 = vmatpush1.bf16.msra.mxu1 %v2485_v24  ;;  %v483_v3 = vmul.f32 %v472_v20, %v455_v27  ;;  %v366_v19 = vmul.f32 %v352_v55, %v341_v33  ;;  %v356_v20 = vrot.slane %v3065_v37, %v2971_v40  ;;  %vm2118_vm8 = vcmask 851712  }
 0x27d   :  { %v2479_v38 = vpack.c.bf16 %v642_v52, %v3024_v12  ;;  %1020 = vmatprep.subr.bf16.mxu1 %v2482_v43  ;;  %v452_v62 = vpop.permute.xlu1 %451  ;;  %v2480_v7 = vpack.c.bf16 %v643_v59, %v3027_v13  ;;  %v542_v13 = vmul.f32 %v534_v47, %v512_v28 }
 0x27e   :  { %v390_v0 = vpop.permute.xlu0 %389  ;;  %v454_v44 = vsel %vm453_vm7, %v2981_v48, %v452_v62  ;;  %v457_v12 = vsel %vm453_vm7, %v452_v62, %v2955_v31  ;;  %v406_v31 = vrot.slane %v3112_v23, %v2962_v34  ;;  %v2477_v25 = vpack.c.bf16 %v541_v18, %v483_v3  ;;  %v3229_v62 = vld [vmem:[%s3394_s9] sm:$0xff] }
 0x27f   :  { %v398_v46 = vsel %vm395_vm10, %v3005_v4, %v390_v0  ;;  %v481_v1 = vmul.f32 %v464_v21, %v457_v12  ;;  %v484_v2 = vmul.f32 %v476_v49, %v454_v44  ;;  %979 = vmatprep.subr.bf16.mxu0 %v2480_v7  ;;  %v2774_v18 = vmov 0.0  }
 0x280   :  { %v424_v48 = vmul.f32 %v410_v45, %v398_v46  ;;  %980 = vmatpush1.bf16.msra.mxu0 %v2479_v38  ;;  %1021 = vmatpush1.bf16.msra.mxu1 %v2481_v60  ;;  %v3221_v38 = vld [vmem:[%s3394_s9 + $0x8] sm:$0xff]  ;;  %s2776_s9 = smov 64   ;;  %vm2039_vm7 = vcmask 786112  }
 0x281   :  { %v2475_v47 = vpack.c.bf16 %v539_v22, %v481_v1  ;;  %v335_v11 = vpop.permute.xlu1 %334  ;;  %981 = vmatprep.subr.bf16.mxu0 %v2476_v63  ;;  %v2478_v17 = vpack.c.bf16 %v542_v13, %v484_v2 }
 0x282   :  { %v394_v61 = vpop.permute.xlu0 %393  ;;  %v342_v10 = vsel %vm338_vm9, %v335_v11, %v2992_v58  ;;  %v2472_v55 = vpack.c.bf16 %v424_v48, %v366_v19  ;;  %v418_v58 = vrot.slane %v3112_v23, %v2973_v41  ;;  %v838_v23 = vld [vmem:[%s3392_s7] sm:$0xf] }
 0x283   :  { %v399_v34 = vsel %vm395_vm10, %v394_v61, %v3005_v4  ;;  %v365_v5 = vmul.f32 %v348_v16, %v342_v10  ;;  %1022 = vmatprep.subr.bf16.mxu1 %v2478_v17 }
 0x284   :  { %v423_v6 = vmul.f32 %v406_v31, %v399_v34  ;;  %982 = vmatpush1.bf16.msra.mxu0 %v2475_v47  ;;  %1023 = vmatpush1.bf16.msra.mxu1 %v2477_v25 }
 0x285   :  { %v333_v29 = vpop.permute.xlu1 %332  ;;  %983 = vmatprep.subr.bf16.mxu0 %v2472_v55 }
 0x286   :  { %v2471_v32 = vpack.c.bf16 %v423_v6, %v365_v5  ;;  %v392_v36 = vpop.permute.xlu0 %391  ;;  %v339_v4 = vsel %vm338_vm9, %v333_v29, %v335_v11  ;;  %v340_v37 = vsel %vm338_vm9, %v331_v50, %v333_v29  ;;  %vm2198_vm9 = vcmask 917312  }
 0x287   :  { %v396_v39 = vsel %vm395_vm10, %v392_v36, %v394_v61  ;;  %v397_v42 = vsel %vm395_vm10, %v390_v0, %v392_v36  ;;  %v367_v40 = vmul.f32 %v356_v20, %v340_v37  ;;  %v368_v15 = vmul.f32 %v360_v35, %v339_v4 }
 0x288   :  { %v425_v45 = vmul.f32 %v414_v26, %v397_v42  ;;  %v426_v41 = vmul.f32 %v418_v58, %v396_v39  ;;  %984 = vmatpush1.bf16.msra.mxu0 %v2471_v32  ;;  %vm2278_vm10 = vcmask 982912  }
 0x289   :  { %2539 = vmatprep.subr.mxu0 %v2774_v18 }
 0x28a   :  { %v2473_v21 = vpack.c.bf16 %v425_v45, %v367_v40  ;;  %v2474_v51 = vpack.c.bf16 %v426_v41, %v368_v15 }
 0x28b   :  { %2434 = vmatmul.mubr.msk.bf16.vlgmr.msra.gmra.mxu0 %vm953_vm11, %v838_v23 }
 0x28c   :  { %1024 = vmatprep.subr.bf16.mxu1 %v2474_v51  ;;  %2540 = vmatpush3.msra.mxu0 %v3221_v38 }
 0x28d   :  { %1025 = vmatpush1.bf16.msra.mxu1 %v2473_v21  ;;  %2541 = vmatprep.subr.mxu0 %v2774_v18 }
 0x28e   :  { %2546 = vmatprep.subr.mxu1 %v2774_v18  ;;  %2542 = vmatpush3.msra.mxu0 %v3229_v62 }
 0x28f   :  { %2543 = vmatprep.mubr.msk.f32.mxu0 %vm2775_vm12, %v2774_v18  ;;  %2553 = vmatprep.subr.mxu0 %v2774_v18 }
 0x290   :  { %2436 = vmatmul.mubr.msk.bf16.vlgmr.msra.gmra.mxu1 %vm953_vm11, %v838_v23  ;;  %vm2358_vm11 = vcmask 1048512  }
 0x291   :  { %2547 = vmatpush3.msra.mxu1 %v3221_v38  ;;  %2550 = vmatprep.mubr.msk.f32.mxu1 %vm2775_vm12, %v2774_v18 }
 0x292   :  { %v861_v24 = vpop.permute.xlu1 %860  ;;  %2548 = vmatprep.subr.mxu1 %v2774_v18 }
 0x293   :  { %2549 = vmatpush3.msra.mxu1 %v3229_v62 }
 0x294   :  { %2560 = vmatprep.subr.mxu1 %v2774_v18 }
 0x34b   :  { %v1003_v9 = vpop.f32.mrf.mxu0 }
 0x34c   :  { %v1004_v14 = vadd.f32 %v1003_v9, %v861_v24 }
 0x34d   :  { %v1005_v49 = vpop.f32.mrf.mxu0 }
 0x34e   :  { %v1051_v8 = vmax.f32 %v1004_v14, 0.0  ;;  %v1006_v50 = vadd.f32 %v1005_v49, %v861_v24 }
 0x34f   :  { %v1007_v53 = vpop.f32.mrf.mxu0 }
 0x350   :  { %v1052_v54 = vmax.f32 %v1006_v50, 0.0  ;;  %v1044_v43 = vpop.f32.mrf.mxu1  ;;  %1055 = vrot.lane.b32.xlu0 %v1051_v8, %s2769_s30 }
 0x351   :  { %v1045_v56 = vadd.f32 %v1044_v43, %v861_v24  ;;  %v1008_v57 = vpop.f32.mrf.mxu0 }
 0x352   :  { %v1046_v52 = vpop.f32.mrf.mxu1  ;;  %1057 = vrot.lane.b32.xlu1 %v1052_v54, %s2769_s30 }
 0x353   :  { %v1053_v59 = vmax.f32 %v1045_v56, 0.0  ;;  %v1047_v60 = vadd.f32 %v1046_v52, %v861_v24 }
 0x354   :  { %v1048_v27 = vpop.f32.mrf.mxu1 }
 0x355   :  { %v1054_v28 = vmax.f32 %v1047_v60, 0.0  ;;  %1059 = vrot.lane.b32.xlu0 %v1053_v59, %s2769_s30 }
 0x356   :  { %v1049_v16 = vpop.f32.mrf.mxu1 }
 0x357   :  { %1061 = vrot.lane.b32.xlu1 %v1054_v28, %s2769_s30  ;;  %s2777_s30 = smov 96  }
 0x3c2   :  { %v1056_v7 = vpop.permute.xlu0 %1055 }
 0x3c4   :  { %v1058_v63 = vpop.permute.xlu1 %1057 }
 0x3c5   :  { %v1065_v22 = vsel %vm614_vm5, %v1056_v7, %v1058_v63 }
 0x3c6   :  { %v1067_v33 = vmax.f32 %v1051_v8, %v1065_v22 }
 0x3c7   :  { %v1060_v0 = vpop.permute.xlu0 %1059 }
 0x3c8   :  { %v1064_v44 = vsel %vm614_vm5, %v1058_v63, %v1060_v0  ;;  %1071 = vrot.lane.b32.xlu0 %v1067_v33, %s2768_s29 }
 0x3c9   :  { %v1068_v12 = vmax.f32 %v1052_v54, %v1064_v44  ;;  %v1062_v13 = vpop.permute.xlu1 %1061 }
 0x3ca   :  { %v1063_v46 = vsel %vm614_vm5, %v1060_v0, %v1062_v13  ;;  %v1066_v1 = vsel %vm614_vm5, %v1062_v13, %v1056_v7  ;;  %vm1879_vm5 = vcmask 654912  }
 0x3cb   :  { %v1069_v2 = vmax.f32 %v1053_v59, %v1063_v46  ;;  %1073 = vrot.lane.b32.xlu1 %v1068_v12, %s2768_s29  ;;  %v1070_v3 = vmax.f32 %v1054_v28, %v1066_v1 }
 0x3cd   :  { %1075 = vrot.lane.b32.xlu0 %v1069_v2, %s2768_s29 }
 0x3cf   :  { %1077 = vrot.lane.b32.xlu1 %v1070_v3, %s2768_s29 }
 0x43a   :  { %v1072_v48 = vpop.permute.xlu0 %1071 }
 0x43d   :  { %v1074_v31 = vpop.permute.xlu1 %1073 }
 0x43e   :  { %v1081_v19 = vsel %vm730_vm4, %v1072_v48, %v1074_v31 }
 0x43f   :  { %v1083_v47 = vmax.f32 %v1067_v33, %v1081_v19  ;;  %v1076_v11 = vpop.permute.xlu0 %1075 }
 0x440   :  { %v1080_v17 = vsel %vm730_vm4, %v1074_v31, %v1076_v11 }
 0x441   :  { %1243 = vrot.lane.b32.xlu1 %v1083_v47, %s2776_s9  ;;  %1163 = vrot.lane.b32.xlu0 %v1083_v47, %s2777_s30  ;;  %v1084_v25 = vmax.f32 %v1068_v12, %v1080_v17  ;;  %v1078_v61 = vpop.permute.xlu1 %1077 }
 0x442   :  { %2544 = vmatmul.mubr.msk.f32.vlgmr.msra.gmra.mxu0 %vm210_vm2, %v1083_v47  ;;  %v1079_v10 = vsel %vm730_vm4, %v1076_v11, %v1078_v61  ;;  %v1082_v34 = vsel %vm730_vm4, %v1078_v61, %v1072_v48  ;;  %vm1799_vm4 = vcmask 589312  }
 0x443   :  { %2554 = vmatpush3.msra.mxu0 %v3221_v38  ;;  %2557 = vmatprep.mubr.msk.f32.mxu0 %vm2775_vm12, %v2774_v18  ;;  %v1085_v20 = vmax.f32 %v1069_v2, %v1079_v10  ;;  %v3275_v5 = vmax.f32 %v1070_v3, %v1082_v34 }
 0x444   :  { %2555 = vmatprep.subr.mxu0 %v2774_v18 }
 0x445   :  { %1323 = vrot.lane.b32.xlu0 %v1083_v47, %s2778_s15  ;;  %1482 = vrot.lane.b32.xlu1 %v1084_v25, %s2777_s30 }
 0x446   :  { %2556 = vmatpush3.msra.mxu0 %v3229_v62 }
 0x447   :  { %2567 = vmatprep.subr.mxu0 %v2774_v18 }
 0x449   :  { %1562 = vrot.lane.b32.xlu0 %v1084_v25, %s2776_s9  ;;  %1642 = vrot.lane.b32.xlu1 %v1084_v25, %s2778_s15 }
 0x44d   :  { %1881 = vrot.lane.b32.xlu1 %v1085_v20, %s2776_s9  ;;  %1801 = vrot.lane.b32.xlu0 %v1085_v20, %s2777_s30 }
 0x451   :  { %2120 = vrot.lane.b32.xlu1 %v3275_v5, %s2777_s30  ;;  %1961 = vrot.lane.b32.xlu0 %v1085_v20, %s2778_s15 }
 0x455   :  { %2280 = vrot.lane.b32.xlu1 %v3275_v5, %s2778_s15  ;;  %2200 = vrot.lane.b32.xlu0 %v3275_v5, %s2776_s9 }
 0x4b3   :  { %v1244_v35 = vpop.permute.xlu1 %1243  ;;  %v1164_v30 = vpop.permute.xlu0 %1163 }
 0x4b4   :  { %2551 = vmatmul.mubr.msk.f32.vlgmr.msra.gmra.mxu1 %vm210_vm2, %v1164_v30  ;;  %2558 = vmatmul.mubr.msk.f32.vlgmr.msra.gmra.mxu0 %vm210_vm2, %v1244_v35 }
 0x4b5   :  { %2561 = vmatpush3.msra.mxu1 %v3221_v38  ;;  %2568 = vmatpush3.msra.mxu0 %v3221_v38 }
 0x4b6   :  { %2562 = vmatprep.subr.mxu1 %v2774_v18  ;;  %2569 = vmatprep.subr.mxu0 %v2774_v18 }
 0x4b7   :  { %2570 = vmatpush3.msra.mxu0 %v3229_v62  ;;  %2571 = vmatprep.mubr.msk.f32.mxu0 %vm2775_vm12, %v2774_v18  ;;  %v1324_v55 = vpop.permute.xlu0 %1323  ;;  %v1483_v26 = vpop.permute.xlu1 %1482 }
 0x4b8   :  { %2563 = vmatpush3.msra.mxu1 %v3229_v62  ;;  %2564 = vmatprep.mubr.msk.f32.mxu1 %vm2775_vm12, %v2774_v18 }
 0x4b9   :  { %2565 = vmatmul.mubr.msk.f32.vlgmr.msra.gmra.mxu1 %vm210_vm2, %v1324_v55  ;;  %2572 = vmatmul.mubr.msk.f32.vlgmr.msra.gmra.mxu0 %vm210_vm2, %v1084_v25 }
 0x4ba   :  { %2574 = vmatprep.subr.mxu1 %v2774_v18  ;;  %2581 = vmatprep.subr.mxu0 %v2774_v18 }
 0x4bb   :  { %2575 = vmatpush3.msra.mxu1 %v3221_v38  ;;  %2582 = vmatpush3.msra.mxu0 %v3221_v38  ;;  %v1563_v6 = vpop.permute.xlu0 %1562  ;;  %v1643_v58 = vpop.permute.xlu1 %1642 }
 0x4bc   :  { %2576 = vmatprep.subr.mxu1 %v2774_v18  ;;  %2583 = vmatprep.subr.mxu0 %v2774_v18 }
 0x4bd   :  { %2577 = vmatpush3.msra.mxu1 %v3229_v62  ;;  %2578 = vmatprep.mubr.msk.f32.mxu1 %vm2775_vm12, %v2774_v18 }
 0x4be   :  { %2584 = vmatpush3.msra.mxu0 %v3229_v62  ;;  %2585 = vmatprep.mubr.msk.f32.mxu0 %vm2775_vm12, %v2774_v18 }
 0x4bf   :  { %2579 = vmatmul.mubr.msk.f32.vlgmr.msra.gmra.mxu1 %vm210_vm2, %v1483_v26  ;;  %2586 = vmatmul.mubr.msk.f32.vlgmr.msra.gmra.mxu0 %vm210_vm2, %v1563_v6  ;;  %v1882_v29 = vpop.permute.xlu1 %1881  ;;  %v1802_v32 = vpop.permute.xlu0 %1801 }
 0x4c0   :  { %2588 = vmatprep.subr.mxu1 %v2774_v18  ;;  %2595 = vmatprep.subr.mxu0 %v2774_v18 }
 0x4c1   :  { %2589 = vmatpush3.msra.mxu1 %v3221_v38  ;;  %2596 = vmatpush3.msra.mxu0 %v3221_v38 }
 0x4c2   :  { %2590 = vmatprep.subr.mxu1 %v2774_v18  ;;  %2597 = vmatprep.subr.mxu0 %v2774_v18 }
 0x4c3   :  { %2591 = vmatpush3.msra.mxu1 %v3229_v62  ;;  %2592 = vmatprep.mubr.msk.f32.mxu1 %vm2775_vm12, %v2774_v18  ;;  %v1962_v36 = vpop.permute.xlu0 %1961  ;;  %v2121_v4 = vpop.permute.xlu1 %2120 }
 0x4c4   :  { %2598 = vmatpush3.msra.mxu0 %v3229_v62  ;;  %2599 = vmatprep.mubr.msk.f32.mxu0 %vm2775_vm12, %v2774_v18 }
 0x4c5   :  { %2593 = vmatmul.mubr.msk.f32.vlgmr.msra.gmra.mxu1 %vm210_vm2, %v1643_v58  ;;  %2600 = vmatmul.mubr.msk.f32.vlgmr.msra.gmra.mxu0 %vm210_vm2, %v1085_v20 }
 0x4c6   :  { %2602 = vmatprep.subr.mxu1 %v2774_v18  ;;  %2609 = vmatprep.subr.mxu0 %v2774_v18 }
 0x4c7   :  { %2603 = vmatpush3.msra.mxu1 %v3221_v38  ;;  %2610 = vmatpush3.msra.mxu0 %v3221_v38  ;;  %v2201_v37 = vpop.permute.xlu0 %2200  ;;  %v2281_v39 = vpop.permute.xlu1 %2280 }
 0x4c8   :  { %2604 = vmatprep.subr.mxu1 %v2774_v18  ;;  %2611 = vmatprep.subr.mxu0 %v2774_v18 }
 0x4c9   :  { %2605 = vmatpush3.msra.mxu1 %v3229_v62  ;;  %2606 = vmatprep.mubr.msk.f32.mxu1 %vm2775_vm12, %v2774_v18 }
 0x4ca   :  { %2612 = vmatpush3.msra.mxu0 %v3229_v62  ;;  %2613 = vmatprep.mubr.msk.f32.mxu0 %vm2775_vm12, %v2774_v18 }
 0x4cb   :  { %2607 = vmatmul.mubr.msk.f32.vlgmr.msra.gmra.mxu1 %vm210_vm2, %v1802_v32  ;;  %2614 = vmatmul.mubr.msk.f32.vlgmr.msra.gmra.mxu0 %vm210_vm2, %v1882_v29 }
 0x4cc   :  { %2616 = vmatprep.subr.mxu1 %v2774_v18  ;;  %2623 = vmatprep.subr.mxu0 %v2774_v18 }
 0x4cd   :  { %2617 = vmatpush3.msra.mxu1 %v3221_v38  ;;  %2624 = vmatpush3.msra.mxu0 %v3221_v38 }
 0x4ce   :  { %2618 = vmatprep.subr.mxu1 %v2774_v18  ;;  %2625 = vmatprep.subr.mxu0 %v2774_v18 }
 0x4cf   :  { %2619 = vmatpush3.msra.mxu1 %v3229_v62  ;;  %2620 = vmatprep.mubr.msk.f32.mxu1 %vm2775_vm12, %v2774_v18 }
 0x4d0   :  { %2626 = vmatpush3.msra.mxu0 %v3229_v62  ;;  %2627 = vmatprep.mubr.msk.f32.mxu0 %vm2775_vm12, %v2774_v18 }
 0x4d1   :  { %2621 = vmatmul.mubr.msk.f32.vlgmr.msra.gmra.mxu1 %vm210_vm2, %v1962_v36  ;;  %2628 = vmatmul.mubr.msk.f32.vlgmr.msra.gmra.mxu0 %vm210_vm2, %v3275_v5 }
 0x4d2   :  { %2630 = vmatprep.subr.mxu1 %v2774_v18  ;;  %2637 = vmatprep.subr.mxu0 %v2774_v18 }
 0x4d3   :  { %2631 = vmatpush3.msra.mxu1 %v3221_v38  ;;  %2638 = vmatpush3.msra.mxu0 %v3221_v38 }
 0x4d4   :  { %2632 = vmatprep.subr.mxu1 %v2774_v18  ;;  %2639 = vmatprep.subr.mxu0 %v2774_v18 }
 0x4d5   :  { %2633 = vmatpush3.msra.mxu1 %v3229_v62  ;;  %2634 = vmatprep.mubr.msk.f32.mxu1 %vm2775_vm12, %v2774_v18 }
 0x4d6   :  { %2640 = vmatpush3.msra.mxu0 %v3229_v62  ;;  %2641 = vmatprep.mubr.msk.f32.mxu0 %vm2775_vm12, %v2774_v18 }
 0x4d7   :  { %2635 = vmatmul.mubr.msk.f32.vlgmr.msra.gmra.mxu1 %vm210_vm2, %v2121_v4  ;;  %2642 = vmatmul.mubr.msk.f32.vlgmr.msra.gmra.mxu0 %vm210_vm2, %v2201_v37 }
 0x4d8   :  { %2644 = vmatprep.subr.mxu1 %v2774_v18  ;;  %2648 = vmatprep.mubr.msk.f32.mxu1 %vm2775_vm12, %v2774_v18 }
 0x4d9   :  { %2645 = vmatpush3.msra.mxu1 %v3221_v38 }
 0x4da   :  { %2646 = vmatprep.subr.mxu1 %v2774_v18 }
 0x4db   :  { %2647 = vmatpush3.msra.mxu1 %v3229_v62 }
 0x4dc   :  { %2649 = vmatmul.mubr.msk.f32.vlgmr.msra.gmra.mxu1 %vm210_vm2, %v2281_v39  ;;  %vm1640_vm2 = vcmask 458112  }
 0x502   :  { %v1158_v42 = vpop.f32.mrf.mxu0 }
 0x503   :  { %1162 = vst.msk [vmem:[#allocation8] sm:$0xff] %vm88_vm1, %v1158_v42  ;;  %vm1560_vm1 = vcmask 392512  }
 0x504   :  { %v2545_v40 = vpop.f32.mrf.mxu0 }
 0x574   :  { %v1233_v15 = vpop.f32.mrf.mxu1  ;;  %v1313_v45 = vpop.f32.mrf.mxu0 }
 0x575   :  { %1318 = vrot.lane.b32.xlu1 %v1313_v45, %s2773_s14  ;;  %1238 = vrot.lane.b32.xlu0 %v1233_v15, %s2779_s16  ;;  %s2783_s14 = smov 56  }
 0x576   :  { %v2552_v41 = vpop.f32.mrf.mxu1  ;;  %v2559_v23 = vpop.f32.mrf.mxu0 }
 0x579   :  { %v1393_v21 = vpop.f32.mrf.mxu1  ;;  %v1472_v51 = vpop.f32.mrf.mxu0 }
 0x57a   :  { %1477 = vrot.lane.b32.xlu1 %v1472_v51, %s2778_s15  ;;  %1398 = vrot.lane.b32.xlu0 %v1393_v21, %s2780_s8 }
 0x57b   :  { %v2566_v24 = vpop.f32.mrf.mxu1  ;;  %v2573_v9 = vpop.f32.mrf.mxu0 }
 0x57f   :  { %v1552_v14 = vpop.f32.mrf.mxu1  ;;  %v1632_v49 = vpop.f32.mrf.mxu0 }
 0x580   :  { %1557 = vrot.lane.b32.xlu0 %v1552_v14, %s2781_s17  ;;  %1637 = vrot.lane.b32.xlu1 %v1632_v49, %s2782_s18 }
 0x581   :  { %v2580_v8 = vpop.f32.mrf.mxu1  ;;  %v2587_v50 = vpop.f32.mrf.mxu0 }
 0x585   :  { %v1712_v53 = vpop.f32.mrf.mxu1  ;;  %v1791_v54 = vpop.f32.mrf.mxu0 }
 0x586   :  { %1717 = vrot.lane.b32.xlu0 %v1712_v53, %s2783_s14  ;;  %1796 = vrot.lane.b32.xlu1 %v1791_v54, %s2776_s9 }
 0x587   :  { %v2594_v43 = vpop.f32.mrf.mxu1  ;;  %v2601_v56 = vpop.f32.mrf.mxu0 }
 0x58b   :  { %v1871_v57 = vpop.f32.mrf.mxu1  ;;  %v1951_v52 = vpop.f32.mrf.mxu0 }
 0x58c   :  { %1956 = vrot.lane.b32.xlu1 %v1951_v52, %s2784_s19  ;;  %1876 = vrot.lane.b32.xlu0 %v1871_v57, %s2785_s20 }
 0x58d   :  { %v2608_v59 = vpop.f32.mrf.mxu1  ;;  %v2615_v60 = vpop.f32.mrf.mxu0 }
 0x591   :  { %v2031_v27 = vpop.f32.mrf.mxu1  ;;  %v2110_v28 = vpop.f32.mrf.mxu0 }
 0x592   :  { %2115 = vrot.lane.b32.xlu1 %v2110_v28, %s2777_s30  ;;  %2036 = vrot.lane.b32.xlu0 %v2031_v27, %s2786_s21 }
 0x593   :  { %v2622_v16 = vpop.f32.mrf.mxu1  ;;  %v2629_v18 = vpop.f32.mrf.mxu0 }
 0x597   :  { %v2190_v38 = vpop.f32.mrf.mxu1  ;;  %v2270_v62 = vpop.f32.mrf.mxu0 }
 0x598   :  { %2195 = vrot.lane.b32.xlu0 %v2190_v38, %s2787_s22  ;;  %2275 = vrot.lane.b32.xlu1 %v2270_v62, %s2768_s29  ;;  %s2789_s29 = smov [#allocation8]  }
 0x599   :  { %v2636_v7 = vpop.f32.mrf.mxu1  ;;  %v2643_v63 = vpop.f32.mrf.mxu0  ;;  %s2366_s1 = sshll.u32 %s2789_s29, 4  ;;  %s2367_s1 = int_to_ptr.vmem [resolvable:$true] %s2366_s1 }
 0x59a   :  { %s2737_s23 = scalar_lea.vmem %s2367_s1, 128  ;;  %p2742_p11 = scmp.lt.s32.totalorder %s2367_s1, %s2367_s1 }
 0x59b   :  { %p2738_p10 = scmp.ne.s32.totalorder %s2367_s1, %s2737_s23  ;;  %p2743_p12 = scmp.lt.s32.totalorder %s2737_s23, %s2737_s23 }
 0x59c   :  { %v2350_v22 = vpop.f32.mrf.mxu1 }
 0x59d   :  { %2355 = vrot.lane.b32.xlu0 %v2350_v22, %s2788_s0  ;;  %p2744_p13 = por %p2743_p12, %p2742_p11 }
 0x59e   :  { %v2650_v33 = vpop.f32.mrf.mxu1 }
 0x59f   :  { %p2745_p0 = pnand %p2744_p13, %p2738_p10 }
 0x5e7   :  { %v1319_v0 = vpop.permute.xlu1 %1318  ;;  %v1239_v44 = vpop.permute.xlu0 %1238 }
 0x5e8   :  { %1242 = vst.msk [vmem:[#allocation8] sm:$0xff] %vm1241_vm13, %v1239_v44 }
 0x5e9   :  { %1322 = vst.msk [vmem:[#allocation8] sm:$0xff] %vm1321_vm14, %v1319_v0 }
 0x5ec   :  { %v1478_v12 = vpop.permute.xlu1 %1477  ;;  %v1399_v13 = vpop.permute.xlu0 %1398 }
 0x5ed   :  { %1402 = vst.msk [vmem:[#allocation8] sm:$0xff] %vm1401_vm15, %v1399_v13 }
 0x5ee   :  { %1481 = vst.msk [vmem:[#allocation8] sm:$0xff] %vm1480_vm0, %v1478_v12 }
 0x5f2   :  { %v1638_v46 = vpop.permute.xlu1 %1637  ;;  %v1558_v1 = vpop.permute.xlu0 %1557 }
 0x5f3   :  { %1561 = vst.msk [vmem:[#allocation8] sm:$0xff] %vm1560_vm1, %v1558_v1 }
 0x5f4   :  { %1641 = vst.msk [vmem:[#allocation8] sm:$0xff] %vm1640_vm2, %v1638_v46 }
 0x5f8   :  { %v1797_v2 = vpop.permute.xlu1 %1796  ;;  %v1718_v3 = vpop.permute.xlu0 %1717 }
 0x5f9   :  { %1721 = vst.msk [vmem:[#allocation8] sm:$0xff] %vm1720_vm3, %v1718_v3 }
 0x5fa   :  { %1800 = vst.msk [vmem:[#allocation8] sm:$0xff] %vm1799_vm4, %v1797_v2 }
 0x5fe   :  { %v1957_v48 = vpop.permute.xlu1 %1956  ;;  %v1877_v31 = vpop.permute.xlu0 %1876 }
 0x5ff   :  { %1880 = vst.msk [vmem:[#allocation8] sm:$0xff] %vm1879_vm5, %v1877_v31 }
 0x600   :  { %1960 = vst.msk [vmem:[#allocation8] sm:$0xff] %vm1959_vm6, %v1957_v48 }
 0x604   :  { %v2116_v19 = vpop.permute.xlu1 %2115  ;;  %v2037_v47 = vpop.permute.xlu0 %2036 }
 0x605   :  { %2040 = vst.msk [vmem:[#allocation8] sm:$0xff] %vm2039_vm7, %v2037_v47 }
 0x606   :  { %2119 = vst.msk [vmem:[#allocation8] sm:$0xff] %vm2118_vm8, %v2116_v19 }
 0x60a   :  { %v2276_v11 = vpop.permute.xlu1 %2275  ;;  %v2196_v17 = vpop.permute.xlu0 %2195 }
 0x60b   :  { %2199 = vst.msk [vmem:[#allocation8] sm:$0xff] %vm2198_vm9, %v2196_v17 }
 0x60c   :  { %2279 = vst.msk [vmem:[#allocation8] sm:$0xff] %vm2278_vm10, %v2276_v11 }
 0x60f   :  { %v2356_v25 = vpop.permute.xlu0 %2355 }
 0x610   :  { %2359 = vst.msk [vmem:[#allocation8] sm:$0xff] %vm2358_vm11, %v2356_v25 }
 0x611   :  { %2748 = shalt.err (!%p2745_p0)
}
 0x612   :  { %2369 = dma.vmem_to_hbm [thread:$0]  %s2367_s1, 128, %s3395_s10, [#allocation5]  }
 0x613   :  { %2761 = dma.done.wait [#allocation5], 128  }
 0x614   :  { %2762 = vsyncadd [#allocation5], 4294967168 }
 0x615   :  { %2373 = vsyncpa [#allocation4], 1 }
 0x616   :  { %2374 = vsyncpa [#allocation7], 1 }
 0x617   :  { %2375 = vsyncpa [#allocation5], 1 }

// kernel: tpu_custom_call.1
= control target key start
LH: loop header
LB: loop body
LE: loop exit
PB: predicated region body
PF: predicated region fallthrough
CT: control target
= control target key end

     0   :  { %15 = vsyncpa [#allocation4], 0  ;;  %s3385_s0 = inlined_call_operand.hbm [shape: f32[8,512], index: 0, kind: input, shape index: {}]   ;;  %s3386_s1 = inlined_call_operand.hbm [shape: f32[8,512], index: 1, kind: input, shape index: {}]   ;;  %s3387_s2 = inlined_call_operand.vmem [shape: f32[9,512], index: 2, kind: input, shape index: {}]   ;;  %s3388_s3 = inlined_call_operand.vmem [shape: bf16[16,8], index: 3, kind: input, shape index: {}]   ;;  %s3389_s4 = inlined_call_operand.vmem [shape: f32[16,1], index: 4, kind: input, shape index: {}]   ;;  %s3390_s5 = inlined_call_operand.vmem [shape: bf16[8,16], index: 5, kind: input, shape index: {}]   ;;  %s3391_s6 = inlined_call_operand.vmem [shape: f32[8,1], index: 6, kind: input, shape index: {}]   ;;  %s3392_s7 = inlined_call_operand.vmem [shape: bf16[8,72], index: 7, kind: input, shape index: {}]   ;;  %s3393_s8 = inlined_call_operand.vmem [shape: f32[8,1], index: 8, kind: input, shape index: {}]   ;;  %s3394_s9 = inlined_call_operand.vmem [shape: f32[16,8], index: 9, kind: input, shape index: {}]   ;;  %s3395_s10 = inlined_call_operand.hbm [shape: f32[8,128], index: 10, kind: output, shape index: {}]  }
   0x1   :  { %16 = vsyncpa [#allocation7], 0 }
   0x2   :  { %17 = vsyncpa [#allocation5], 0  ;;  %s2763_s13 = smov [#allocation3]   ;;  %s2764_s15 = smov [#allocation6]  }
   0x3   :  { %s24_s14 = sshll.u32 %s2763_s13, 4  ;;  %s34_s16 = sshll.u32 %s2764_s15, 4  ;;  %s25_s14 = int_to_ptr.vmem [resolvable:$true] %s24_s14  ;;  %s35_s16 = int_to_ptr.vmem [resolvable:$true] %s34_s16 }
   0x4   :  { %s2705_s17 = scalar_lea.vmem %s25_s14, 512  ;;  %p2710_p1 = scmp.lt.s32.totalorder %s25_s14, %s25_s14 }
   0x5   :  { %p2706_p0 = scmp.ne.s32.totalorder %s25_s14, %s2705_s17  ;;  %p2711_p2 = scmp.lt.s32.totalorder %s2705_s17, %s2705_s17 }
   0x7   :  { %p2712_p3 = por %p2711_p2, %p2710_p1 }
   0x9   :  { %p2713_p4 = pnand %p2712_p3, %p2706_p0 }
   0xb   :  { %2716 = shalt.err (!%p2713_p4)
}
   0xc   :  { %27 = dma.hbm_to_vmem [thread:$0]  %s3385_s0, 512, %s25_s14, [#allocation4]  }
   0xd   :  { %s2725_s20 = scalar_lea.vmem %s35_s16, 512  ;;  %p2730_p6 = scmp.lt.s32.totalorder %s35_s16, %s35_s16 }
   0xe   :  { %p2726_p5 = scmp.ne.s32.totalorder %s35_s16, %s2725_s20  ;;  %p2731_p7 = scmp.lt.s32.totalorder %s2725_s20, %s2725_s20 }
  0x10   :  { %p2732_p8 = por %p2731_p7, %p2730_p6 }
  0x12   :  { %p2733_p9 = pnand %p2732_p8, %p2726_p5 }
  0x14   :  { %2736 = shalt.err (!%p2733_p9)
}
  0x15   :  { %37 = dma.hbm_to_vmem [thread:$0]  %s3386_s1, 512, %s35_s16, [#allocation7]  }
  0x16   :  { %2757 = dma.done.wait [#allocation4], 512  }
  0x17   :  { %2758 = vsyncadd [#allocation4], 4294966784 }
  0x18   :  { %2759 = dma.done.wait [#allocation7], 512  }
  0x19   :  { %2760 = vsyncadd [#allocation7], 4294966784  ;;  %v2765_v0 = vmov 0   ;;  %v62_v1 = vld [vmem:[#allocation3 + $0x8] sm:$0xff]  ;;  %vm92_vm0 = vcmask 1043456   ;;  %v64_v2 = vld [vmem:[#allocation3 + $0x18] sm:$0xff] }
  0x1a   :  { %137 = vmatprep.mubr.bf16.mxu0 %v2765_v0  ;;  %180 = vmatprep.mubr.bf16.mxu1 %v2765_v0  ;;  %v61_v3 = vld [vmem:[#allocation3] sm:$0xff]  ;;  %v66_v4 = vpack.c.bf16 %v62_v1, %v62_v1  ;;  %v68_v5 = vpack.c.bf16 %v64_v2, %v64_v2  ;;  %v63_v7 = vld [vmem:[#allocation3 + $0x10] sm:$0xff]  ;;  %vm88_vm1 = vcmask 64512   ;;  %v72_v13 = vld [vmem:[%s3389_s4 + $0x8] sm:$0xff]  ;;  %vm210_vm2 = vcmask 130048   ;;  %s2767_s28 = smov 113  }
  0x1b   :  { %2678 = vset.pattern.permute.xlu0 %v2765_v0  ;;  %2679 = vset.pattern.permute.xlu1 %v2765_v0  ;;  %v65_v6 = vpack.c.bf16 %v61_v3, %v61_v3  ;;  %v67_v8 = vpack.c.bf16 %v63_v7, %v63_v7  ;;  %v71_v9 = vld [vmem:[%s3389_s4] sm:$0xff]  ;;  %s2768_s29 = smov 112   ;;  %s2769_s30 = smov 127   ;;  %vm953_vm11 = vcmask 588800   ;;  %vm2775_vm12 = vmmov 0  }
  0x1c   :  { %2377 = vmatprep.subr.msk.bf16.mxu0 %vm92_vm0, %v66_v4  ;;  %2379 = vmatprep.subr.msk.bf16.mxu1 %vm92_vm0, %v68_v5  ;;  %v2680_v11 = vld [vmem:[%s3388_s3] sm:$0xff]   ;;  %v322_v5 = vld [vmem:[#allocation6 + $0x10] sm:$0xff]  ;;  %s2770_s11 = smov 15   ;;  %s2771_s12 = smov 1   ;;  %vm1241_vm13 = vcmask 130112   ;;  %vm1321_vm14 = vcmask 195712  }
  0x1d   :  { %v94_v10 = vsel %vm92_vm0, %v65_v6, 0  ;;  %v100_v12 = vsel %vm92_vm0, %v67_v8, 0  ;;  %75 = vperm.xlu0 %2678, %v71_v9   ;;  %v204_v14 = vld [vmem:[%s3391_s6] sm:$0xff]  ;;  %s2772_s13 = smov 17   ;;  %s2773_s14 = smov 16   ;;  %vm1401_vm15 = vcmask 261312  }
  0x1e   :  { %120 = vmatpush1.bf16.msra.mxu0 %v94_v10  ;;  %163 = vmatpush1.bf16.msra.mxu1 %v100_v12  ;;  %v199_v45 = vld [vmem:[%s3390_s5] sm:$0xf]  ;;  %s2766_s5 = smov 111   ;;  %s2778_s15 = smov 32  }
  0x1f   :  { %207 = vperm.xlu1 %2679, %v204_v14   ;;  %v320_v3 = vld [vmem:[#allocation6] sm:$0xff]  ;;  %v321_v14 = vld [vmem:[#allocation6 + $0x8] sm:$0xff]  ;;  %s2779_s16 = smov 8   ;;  %s2781_s17 = smov 40  }
  0x20   :  { %s2782_s18 = smov 48   ;;  %s2784_s19 = smov 80  }
  0x21   :  { %2378 = vmatmul.mubr.msk.bf16.vlgmr.msra.gmra.mxu0 %vm88_vm1, %v2680_v11  ;;  %2380 = vmatmul.mubr.msk.bf16.vlgmr.msra.gmra.mxu1 %vm88_vm1, %v2680_v11  ;;  %s2785_s20 = smov 72   ;;  %s2786_s21 = smov 88  }
  0x22   :  { %80 = vperm.xlu0 %2678, %v72_v13   ;;  %246 = vmatprep.mubr.bf16.mxu0 %v2765_v0  ;;  %s2787_s22 = smov 104   ;;  %s2788_s0 = smov 120  }
  0x23   :  { %287 = vmatprep.mubr.bf16.mxu1 %v2765_v0 }
  0x98   :  { %v76_v15 = vpop.permute.xlu0 %75 }
  0x9a   :  { %v208_v46 = vpop.permute.xlu1 %207 }
  0x9d   :  { %v81_v20 = vpop.permute.xlu0 %80 }
  0xe1   :  { %v139_v16 = vpop.f32.mrf.mxu0  ;;  %v182_v17 = vpop.f32.mrf.mxu1 }
  0xe2   :  { %v140_v25 = vadd.f32 %v139_v16, %v76_v15  ;;  %v183_v29 = vadd.f32 %v182_v17, %v76_v15  ;;  %v323_v17 = vld [vmem:[#allocation6 + $0x18] sm:$0xff] }
  0xe3   :  { %v141_v18 = vpop.f32.mrf.mxu0  ;;  %v184_v19 = vpop.f32.mrf.mxu1 }
  0xe4   :  { %v142_v22 = vadd.f32 %v141_v18, %v76_v15  ;;  %v185_v26 = vadd.f32 %v184_v19, %v76_v15  ;;  %v191_v37 = vmax.f32 %v140_v25, 0.0  ;;  %v193_v40 = vmax.f32 %v183_v29, 0.0  ;;  %v857_v19 = vld [vmem:[%s3393_s8] sm:$0xff]  ;;  %s2780_s8 = smov 24  }
  0xe5   :  { %v143_v21 = vpop.f32.mrf.mxu0  ;;  %v186_v24 = vpop.f32.mrf.mxu1 }
  0xe6   :  { %v144_v23 = vadd.f32 %v143_v21, %v81_v20  ;;  %v187_v27 = vadd.f32 %v186_v24, %v81_v20  ;;  %v192_v34 = vmax.f32 %v142_v22, 0.0  ;;  %v194_v38 = vmax.f32 %v185_v26, 0.0 }
  0xe7   :  { %v145_v28 = vpop.f32.mrf.mxu0  ;;  %v188_v31 = vpop.f32.mrf.mxu1  ;;  %v336_v26 = vlaneseq }
  0xe8   :  { %v146_v30 = vadd.f32 %v145_v28, %v81_v20  ;;  %v195_v32 = vmax.f32 %v144_v23, 0.0  ;;  %v189_v33 = vadd.f32 %v188_v31, %v81_v20  ;;  %v197_v35 = vmax.f32 %v187_v27, 0.0 }
  0xe9   :  { %v346_v29 = vshrl.u32 %v336_v26, 7 }
  0xea   :  { %v196_v36 = vmax.f32 %v146_v30, 0.0  ;;  %v198_v39 = vmax.f32 %v189_v33, 0.0  ;;  %v200_v42 = vpack.c.bf16 %v195_v32, %v191_v37  ;;  %v202_v44 = vpack.c.bf16 %v197_v35, %v193_v40  ;;  %v2410_v32 = vld [vmem:[%s3387_s2 + $0x20] ss:$8 sm:$0xf] }
  0xeb   :  { %v2953_v30 = vand.u32 127, %v336_v26  ;;  %v2964_v35 = vsub.s32 1, %v346_v29  ;;  %v2971_v40 = vsub.s32 2, %v346_v29 }
  0xec   :  { %v201_v41 = vpack.c.bf16 %v196_v36, %v192_v34  ;;  %v203_v43 = vpack.c.bf16 %v198_v39, %v194_v38  ;;  %v2962_v34 = vsub.s32 0, %v346_v29 }
  0xed   :  { %vm788_vm3 = vcmp.lt.s32.totalorder %v2953_v30, 111  ;;  %v803_v37 = vrot.slane %v2410_v32, %v2964_v35  ;;  %vm730_vm4 = vcmp.lt.s32.totalorder %v2953_v30, 112  ;;  %vm614_vm5 = vcmp.lt.s32.totalorder %v2953_v30, 127 }
  0xee   :  { %228 = vmatprep.subr.bf16.mxu0 %v201_v41  ;;  %269 = vmatprep.subr.bf16.mxu1 %v203_v43  ;;  %v799_v36 = vrot.slane %v2410_v32, %v2962_v34  ;;  %v2973_v41 = vsub.s32 3, %v346_v29  ;;  %vm672_vm6 = vcmp.lt.s32.totalorder %v2953_v30, 113  ;;  %vm453_vm7 = vcmp.lt.s32.totalorder %v2953_v30, 15 }
  0xef   :  { %229 = vmatpush1.bf16.msra.mxu0 %v200_v42  ;;  %270 = vmatpush1.bf16.msra.mxu1 %v202_v44  ;;  %vm511_vm8 = vcmp.lt.s32.totalorder %v2953_v30, 1  ;;  %vm338_vm9 = vcmp.lt.s32.totalorder %v2953_v30, 17  ;;  %vm395_vm10 = vcmp.lt.s32.totalorder %v2953_v30, 16 }
  0xf2   :  { %2381 = vmatmul.mubr.msk.bf16.vlgmr.msra.gmra.mxu0 %vm210_vm2, %v199_v45  ;;  %2382 = vmatmul.mubr.msk.bf16.vlgmr.msra.gmra.mxu1 %vm210_vm2, %v199_v45 }
  0xf3   :  { %1001 = vmatprep.mubr.bf16.mxu0 %v2765_v0  ;;  %1042 = vmatprep.mubr.bf16.mxu1 %v2765_v0 }
 0x1b2   :  { %v248_v47 = vpop.f32.mrf.mxu0  ;;  %v289_v49 = vpop.f32.mrf.mxu1 }
 0x1b3   :  { %v249_v48 = vadd.f32 %v248_v47, %v208_v46  ;;  %v290_v50 = vadd.f32 %v289_v49, %v208_v46  ;;  %v811_v47 = vrot.slane %v2410_v32, %v2973_v41 }
 0x1b4   :  { %v250_v51 = vpop.f32.mrf.mxu0  ;;  %v291_v53 = vpop.f32.mrf.mxu1 }
 0x1b5   :  { %v2383_v52 = vmul.f32 -1.442695, %v249_v48  ;;  %v2385_v54 = vmul.f32 -1.442695, %v290_v50  ;;  %v251_v59 = vadd.f32 %v250_v51, %v208_v46  ;;  %v292_v61 = vadd.f32 %v291_v53, %v208_v46 }
 0x1b6   :  { %v252_v55 = vpop.f32.mrf.mxu0  ;;  %v293_v56 = vpop.f32.mrf.mxu1  ;;  %v807_v46 = vrot.slane %v2410_v32, %v2971_v40 }
 0x1b7   :  { %2681 = vpow2.f32 %v2383_v52  ;;  %v2384_v60 = vmul.f32 -1.442695, %v251_v59  ;;  %v2386_v2 = vmul.f32 -1.442695, %v292_v61 }
 0x1b8   :  { %2683 = vpow2.f32 %v2385_v54  ;;  %v253_v57 = vpop.f32.mrf.mxu0  ;;  %v294_v58 = vpop.f32.mrf.mxu1 }
 0x1b9   :  { %2685 = vpow2.f32 %v2384_v60  ;;  %v2398_v57 = vld [vmem:[%s3387_s2 + $0x4] ss:$8 sm:$0xf] }
 0x1c4   :  { %v2682_v62 = vpop.eup %2681 }
 0x1c5   :  { %v2684_v63 = vpop.eup %2683  ;;  %v308_v0 = vadd.f32 1.0, %v2682_v62  ;;  %v575_v62 = vrot.slane %v2398_v57, %v2971_v40 }
 0x1c6   :  { %v310_v1 = vadd.f32 1.0, %v2684_v63  ;;  %v2686_v4 = vpop.eup %2685  ;;  %v567_v63 = vrot.slane %v2398_v57, %v2962_v34 }
 0x1c7   :  { %2687 = vrcp.f32 %v308_v0  ;;  %v309_v10 = vadd.f32 1.0, %v2686_v4  ;;  %v571_v0 = vrot.slane %v2398_v57, %v2964_v35 }
 0x1c8   :  { %2689 = vrcp.f32 %v310_v1 }
 0x1c9   :  { %2691 = vpow2.f32 %v2386_v2  ;;  %v579_v2 = vrot.slane %v2398_v57, %v2973_v41 }
 0x1ca   :  { %2693 = vrcp.f32 %v309_v10  ;;  %v3018_v10 = vld [vmem:[%s3387_s2 + $0x2] ss:$8 sm:$0xf] }
 0x1d4   :  { %v2688_v6 = vpop.eup %2687 }
 0x1d5   :  { %v2690_v7 = vpop.eup %2689  ;;  %v2882_v8 = vmul.f32 %v2688_v6, %v320_v3  ;;  %v3003_v3 = vld [vmem:[%s3387_s2 + $0x7] ss:$8 sm:$0xf] }
 0x1d6   :  { %v2884_v9 = vmul.f32 %v2690_v7, %v322_v5  ;;  %v2692_v11 = vpop.eup %2691  ;;  %v3010_v5 = vld [vmem:[%s3387_s2 + $0x5] ss:$8 sm:$0xf]  ;;  %v741_v32 = vrot.slane %v3003_v3, %v2962_v34 }
 0x1d7   :  { %780 = vrot.lane.b32.xlu1 %v2882_v8, %s2766_s5  ;;  %v311_v12 = vadd.f32 1.0, %v2692_v11  ;;  %v2694_v13 = vpop.eup %2693  ;;  %v2404_v11 = vld [vmem:[%s3387_s2 + $0x6] ss:$8 sm:$0xf] }
 0x1d8   :  { %668 = vrot.lane.b32.xlu0 %v2884_v9, %s2767_s28  ;;  %v2902_v15 = vmul.f32 %v2694_v13, %v321_v14  ;;  %v3013_v7 = vmul.f32 %v575_v62, %v2884_v9  ;;  %v753_v14 = vrot.slane %v3003_v3, %v2973_v41  ;;  %v683_v26 = vrot.slane %v2404_v11, %v2962_v34 }
 0x1d9   :  { %2695 = vrcp.f32 %v311_v12  ;;  %v3024_v12 = vmul.f32 %v567_v63, %v2882_v8  ;;  %v687_v29 = vrot.slane %v2404_v11, %v2964_v35 }
 0x1da   :  { %v3027_v13 = vmul.f32 %v571_v0, %v2902_v15  ;;  %v625_v0 = vrot.slane %v3010_v5, %v2962_v34 }
 0x1db   :  { %784 = vrot.lane.b32.xlu1 %v2884_v9, %s2766_s5 }
 0x1dc   :  { %726 = vrot.lane.b32.xlu0 %v2884_v9, %s2768_s29 }
 0x1df   :  { %664 = vrot.lane.b32.xlu1 %v2882_v8, %s2767_s28 }
 0x1e0   :  { %722 = vrot.lane.b32.xlu0 %v2882_v8, %s2768_s29 }
 0x1e3   :  { %606 = vrot.lane.b32.xlu1 %v2882_v8, %s2769_s30 }
 0x1e4   :  { %610 = vrot.lane.b32.xlu0 %v2884_v9, %s2769_s30 }
 0x1e6   :  { %v2696_v16 = vpop.eup %2695 }
 0x1e7   :  { %445 = vrot.lane.b32.xlu1 %v2882_v8, %s2770_s11  ;;  %v2906_v18 = vmul.f32 %v2696_v16, %v323_v17 }
 0x1e8   :  { %507 = vrot.lane.b32.xlu0 %v2884_v9, %s2771_s12 }
 0x1e9   :  { %v3035_v16 = vmul.f32 %v579_v2, %v2906_v18 }
 0x1eb   :  { %503 = vrot.lane.b32.xlu1 %v2882_v8, %s2771_s12 }
 0x1ec   :  { %782 = vrot.lane.b32.xlu0 %v2902_v15, %s2766_s5 }
 0x1ef   :  { %449 = vrot.lane.b32.xlu1 %v2884_v9, %s2770_s11 }
 0x1f0   :  { %786 = vrot.lane.b32.xlu0 %v2906_v18, %s2766_s5 }
 0x1f3   :  { %328 = vrot.lane.b32.xlu1 %v2882_v8, %s2772_s13 }
 0x1f4   :  { %728 = vrot.lane.b32.xlu0 %v2906_v18, %s2768_s29 }
 0x1f7   :  { %387 = vrot.lane.b32.xlu1 %v2882_v8, %s2773_s14  ;;  %v633_v8 = vrot.slane %v3010_v5, %v2971_v40 }
 0x1f8   :  { %612 = vrot.lane.b32.xlu0 %v2906_v18, %s2769_s30 }
 0x1fb   :  { %666 = vrot.lane.b32.xlu1 %v2902_v15, %s2767_s28 }
 0x1fc   :  { %447 = vrot.lane.b32.xlu0 %v2902_v15, %s2770_s11 }
 0x1ff   :  { %724 = vrot.lane.b32.xlu1 %v2902_v15, %s2768_s29 }
 0x200   :  { %505 = vrot.lane.b32.xlu0 %v2902_v15, %s2771_s12 }
 0x203   :  { %670 = vrot.lane.b32.xlu1 %v2906_v18, %s2767_s28 }
 0x204   :  { %509 = vrot.lane.b32.xlu0 %v2906_v18, %s2771_s12 }
 0x207   :  { %608 = vrot.lane.b32.xlu1 %v2902_v15, %s2769_s30 }
 0x208   :  { %330 = vrot.lane.b32.xlu0 %v2902_v15, %s2772_s13 }
 0x20b   :  { %451 = vrot.lane.b32.xlu1 %v2906_v18, %s2770_s11 }
 0x20c   :  { %389 = vrot.lane.b32.xlu0 %v2902_v15, %s2773_s14  ;;  %v637_v15 = vrot.slane %v3010_v5, %v2973_v41 }
 0x20f   :  { %334 = vrot.lane.b32.xlu1 %v2906_v18, %s2772_s13 }
 0x210   :  { %393 = vrot.lane.b32.xlu0 %v2906_v18, %s2773_s14  ;;  %v468_v18 = vrot.slane %v3018_v10, %v2964_v35 }
 0x213   :  { %332 = vrot.lane.b32.xlu1 %v2884_v9, %s2772_s13 }
 0x214   :  { %391 = vrot.lane.b32.xlu0 %v2884_v9, %s2773_s14  ;;  %v749_v9 = vrot.slane %v3003_v3, %v2971_v40 }
 0x217   :  { %860 = vperm.xlu1 %2679, %v857_v19   ;;  %v3046_v19 = vld [vmem:[%s3387_s2 + $0x3] ss:$8 sm:$0xf] }
 0x249   :  { %v781_v20 = vpop.permute.xlu1 %780 }
 0x24a   :  { %v2941_v21 = vpop.permute.xlu0 %668 }
 0x24d   :  { %v785_v22 = vpop.permute.xlu1 %784 }
 0x24e   :  { %v2943_v23 = vpop.permute.xlu0 %726 }
 0x251   :  { %v2945_v24 = vpop.permute.xlu1 %664 }
 0x252   :  { %v2947_v25 = vpop.permute.xlu0 %722 }
 0x255   :  { %v2949_v27 = vpop.permute.xlu1 %606 }
 0x256   :  { %v2951_v28 = vpop.permute.xlu0 %610 }
 0x259   :  { %v2955_v31 = vpop.permute.xlu1 %445 }
 0x25a   :  { %v2960_v33 = vpop.permute.xlu0 %507 }
 0x25d   :  { %v2969_v38 = vpop.permute.xlu1 %503 }
 0x25e   :  { %v783_v39 = vpop.permute.xlu0 %782 }
 0x25f   :  { %v790_v42 = vsel %vm788_vm3, %v783_v39, %v785_v22  ;;  %v791_v43 = vsel %vm788_vm3, %v781_v20, %v783_v39 }
 0x260   :  { %v816_v44 = vmul.f32 %v799_v36, %v791_v43  ;;  %v817_v45 = vmul.f32 %v803_v37, %v790_v42  ;;  %v745_v36 = vrot.slane %v3003_v3, %v2964_v35  ;;  %v3065_v37 = vld [vmem:[%s3387_s2] ss:$8 sm:$0xf]  ;;  %v526_v43 = vrot.slane %v3046_v19, %v2964_v35 }
 0x261   :  { %v2981_v48 = vpop.permute.xlu1 %449 }
 0x262   :  { %v2487_v49 = vpack.c.bf16 %v816_v44, %v816_v44  ;;  %v2488_v50 = vpack.c.bf16 %v817_v45, %v817_v45  ;;  %v787_v51 = vpop.permute.xlu0 %786  ;;  %v530_v44 = vrot.slane %v3046_v19, %v2971_v40 }
 0x263   :  { %v789_v52 = vsel %vm788_vm3, %v785_v22, %v787_v51  ;;  %v792_v53 = vsel %vm788_vm3, %v787_v51, %v781_v20  ;;  %v472_v20 = vrot.slane %v3018_v10, %v2971_v40  ;;  %vm1720_vm3 = vcmask 523712  }
 0x264   :  { %v818_v54 = vmul.f32 %v807_v46, %v789_v52  ;;  %v819_v55 = vmul.f32 %v811_v47, %v792_v53  ;;  %2433 = vmatprep.subr.msk.bf16.mxu0 %vm92_vm0, %v2488_v50  ;;  %v958_v56 = vsel %vm92_vm0, %v2487_v49, 0  ;;  %v522_v46 = vrot.slane %v3046_v19, %v2962_v34 }
 0x265   :  { %976 = vmatpush1.bf16.msra.mxu0 %v958_v56  ;;  %v2992_v58 = vpop.permute.xlu1 %328  ;;  %v534_v47 = vrot.slane %v3046_v19, %v2973_v41  ;;  %v691_v49 = vrot.slane %v2404_v11, %v2971_v40  ;;  %v695_v50 = vrot.slane %v2404_v11, %v2973_v41 }
 0x266   :  { %v2489_v59 = vpack.c.bf16 %v818_v54, %v818_v54  ;;  %v2490_v60 = vpack.c.bf16 %v819_v55, %v819_v55  ;;  %v729_v61 = vpop.permute.xlu0 %728  ;;  %v352_v55 = vrot.slane %v3065_v37, %v2964_v35 }
 0x267   :  { %v731_v62 = vsel %vm730_vm4, %v2943_v23, %v729_v61  ;;  %v734_v63 = vsel %vm730_vm4, %v729_v61, %v2947_v25 }
 0x268   :  { %2435 = vmatprep.subr.msk.bf16.mxu1 %vm92_vm0, %v2490_v60  ;;  %v964_v1 = vsel %vm92_vm0, %v2489_v59, 0  ;;  %vm1480_vm0 = vcmask 326912  }
 0x269   :  { %1017 = vmatpush1.bf16.msra.mxu1 %v964_v1  ;;  %v3005_v4 = vpop.permute.xlu1 %387  ;;  %v629_v1 = vrot.slane %v3010_v5, %v2964_v35 }
 0x26a   :  { %v613_v6 = vpop.permute.xlu0 %612 }
 0x26b   :  { %v618_v51 = vsel %vm614_vm5, %v613_v6, %v2949_v27  ;;  %v615_v2 = vsel %vm614_vm5, %v2951_v28, %v613_v6 }
 0x26d   :  { %v667_v17 = vpop.permute.xlu1 %666 }
 0x26e   :  { %v3053_v22 = vpop.permute.xlu0 %447  ;;  %v674_v39 = vsel %vm672_vm6, %v667_v17, %v2941_v21  ;;  %v675_v42 = vsel %vm672_vm6, %v2945_v24, %v667_v17 }
 0x26f   :  { %v700_v56 = vmul.f32 %v683_v26, %v675_v42  ;;  %v701_v57 = vmul.f32 %v687_v29, %v674_v39  ;;  %v760_v29 = vmul.f32 %v749_v9, %v731_v62  ;;  %v644_v42 = vmul.f32 %v633_v8, %v615_v2 }
 0x271   :  { %v725_v45 = vpop.permute.xlu1 %724 }
 0x272   :  { %v506_v52 = vpop.permute.xlu0 %505  ;;  %v732_v53 = vsel %vm730_vm4, %v725_v45, %v2943_v23  ;;  %v733_v54 = vsel %vm730_vm4, %v2947_v25, %v725_v45  ;;  %v3112_v23 = vld [vmem:[%s3387_s2 + $0x1] ss:$8 sm:$0xf]  ;;  %v645_v25 = vmul.f32 %v637_v15, %v618_v51  ;;  %v456_v15 = vsel %vm453_vm7, %v2955_v31, %v3053_v22 }
 0x273   :  { %v758_v59 = vmul.f32 %v741_v32, %v733_v54  ;;  %v759_v60 = vmul.f32 %v745_v36, %v732_v53  ;;  %v514_v61 = vsel %vm511_vm8, %v2969_v38, %v506_v52  ;;  %v761_v32 = vmul.f32 %v753_v14, %v734_v63 }
 0x274   :  { %v410_v45 = vrot.slane %v3112_v23, %v2964_v35  ;;  %v540_v51 = vmul.f32 %v526_v43, %v514_v61  ;;  %v513_v8 = vsel %vm511_vm8, %v506_v52, %v2960_v33  ;;  %v2482_v43 = vpack.c.bf16 %v645_v25, %v3035_v16 }
 0x275   :  { %v2483_v3 = vpack.c.bf16 %v758_v59, %v700_v56  ;;  %v671_v11 = vpop.permute.xlu1 %670  ;;  %v2484_v17 = vpack.c.bf16 %v759_v60, %v701_v57  ;;  %v482_v56 = vmul.f32 %v468_v18, %v456_v15  ;;  %v2481_v60 = vpack.c.bf16 %v644_v42, %v3013_v7 }
 0x276   :  { %v510_v5 = vpop.permute.xlu0 %509  ;;  %v673_v6 = vsel %vm672_vm6, %v2941_v21, %v671_v11  ;;  %v676_v26 = vsel %vm672_vm6, %v671_v11, %v2945_v24  ;;  %v464_v21 = vrot.slane %v3018_v10, %v2962_v34  ;;  %v348_v16 = vrot.slane %v3065_v37, %v2962_v34 }
 0x277   :  { %v702_v36 = vmul.f32 %v691_v49, %v673_v6  ;;  %v703_v39 = vmul.f32 %v695_v50, %v676_v26  ;;  %977 = vmatprep.subr.bf16.mxu0 %v2484_v17  ;;  %v476_v49 = vrot.slane %v3018_v10, %v2973_v41  ;;  %v515_v57 = vsel %vm511_vm8, %v510_v5, %v2969_v38 }
 0x278   :  { %978 = vmatpush1.bf16.msra.mxu0 %v2483_v3  ;;  %v541_v18 = vmul.f32 %v530_v44, %v513_v8  ;;  %v2476_v63 = vpack.c.bf16 %v540_v51, %v482_v56  ;;  %v360_v35 = vrot.slane %v3065_v37, %v2973_v41  ;;  %v414_v26 = vrot.slane %v3112_v23, %v2971_v40 }
 0x279   :  { %v2485_v24 = vpack.c.bf16 %v760_v29, %v702_v36  ;;  %v609_v9 = vpop.permute.xlu1 %608  ;;  %v2486_v14 = vpack.c.bf16 %v761_v32, %v703_v39  ;;  %vm1959_vm6 = vcmask 720512  }
 0x27a   :  { %v331_v50 = vpop.permute.xlu0 %330  ;;  %v616_v53 = vsel %vm614_vm5, %v609_v9, %v2951_v28  ;;  %v617_v54 = vsel %vm614_vm5, %v2949_v27, %v609_v9  ;;  %v455_v27 = vsel %vm453_vm7, %v3053_v22, %v2981_v48  ;;  %v512_v28 = vsel %vm511_vm8, %v2960_v33, %v510_v5 }
 0x27b   :  { %v642_v52 = vmul.f32 %v625_v0, %v617_v54  ;;  %v643_v59 = vmul.f32 %v629_v1, %v616_v53  ;;  %1018 = vmatprep.subr.bf16.mxu1 %v2486_v14  ;;  %v539_v22 = vmul.f32 %v522_v46, %v515_v57  ;;  %v341_v33 = vsel %vm338_vm9, %v2992_v58, %v331_v50 }
 0x27c   :  { %1019 = vmatpush1.bf16.msra.mxu1 %v2485_v24  ;;  %v483_v3 = vmul.f32 %v472_v20, %v455_v27  ;;  %v366_v19 = vmul.f32 %v352_v55, %v341_v33  ;;  %v356_v20 = vrot.slane %v3065_v37, %v2971_v40  ;;  %vm2118_vm8 = vcmask 851712  }
 0x27d   :  { %v2479_v38 = vpack.c.bf16 %v642_v52, %v3024_v12  ;;  %1020 = vmatprep.subr.bf16.mxu1 %v2482_v43  ;;  %v452_v62 = vpop.permute.xlu1 %451  ;;  %v2480_v7 = vpack.c.bf16 %v643_v59, %v3027_v13  ;;  %v542_v13 = vmul.f32 %v534_v47, %v512_v28 }
 0x27e   :  { %v390_v0 = vpop.permute.xlu0 %389  ;;  %v454_v44 = vsel %vm453_vm7, %v2981_v48, %v452_v62  ;;  %v457_v12 = vsel %vm453_vm7, %v452_v62, %v2955_v31  ;;  %v406_v31 = vrot.slane %v3112_v23, %v2962_v34  ;;  %v2477_v25 = vpack.c.bf16 %v541_v18, %v483_v3  ;;  %v3229_v62 = vld [vmem:[%s3394_s9] sm:$0xff] }
 0x27f   :  { %v398_v46 = vsel %vm395_vm10, %v3005_v4, %v390_v0  ;;  %v481_v1 = vmul.f32 %v464_v21, %v457_v12  ;;  %v484_v2 = vmul.f32 %v476_v49, %v454_v44  ;;  %979 = vmatprep.subr.bf16.mxu0 %v2480_v7  ;;  %v2774_v18 = vmov 0.0  }
 0x280   :  { %v424_v48 = vmul.f32 %v410_v45, %v398_v46  ;;  %980 = vmatpush1.bf16.msra.mxu0 %v2479_v38  ;;  %1021 = vmatpush1.bf16.msra.mxu1 %v2481_v60  ;;  %v3221_v38 = vld [vmem:[%s3394_s9 + $0x8] sm:$0xff]  ;;  %s2776_s9 = smov 64   ;;  %vm2039_vm7 = vcmask 786112  }
 0x281   :  { %v2475_v47 = vpack.c.bf16 %v539_v22, %v481_v1  ;;  %v335_v11 = vpop.permute.xlu1 %334  ;;  %981 = vmatprep.subr.bf16.mxu0 %v2476_v63  ;;  %v2478_v17 = vpack.c.bf16 %v542_v13, %v484_v2 }
 0x282   :  { %v394_v61 = vpop.permute.xlu0 %393  ;;  %v342_v10 = vsel %vm338_vm9, %v335_v11, %v2992_v58  ;;  %v2472_v55 = vpack.c.bf16 %v424_v48, %v366_v19  ;;  %v418_v58 = vrot.slane %v3112_v23, %v2973_v41  ;;  %v838_v23 = vld [vmem:[%s3392_s7] sm:$0xf] }
 0x283   :  { %v399_v34 = vsel %vm395_vm10, %v394_v61, %v3005_v4  ;;  %v365_v5 = vmul.f32 %v348_v16, %v342_v10  ;;  %1022 = vmatprep.subr.bf16.mxu1 %v2478_v17 }
 0x284   :  { %v423_v6 = vmul.f32 %v406_v31, %v399_v34  ;;  %982 = vmatpush1.bf16.msra.mxu0 %v2475_v47  ;;  %1023 = vmatpush1.bf16.msra.mxu1 %v2477_v25 }
 0x285   :  { %v333_v29 = vpop.permute.xlu1 %332  ;;  %983 = vmatprep.subr.bf16.mxu0 %v2472_v55 }
 0x286   :  { %v2471_v32 = vpack.c.bf16 %v423_v6, %v365_v5  ;;  %v392_v36 = vpop.permute.xlu0 %391  ;;  %v339_v4 = vsel %vm338_vm9, %v333_v29, %v335_v11  ;;  %v340_v37 = vsel %vm338_vm9, %v331_v50, %v333_v29  ;;  %vm2198_vm9 = vcmask 917312  }
 0x287   :  { %v396_v39 = vsel %vm395_vm10, %v392_v36, %v394_v61  ;;  %v397_v42 = vsel %vm395_vm10, %v390_v0, %v392_v36  ;;  %v367_v40 = vmul.f32 %v356_v20, %v340_v37  ;;  %v368_v15 = vmul.f32 %v360_v35, %v339_v4 }
 0x288   :  { %v425_v45 = vmul.f32 %v414_v26, %v397_v42  ;;  %v426_v41 = vmul.f32 %v418_v58, %v396_v39  ;;  %984 = vmatpush1.bf16.msra.mxu0 %v2471_v32  ;;  %vm2278_vm10 = vcmask 982912  }
 0x289   :  { %2539 = vmatprep.subr.mxu0 %v2774_v18 }
 0x28a   :  { %v2473_v21 = vpack.c.bf16 %v425_v45, %v367_v40  ;;  %v2474_v51 = vpack.c.bf16 %v426_v41, %v368_v15 }
 0x28b   :  { %2434 = vmatmul.mubr.msk.bf16.vlgmr.msra.gmra.mxu0 %vm953_vm11, %v838_v23 }
 0x28c   :  { %1024 = vmatprep.subr.bf16.mxu1 %v2474_v51  ;;  %2540 = vmatpush3.msra.mxu0 %v3221_v38 }
 0x28d   :  { %1025 = vmatpush1.bf16.msra.mxu1 %v2473_v21  ;;  %2541 = vmatprep.subr.mxu0 %v2774_v18 }
 0x28e   :  { %2546 = vmatprep.subr.mxu1 %v2774_v18  ;;  %2542 = vmatpush3.msra.mxu0 %v3229_v62 }
 0x28f   :  { %2543 = vmatprep.mubr.msk.f32.mxu0 %vm2775_vm12, %v2774_v18  ;;  %2553 = vmatprep.subr.mxu0 %v2774_v18 }
 0x290   :  { %2436 = vmatmul.mubr.msk.bf16.vlgmr.msra.gmra.mxu1 %vm953_vm11, %v838_v23  ;;  %vm2358_vm11 = vcmask 1048512  }
 0x291   :  { %2547 = vmatpush3.msra.mxu1 %v3221_v38  ;;  %2550 = vmatprep.mubr.msk.f32.mxu1 %vm2775_vm12, %v2774_v18 }
 0x292   :  { %v861_v24 = vpop.permute.xlu1 %860  ;;  %2548 = vmatprep.subr.mxu1 %v2774_v18 }
 0x293   :  { %2549 = vmatpush3.msra.mxu1 %v3229_v62 }
 0x294   :  { %2560 = vmatprep.subr.mxu1 %v2774_v18 }
 0x34b   :  { %v1003_v9 = vpop.f32.mrf.mxu0 }
 0x34c   :  { %v1004_v14 = vadd.f32 %v1003_v9, %v861_v24 }
 0x34d   :  { %v1005_v49 = vpop.f32.mrf.mxu0 }
 0x34e   :  { %v1051_v8 = vmax.f32 %v1004_v14, 0.0  ;;  %v1006_v50 = vadd.f32 %v1005_v49, %v861_v24 }
 0x34f   :  { %v1007_v53 = vpop.f32.mrf.mxu0 }
 0x350   :  { %v1052_v54 = vmax.f32 %v1006_v50, 0.0  ;;  %v1044_v43 = vpop.f32.mrf.mxu1  ;;  %1055 = vrot.lane.b32.xlu0 %v1051_v8, %s2769_s30 }
 0x351   :  { %v1045_v56 = vadd.f32 %v1044_v43, %v861_v24  ;;  %v1008_v57 = vpop.f32.mrf.mxu0 }
 0x352   :  { %v1046_v52 = vpop.f32.mrf.mxu1  ;;  %1057 = vrot.lane.b32.xlu1 %v1052_v54, %s2769_s30 }
 0x353   :  { %v1053_v59 = vmax.f32 %v1045_v56, 0.0  ;;  %v1047_v60 = vadd.f32 %v1046_v52, %v861_v24 }
 0x354   :  { %v1048_v27 = vpop.f32.mrf.mxu1 }
 0x355   :  { %v1054_v28 = vmax.f32 %v1047_v60, 0.0  ;;  %1059 = vrot.lane.b32.xlu0 %v1053_v59, %s2769_s30 }
 0x356   :  { %v1049_v16 = vpop.f32.mrf.mxu1 }
 0x357   :  { %1061 = vrot.lane.b32.xlu1 %v1054_v28, %s2769_s30  ;;  %s2777_s30 = smov 96  }
 0x3c2   :  { %v1056_v7 = vpop.permute.xlu0 %1055 }
 0x3c4   :  { %v1058_v63 = vpop.permute.xlu1 %1057 }
 0x3c5   :  { %v1065_v22 = vsel %vm614_vm5, %v1056_v7, %v1058_v63 }
 0x3c6   :  { %v1067_v33 = vmax.f32 %v1051_v8, %v1065_v22 }
 0x3c7   :  { %v1060_v0 = vpop.permute.xlu0 %1059 }
 0x3c8   :  { %v1064_v44 = vsel %vm614_vm5, %v1058_v63, %v1060_v0  ;;  %1071 = vrot.lane.b32.xlu0 %v1067_v33, %s2768_s29 }
 0x3c9   :  { %v1068_v12 = vmax.f32 %v1052_v54, %v1064_v44  ;;  %v1062_v13 = vpop.permute.xlu1 %1061 }
 0x3ca   :  { %v1063_v46 = vsel %vm614_vm5, %v1060_v0, %v1062_v13  ;;  %v1066_v1 = vsel %vm614_vm5, %v1062_v13, %v1056_v7  ;;  %vm1879_vm5 = vcmask 654912  }
 0x3cb   :  { %v1069_v2 = vmax.f32 %v1053_v59, %v1063_v46  ;;  %1073 = vrot.lane.b32.xlu1 %v1068_v12, %s2768_s29  ;;  %v1070_v3 = vmax.f32 %v1054_v28, %v1066_v1 }
 0x3cd   :  { %1075 = vrot.lane.b32.xlu0 %v1069_v2, %s2768_s29 }
 0x3cf   :  { %1077 = vrot.lane.b32.xlu1 %v1070_v3, %s2768_s29 }
 0x43a   :  { %v1072_v48 = vpop.permute.xlu0 %1071 }
 0x43d   :  { %v1074_v31 = vpop.permute.xlu1 %1073 }
 0x43e   :  { %v1081_v19 = vsel %vm730_vm4, %v1072_v48, %v1074_v31 }
 0x43f   :  { %v1083_v47 = vmax.f32 %v1067_v33, %v1081_v19  ;;  %v1076_v11 = vpop.permute.xlu0 %1075 }
 0x440   :  { %v1080_v17 = vsel %vm730_vm4, %v1074_v31, %v1076_v11 }
 0x441   :  { %1243 = vrot.lane.b32.xlu1 %v1083_v47, %s2776_s9  ;;  %1163 = vrot.lane.b32.xlu0 %v1083_v47, %s2777_s30  ;;  %v1084_v25 = vmax.f32 %v1068_v12, %v1080_v17  ;;  %v1078_v61 = vpop.permute.xlu1 %1077 }
 0x442   :  { %2544 = vmatmul.mubr.msk.f32.vlgmr.msra.gmra.mxu0 %vm210_vm2, %v1083_v47  ;;  %v1079_v10 = vsel %vm730_vm4, %v1076_v11, %v1078_v61  ;;  %v1082_v34 = vsel %vm730_vm4, %v1078_v61, %v1072_v48  ;;  %vm1799_vm4 = vcmask 589312  }
 0x443   :  { %2554 = vmatpush3.msra.mxu0 %v3221_v38  ;;  %2557 = vmatprep.mubr.msk.f32.mxu0 %vm2775_vm12, %v2774_v18  ;;  %v1085_v20 = vmax.f32 %v1069_v2, %v1079_v10  ;;  %v3275_v5 = vmax.f32 %v1070_v3, %v1082_v34 }
 0x444   :  { %2555 = vmatprep.subr.mxu0 %v2774_v18 }
 0x445   :  { %1323 = vrot.lane.b32.xlu0 %v1083_v47, %s2778_s15  ;;  %1482 = vrot.lane.b32.xlu1 %v1084_v25, %s2777_s30 }
 0x446   :  { %2556 = vmatpush3.msra.mxu0 %v3229_v62 }
 0x447   :  { %2567 = vmatprep.subr.mxu0 %v2774_v18 }
 0x449   :  { %1562 = vrot.lane.b32.xlu0 %v1084_v25, %s2776_s9  ;;  %1642 = vrot.lane.b32.xlu1 %v1084_v25, %s2778_s15 }
 0x44d   :  { %1881 = vrot.lane.b32.xlu1 %v1085_v20, %s2776_s9  ;;  %1801 = vrot.lane.b32.xlu0 %v1085_v20, %s2777_s30 }
 0x451   :  { %2120 = vrot.lane.b32.xlu1 %v3275_v5, %s2777_s30  ;;  %1961 = vrot.lane.b32.xlu0 %v1085_v20, %s2778_s15 }
 0x455   :  { %2280 = vrot.lane.b32.xlu1 %v3275_v5, %s2778_s15  ;;  %2200 = vrot.lane.b32.xlu0 %v3275_v5, %s2776_s9 }
 0x4b3   :  { %v1244_v35 = vpop.permute.xlu1 %1243  ;;  %v1164_v30 = vpop.permute.xlu0 %1163 }
 0x4b4   :  { %2551 = vmatmul.mubr.msk.f32.vlgmr.msra.gmra.mxu1 %vm210_vm2, %v1164_v30  ;;  %2558 = vmatmul.mubr.msk.f32.vlgmr.msra.gmra.mxu0 %vm210_vm2, %v1244_v35 }
 0x4b5   :  { %2561 = vmatpush3.msra.mxu1 %v3221_v38  ;;  %2568 = vmatpush3.msra.mxu0 %v3221_v38 }
 0x4b6   :  { %2562 = vmatprep.subr.mxu1 %v2774_v18  ;;  %2569 = vmatprep.subr.mxu0 %v2774_v18 }
 0x4b7   :  { %2570 = vmatpush3.msra.mxu0 %v3229_v62  ;;  %2571 = vmatprep.mubr.msk.f32.mxu0 %vm2775_vm12, %v2774_v18  ;;  %v1324_v55 = vpop.permute.xlu0 %1323  ;;  %v1483_v26 = vpop.permute.xlu1 %1482 }
 0x4b8   :  { %2563 = vmatpush3.msra.mxu1 %v3229_v62  ;;  %2564 = vmatprep.mubr.msk.f32.mxu1 %vm2775_vm12, %v2774_v18 }
 0x4b9   :  { %2565 = vmatmul.mubr.msk.f32.vlgmr.msra.gmra.mxu1 %vm210_vm2, %v1324_v55  ;;  %2572 = vmatmul.mubr.msk.f32.vlgmr.msra.gmra.mxu0 %vm210_vm2, %v1084_v25 }
 0x4ba   :  { %2574 = vmatprep.subr.mxu1 %v2774_v18  ;;  %2581 = vmatprep.subr.mxu0 %v2774_v18 }
 0x4bb   :  { %2575 = vmatpush3.msra.mxu1 %v3221_v38  ;;  %2582 = vmatpush3.msra.mxu0 %v3221_v38  ;;  %v1563_v6 = vpop.permute.xlu0 %1562  ;;  %v1643_v58 = vpop.permute.xlu1 %1642 }
 0x4bc   :  { %2576 = vmatprep.subr.mxu1 %v2774_v18  ;;  %2583 = vmatprep.subr.mxu0 %v2774_v18 }
 0x4bd   :  { %2577 = vmatpush3.msra.mxu1 %v3229_v62  ;;  %2578 = vmatprep.mubr.msk.f32.mxu1 %vm2775_vm12, %v2774_v18 }
 0x4be   :  { %2584 = vmatpush3.msra.mxu0 %v3229_v62  ;;  %2585 = vmatprep.mubr.msk.f32.mxu0 %vm2775_vm12, %v2774_v18 }
 0x4bf   :  { %2579 = vmatmul.mubr.msk.f32.vlgmr.msra.gmra.mxu1 %vm210_vm2, %v1483_v26  ;;  %2586 = vmatmul.mubr.msk.f32.vlgmr.msra.gmra.mxu0 %vm210_vm2, %v1563_v6  ;;  %v1882_v29 = vpop.permute.xlu1 %1881  ;;  %v1802_v32 = vpop.permute.xlu0 %1801 }
 0x4c0   :  { %2588 = vmatprep.subr.mxu1 %v2774_v18  ;;  %2595 = vmatprep.subr.mxu0 %v2774_v18 }
 0x4c1   :  { %2589 = vmatpush3.msra.mxu1 %v3221_v38  ;;  %2596 = vmatpush3.msra.mxu0 %v3221_v38 }
 0x4c2   :  { %2590 = vmatprep.subr.mxu1 %v2774_v18  ;;  %2597 = vmatprep.subr.mxu0 %v2774_v18 }
 0x4c3   :  { %2591 = vmatpush3.msra.mxu1 %v3229_v62  ;;  %2592 = vmatprep.mubr.msk.f32.mxu1 %vm2775_vm12, %v2774_v18  ;;  %v1962_v36 = vpop.permute.xlu0 %1961  ;;  %v2121_v4 = vpop.permute.xlu1 %2120 }
 0x4c4   :  { %2598 = vmatpush3.msra.mxu0 %v3229_v62  ;;  %2599 = vmatprep.mubr.msk.f32.mxu0 %vm2775_vm12, %v2774_v18 }
 0x4c5   :  { %2593 = vmatmul.mubr.msk.f32.vlgmr.msra.gmra.mxu1 %vm210_vm2, %v1643_v58  ;;  %2600 = vmatmul.mubr.msk.f32.vlgmr.msra.gmra.mxu0 %vm210_vm2, %v1085_v20 }
 0x4c6   :  { %2602 = vmatprep.subr.mxu1 %v2774_v18  ;;  %2609 = vmatprep.subr.mxu0 %v2774_v18 }
 0x4c7   :  { %2603 = vmatpush3.msra.mxu1 %v3221_v38  ;;  %2610 = vmatpush3.msra.mxu0 %v3221_v38  ;;  %v2201_v37 = vpop.permute.xlu0 %2200  ;;  %v2281_v39 = vpop.permute.xlu1 %2280 }
 0x4c8   :  { %2604 = vmatprep.subr.mxu1 %v2774_v18  ;;  %2611 = vmatprep.subr.mxu0 %v2774_v18 }
 0x4c9   :  { %2605 = vmatpush3.msra.mxu1 %v3229_v62  ;;  %2606 = vmatprep.mubr.msk.f32.mxu1 %vm2775_vm12, %v2774_v18 }
 0x4ca   :  { %2612 = vmatpush3.msra.mxu0 %v3229_v62  ;;  %2613 = vmatprep.mubr.msk.f32.mxu0 %vm2775_vm12, %v2774_v18 }
 0x4cb   :  { %2607 = vmatmul.mubr.msk.f32.vlgmr.msra.gmra.mxu1 %vm210_vm2, %v1802_v32  ;;  %2614 = vmatmul.mubr.msk.f32.vlgmr.msra.gmra.mxu0 %vm210_vm2, %v1882_v29 }
 0x4cc   :  { %2616 = vmatprep.subr.mxu1 %v2774_v18  ;;  %2623 = vmatprep.subr.mxu0 %v2774_v18 }
 0x4cd   :  { %2617 = vmatpush3.msra.mxu1 %v3221_v38  ;;  %2624 = vmatpush3.msra.mxu0 %v3221_v38 }
 0x4ce   :  { %2618 = vmatprep.subr.mxu1 %v2774_v18  ;;  %2625 = vmatprep.subr.mxu0 %v2774_v18 }
 0x4cf   :  { %2619 = vmatpush3.msra.mxu1 %v3229_v62  ;;  %2620 = vmatprep.mubr.msk.f32.mxu1 %vm2775_vm12, %v2774_v18 }
 0x4d0   :  { %2626 = vmatpush3.msra.mxu0 %v3229_v62  ;;  %2627 = vmatprep.mubr.msk.f32.mxu0 %vm2775_vm12, %v2774_v18 }
 0x4d1   :  { %2621 = vmatmul.mubr.msk.f32.vlgmr.msra.gmra.mxu1 %vm210_vm2, %v1962_v36  ;;  %2628 = vmatmul.mubr.msk.f32.vlgmr.msra.gmra.mxu0 %vm210_vm2, %v3275_v5 }
 0x4d2   :  { %2630 = vmatprep.subr.mxu1 %v2774_v18  ;;  %2637 = vmatprep.subr.mxu0 %v2774_v18 }
 0x4d3   :  { %2631 = vmatpush3.msra.mxu1 %v3221_v38  ;;  %2638 = vmatpush3.msra.mxu0 %v3221_v38 }
 0x4d4   :  { %2632 = vmatprep.subr.mxu1 %v2774_v18  ;;  %2639 = vmatprep.subr.mxu0 %v2774_v18 }
 0x4d5   :  { %2633 = vmatpush3.msra.mxu1 %v3229_v62  ;;  %2634 = vmatprep.mubr.msk.f32.mxu1 %vm2775_vm12, %v2774_v18 }
 0x4d6   :  { %2640 = vmatpush3.msra.mxu0 %v3229_v62  ;;  %2641 = vmatprep.mubr.msk.f32.mxu0 %vm2775_vm12, %v2774_v18 }
 0x4d7   :  { %2635 = vmatmul.mubr.msk.f32.vlgmr.msra.gmra.mxu1 %vm210_vm2, %v2121_v4  ;;  %2642 = vmatmul.mubr.msk.f32.vlgmr.msra.gmra.mxu0 %vm210_vm2, %v2201_v37 }
 0x4d8   :  { %2644 = vmatprep.subr.mxu1 %v2774_v18  ;;  %2648 = vmatprep.mubr.msk.f32.mxu1 %vm2775_vm12, %v2774_v18 }
 0x4d9   :  { %2645 = vmatpush3.msra.mxu1 %v3221_v38 }
 0x4da   :  { %2646 = vmatprep.subr.mxu1 %v2774_v18 }
 0x4db   :  { %2647 = vmatpush3.msra.mxu1 %v3229_v62 }
 0x4dc   :  { %2649 = vmatmul.mubr.msk.f32.vlgmr.msra.gmra.mxu1 %vm210_vm2, %v2281_v39  ;;  %vm1640_vm2 = vcmask 458112  }
 0x502   :  { %v1158_v42 = vpop.f32.mrf.mxu0 }
 0x503   :  { %1162 = vst.msk [vmem:[#allocation8] sm:$0xff] %vm88_vm1, %v1158_v42  ;;  %vm1560_vm1 = vcmask 392512  }
 0x504   :  { %v2545_v40 = vpop.f32.mrf.mxu0 }
 0x574   :  { %v1233_v15 = vpop.f32.mrf.mxu1  ;;  %v1313_v45 = vpop.f32.mrf.mxu0 }
 0x575   :  { %1318 = vrot.lane.b32.xlu1 %v1313_v45, %s2773_s14  ;;  %1238 = vrot.lane.b32.xlu0 %v1233_v15, %s2779_s16  ;;  %s2783_s14 = smov 56  }
 0x576   :  { %v2552_v41 = vpop.f32.mrf.mxu1  ;;  %v2559_v23 = vpop.f32.mrf.mxu0 }
 0x579   :  { %v1393_v21 = vpop.f32.mrf.mxu1  ;;  %v1472_v51 = vpop.f32.mrf.mxu0 }
 0x57a   :  { %1477 = vrot.lane.b32.xlu1 %v1472_v51, %s2778_s15  ;;  %1398 = vrot.lane.b32.xlu0 %v1393_v21, %s2780_s8 }
 0x57b   :  { %v2566_v24 = vpop.f32.mrf.mxu1  ;;  %v2573_v9 = vpop.f32.mrf.mxu0 }
 0x57f   :  { %v1552_v14 = vpop.f32.mrf.mxu1  ;;  %v1632_v49 = vpop.f32.mrf.mxu0 }
 0x580   :  { %1557 = vrot.lane.b32.xlu0 %v1552_v14, %s2781_s17  ;;  %1637 = vrot.lane.b32.xlu1 %v1632_v49, %s2782_s18 }
 0x581   :  { %v2580_v8 = vpop.f32.mrf.mxu1  ;;  %v2587_v50 = vpop.f32.mrf.mxu0 }
 0x585   :  { %v1712_v53 = vpop.f32.mrf.mxu1  ;;  %v1791_v54 = vpop.f32.mrf.mxu0 }
 0x586   :  { %1717 = vrot.lane.b32.xlu0 %v1712_v53, %s2783_s14  ;;  %1796 = vrot.lane.b32.xlu1 %v1791_v54, %s2776_s9 }
 0x587   :  { %v2594_v43 = vpop.f32.mrf.mxu1  ;;  %v2601_v56 = vpop.f32.mrf.mxu0 }
 0x58b   :  { %v1871_v57 = vpop.f32.mrf.mxu1  ;;  %v1951_v52 = vpop.f32.mrf.mxu0 }
 0x58c   :  { %1956 = vrot.lane.b32.xlu1 %v1951_v52, %s2784_s19  ;;  %1876 = vrot.lane.b32.xlu0 %v1871_v57, %s2785_s20 }
 0x58d   :  { %v2608_v59 = vpop.f32.mrf.mxu1  ;;  %v2615_v60 = vpop.f32.mrf.mxu0 }
 0x591   :  { %v2031_v27 = vpop.f32.mrf.mxu1  ;;  %v2110_v28 = vpop.f32.mrf.mxu0 }
 0x592   :  { %2115 = vrot.lane.b32.xlu1 %v2110_v28, %s2777_s30  ;;  %2036 = vrot.lane.b32.xlu0 %v2031_v27, %s2786_s21 }
 0x593   :  { %v2622_v16 = vpop.f32.mrf.mxu1  ;;  %v2629_v18 = vpop.f32.mrf.mxu0 }
 0x597   :  { %v2190_v38 = vpop.f32.mrf.mxu1  ;;  %v2270_v62 = vpop.f32.mrf.mxu0 }
 0x598   :  { %2195 = vrot.lane.b32.xlu0 %v2190_v38, %s2787_s22  ;;  %2275 = vrot.lane.b32.xlu1 %v2270_v62, %s2768_s29  ;;  %s2789_s29 = smov [#allocation8]  }
 0x599   :  { %v2636_v7 = vpop.f32.mrf.mxu1  ;;  %v2643_v63 = vpop.f32.mrf.mxu0  ;;  %s2366_s1 = sshll.u32 %s2789_s29, 4  ;;  %s2367_s1 = int_to_ptr.vmem [resolvable:$true] %s2366_s1 }
 0x59a   :  { %s2737_s23 = scalar_lea.vmem %s2367_s1, 128  ;;  %p2742_p11 = scmp.lt.s32.totalorder %s2367_s1, %s2367_s1 }
 0x59b   :  { %p2738_p10 = scmp.ne.s32.totalorder %s2367_s1, %s2737_s23  ;;  %p2743_p12 = scmp.lt.s32.totalorder %s2737_s23, %s2737_s23 }
 0x59c   :  { %v2350_v22 = vpop.f32.mrf.mxu1 }
 0x59d   :  { %2355 = vrot.lane.b32.xlu0 %v2350_v22, %s2788_s0  ;;  %p2744_p13 = por %p2743_p12, %p2742_p11 }
 0x59e   :  { %v2650_v33 = vpop.f32.mrf.mxu1 }
 0x59f   :  { %p2745_p0 = pnand %p2744_p13, %p2738_p10 }
 0x5e7   :  { %v1319_v0 = vpop.permute.xlu1 %1318  ;;  %v1239_v44 = vpop.permute.xlu0 %1238 }
 0x5e8   :  { %1242 = vst.msk [vmem:[#allocation8] sm:$0xff] %vm1241_vm13, %v1239_v44 }
 0x5e9   :  { %1322 = vst.msk [vmem:[#allocation8] sm:$0xff] %vm1321_vm14, %v1319_v0 }
 0x5ec   :  { %v1478_v12 = vpop.permute.xlu1 %1477  ;;  %v1399_v13 = vpop.permute.xlu0 %1398 }
 0x5ed   :  { %1402 = vst.msk [vmem:[#allocation8] sm:$0xff] %vm1401_vm15, %v1399_v13 }
 0x5ee   :  { %1481 = vst.msk [vmem:[#allocation8] sm:$0xff] %vm1480_vm0, %v1478_v12 }
 0x5f2   :  { %v1638_v46 = vpop.permute.xlu1 %1637  ;;  %v1558_v1 = vpop.permute.xlu0 %1557 }
 0x5f3   :  { %1561 = vst.msk [vmem:[#allocation8] sm:$0xff] %vm1560_vm1, %v1558_v1 }
 0x5f4   :  { %1641 = vst.msk [vmem:[#allocation8] sm:$0xff] %vm1640_vm2, %v1638_v46 }
 0x5f8   :  { %v1797_v2 = vpop.permute.xlu1 %1796  ;;  %v1718_v3 = vpop.permute.xlu0 %1717 }
 0x5f9   :  { %1721 = vst.msk [vmem:[#allocation8] sm:$0xff] %vm1720_vm3, %v1718_v3 }
 0x5fa   :  { %1800 = vst.msk [vmem:[#allocation8] sm:$0xff] %vm1799_vm4, %v1797_v2 }
 0x5fe   :  { %v1957_v48 = vpop.permute.xlu1 %1956  ;;  %v1877_v31 = vpop.permute.xlu0 %1876 }
 0x5ff   :  { %1880 = vst.msk [vmem:[#allocation8] sm:$0xff] %vm1879_vm5, %v1877_v31 }
 0x600   :  { %1960 = vst.msk [vmem:[#allocation8] sm:$0xff] %vm1959_vm6, %v1957_v48 }
 0x604   :  { %v2116_v19 = vpop.permute.xlu1 %2115  ;;  %v2037_v47 = vpop.permute.xlu0 %2036 }
 0x605   :  { %2040 = vst.msk [vmem:[#allocation8] sm:$0xff] %vm2039_vm7, %v2037_v47 }
 0x606   :  { %2119 = vst.msk [vmem:[#allocation8] sm:$0xff] %vm2118_vm8, %v2116_v19 }
 0x60a   :  { %v2276_v11 = vpop.permute.xlu1 %2275  ;;  %v2196_v17 = vpop.permute.xlu0 %2195 }
 0x60b   :  { %2199 = vst.msk [vmem:[#allocation8] sm:$0xff] %vm2198_vm9, %v2196_v17 }
 0x60c   :  { %2279 = vst.msk [vmem:[#allocation8] sm:$0xff] %vm2278_vm10, %v2276_v11 }
 0x60f   :  { %v2356_v25 = vpop.permute.xlu0 %2355 }
 0x610   :  { %2359 = vst.msk [vmem:[#allocation8] sm:$0xff] %vm2358_vm11, %v2356_v25 }
 0x611   :  { %2748 = shalt.err (!%p2745_p0)
}
 0x612   :  { %2369 = dma.vmem_to_hbm [thread:$0]  %s2367_s1, 128, %s3395_s10, [#allocation5]  }
 0x613   :  { %2761 = dma.done.wait [#allocation5], 128  }
 0x614   :  { %2762 = vsyncadd [#allocation5], 4294967168 }
 0x615   :  { %2373 = vsyncpa [#allocation4], 1 }
 0x616   :  { %2374 = vsyncpa [#allocation7], 1 }
 0x617   :  { %2375 = vsyncpa [#allocation5], 1 }

</bundles_post_ra>
